<compile_context>
chip_gen: v7x
topology: tpu7x:2x2x1
jax: 0.10.0
libtpu: 0.0.40
codegen_flags: <defaults>
</compile_context>

<pallas_src>
import functools
import numpy as np

import jax
import jax.numpy as jnp
from jax.experimental import pallas as pl
from jax.experimental.pallas import tpu as pltpu


CFG = dict(d_model=128, n_heads=4, n_blks=2, conv_ksize=3)


# --------------------------------------------------------------------------- #
# in-kernel helpers
# --------------------------------------------------------------------------- #
def _ln(x, g, b, eps=1e-5):
    mean = jnp.mean(x, axis=-1, keepdims=True)
    xc = x - mean
    var = jnp.mean(xc * xc, axis=-1, keepdims=True)
    return xc * jax.lax.rsqrt(var + eps) * g + b


def _mm(x, w):
    # bf16 MXU inputs, f32 accumulation.
    return jnp.dot(x.astype(jnp.bfloat16), w.astype(jnp.bfloat16),
                   preferred_element_type=jnp.float32)


# --------------------------------------------------------------------------- #
# fused kernels (one per conformer sub-module, gridded over batch)
# --------------------------------------------------------------------------- #
def _ffn_fused_kernel(*refs, res_scale, with_final_ln):
    if with_final_ln:
        x_ref, ln_g, ln_b, w1, b1, w2, b2, fg, fb, o_ref = refs
    else:
        x_ref, ln_g, ln_b, w1, b1, w2, b2, o_ref = refs
    x = x_ref[...].astype(jnp.float32)                      # (T, D)
    h = _ln(x, ln_g[...], ln_b[...])
    h = _mm(h, w1[...]) + b1[...]                           # (T, 4D)
    h = h * jax.nn.sigmoid(h)                               # Swish
    y = _mm(h, w2[...]) + b2[...]                           # (T, D)
    out = x + res_scale * y
    if with_final_ln:
        out = _ln(out, fg[...], fb[...])
    o_ref[...] = out


def _mhsa_fused_kernel(x_ref, ln_g, ln_b, wqkv, bqkv, wo, bo, o_ref,
                       *, n_heads, scale):
    x = x_ref[...].astype(jnp.float32)                      # (T, D)
    D = x.shape[-1]
    dh = D // n_heads
    h = _ln(x, ln_g[...], ln_b[...])
    qkv = _mm(h, wqkv[...]) + bqkv[...]                     # (T, 3D)
    head_outs = []
    for hh in range(n_heads):                               # static unroll
        q = qkv[:, hh * dh:(hh + 1) * dh]
        k = qkv[:, D + hh * dh:D + (hh + 1) * dh]
        v = qkv[:, 2 * D + hh * dh:2 * D + (hh + 1) * dh]
        s = jax.lax.dot_general(q.astype(jnp.bfloat16), k.astype(jnp.bfloat16),
                                (((1,), (1,)), ((), ())),
                                preferred_element_type=jnp.float32) * scale
        m = jnp.max(s, axis=-1, keepdims=True)
        p = jnp.exp(s - m)
        l = jnp.sum(p, axis=-1, keepdims=True)
        p = p * pl.reciprocal(l, approx=True)
        head_outs.append(jnp.dot(p.astype(jnp.bfloat16), v.astype(jnp.bfloat16),
                                 preferred_element_type=jnp.float32))
    o = jnp.concatenate(head_outs, axis=-1)                 # (T, D) lane-dense
    y = _mm(o, wo[...]) + bo[...]
    o_ref[...] = x + y


def _conv_fused_kernel(x_ref, ln_g, ln_b, pw1_w, pw1_b, dw_w, bn_scale, bn_shift,
                       pw2_w, pw2_b, o_ref, *, ksize):
    x = x_ref[...].astype(jnp.float32)                      # (T, D)
    T, D = x.shape
    h = _ln(x, ln_g[...], ln_b[...])
    g = _mm(h, pw1_w[...]) + pw1_b[...]                     # (T, 2D)
    a = g[:, :D] * jax.nn.sigmoid(g[:, D:])                 # GLU
    # depthwise conv over time: zero-pad once, static slices per tap
    pad = ksize // 2
    zeros = jnp.zeros((pad, D), jnp.float32)
    ap = jnp.concatenate([zeros, a, zeros], axis=0)         # (T + 2*pad, D)
    w = dw_w[...].astype(jnp.float32)                       # (ksize, D)
    acc = jnp.zeros((T, D), jnp.float32)
    for kk in range(ksize):                                 # static unroll
        acc = acc + ap[kk:kk + T, :] * w[kk:kk + 1, :]
    # BatchNorm1d (eval) folded to scale/shift, fused with Swish
    y = acc * bn_scale[...] + bn_shift[...]
    y = y * jax.nn.sigmoid(y)
    y = _mm(y, pw2_w[...]) + pw2_b[...]
    o_ref[...] = x + y


# --------------------------------------------------------------------------- #
# pallas_call wrappers (grid over batch, "parallel" for dual-TC chips)
# --------------------------------------------------------------------------- #
def _full(shape):
    return pl.BlockSpec(shape, lambda b: (0,) * len(shape))


def _batched_call(kernel, x, weight_args, weight_specs):
    B, T, D = x.shape
    xspec = pl.BlockSpec((pl.Squeezed(), T, D), lambda b: (b, 0, 0))
    return pl.pallas_call(
        kernel,
        out_shape=jax.ShapeDtypeStruct((B, T, D), jnp.float32),
        grid=(B,),
        in_specs=[xspec] + weight_specs,
        out_specs=xspec,
        compiler_params=pltpu.CompilerParams(dimension_semantics=("parallel",)),
    )(x, *weight_args)


def fused_ffn(x, p, res_scale, final_ln=None):
    D = x.shape[-1]
    H = p["w1"].shape[1]
    args = [p["ln_g"], p["ln_b"], p["w1"], p["b1"], p["w2"], p["b2"]]
    specs = [_full((1, D)), _full((1, D)), _full((D, H)), _full((1, H)),
             _full((H, D)), _full((1, D))]
    with_final_ln = final_ln is not None
    if with_final_ln:
        args += [final_ln[0], final_ln[1]]
        specs += [_full((1, D)), _full((1, D))]
    kern = functools.partial(_ffn_fused_kernel, res_scale=res_scale,
                             with_final_ln=with_final_ln)
    return _batched_call(kern, x, args, specs)


def fused_mhsa(x, p, n_heads):
    D = x.shape[-1]
    dh = D // n_heads
    kern = functools.partial(_mhsa_fused_kernel, n_heads=n_heads,
                             scale=float(1.0 / np.sqrt(dh)))
    args = [p["ln_g"], p["ln_b"], p["wqkv"], p["bqkv"], p["wo"], p["bo"]]
    specs = [_full((1, D)), _full((1, D)), _full((D, 3 * D)), _full((1, 3 * D)),
             _full((D, D)), _full((1, D))]
    return _batched_call(kern, x, args, specs)


def fused_conv(x, p):
    D = x.shape[-1]
    K = p["dw_w"].shape[0]
    kern = functools.partial(_conv_fused_kernel, ksize=K)
    args = [p["ln_g"], p["ln_b"], p["pw1_w"], p["pw1_b"], p["dw_w"],
            p["bn_scale"], p["bn_shift"], p["pw2_w"], p["pw2_b"]]
    specs = [_full((1, D)), _full((1, D)), _full((D, 2 * D)), _full((1, 2 * D)),
             _full((K, D)), _full((1, D)), _full((1, D)),
             _full((D, D)), _full((1, D))]
    return _batched_call(kern, x, args, specs)


# --------------------------------------------------------------------------- #
# conformer block / encoder forward
# --------------------------------------------------------------------------- #
def conformer_block(x, p, n_heads):
    x = fused_ffn(x, p["ffn1"], 0.5)
    x = fused_mhsa(x, p["mhsa"], n_heads)
    x = fused_conv(x, p["conv"])
    x = fused_ffn(x, p["ffn2"], 0.5, final_ln=(p["ln_g"], p["ln_b"]))
    return x


def encoder_forward(params, x):
    for blk in params["blocks"]:
        x = conformer_block(x, blk, CFG["n_heads"])
    return x


# --------------------------------------------------------------------------- #
# deterministic parameter init (matmul weights stored bf16)
# --------------------------------------------------------------------------- #
class KeyGen:
    def __init__(self, key):
        self.key = key

    def __call__(self):
        self.key, k = jax.random.split(self.key)
        return k


def init_linear_params(kg, d_in, d_out):
    w = (jax.random.normal(kg(), (d_in, d_out), jnp.float32)
         * (1.0 / np.sqrt(d_in))).astype(jnp.bfloat16)
    b = jax.random.normal(kg(), (1, d_out), jnp.float32) * 0.02
    return w, b


def init_ln_params(d):
    return jnp.ones((1, d), jnp.float32), jnp.zeros((1, d), jnp.float32)


def init_ffn_params(kg, d):
    g, b = init_ln_params(d)
    w1, b1 = init_linear_params(kg, d, 4 * d)
    w2, b2 = init_linear_params(kg, 4 * d, d)
    return dict(ln_g=g, ln_b=b, w1=w1, b1=b1, w2=w2, b2=b2)


def init_mhsa_params(kg, d):
    g, b = init_ln_params(d)
    wq, bq = init_linear_params(kg, d, d)
    wk, bk = init_linear_params(kg, d, d)
    wv, bv = init_linear_params(kg, d, d)
    wo, bo = init_linear_params(kg, d, d)
    return dict(ln_g=g, ln_b=b,
                wqkv=jnp.concatenate([wq, wk, wv], axis=1),
                bqkv=jnp.concatenate([bq, bk, bv], axis=1),
                wo=wo, bo=bo)


def init_conv_params(kg, d, ksize):
    g, b = init_ln_params(d)
    pw1_w, pw1_b = init_linear_params(kg, d, 2 * d)
    dw_w = jax.random.normal(kg(), (ksize, d), jnp.float32) * (1.0 / np.sqrt(ksize))
    pw2_w, pw2_b = init_linear_params(kg, d, d)
    # BatchNorm1d eval-mode (gamma=1, beta=0, rm=0, rv=1) folded to scale/shift.
    bn_g = jnp.ones((1, d), jnp.float32)
    bn_b = jnp.zeros((1, d), jnp.float32)
    bn_rm = jnp.zeros((1, d), jnp.float32)
    bn_rv = jnp.ones((1, d), jnp.float32)
    bn_scale = bn_g * jax.lax.rsqrt(bn_rv + 1e-5)
    bn_shift = bn_b - bn_rm * bn_scale
    return dict(ln_g=g, ln_b=b, pw1_w=pw1_w, pw1_b=pw1_b, dw_w=dw_w,
                bn_scale=bn_scale, bn_shift=bn_shift, pw2_w=pw2_w, pw2_b=pw2_b)


def init_block_params(kg, d, ksize):
    g, b = init_ln_params(d)
    return dict(ffn1=init_ffn_params(kg, d),
                mhsa=init_mhsa_params(kg, d),
                conv=init_conv_params(kg, d, ksize),
                ffn2=init_ffn_params(kg, d),
                ln_g=g, ln_b=b)


def init_encoder_params(kg):
    return dict(blocks=[init_block_params(kg, CFG["d_model"], CFG["conv_ksize"])
                        for _ in range(CFG["n_blks"])])


# --------------------------------------------------------------------------- #
if __name__ == "__main__":
    kg = KeyGen(jax.random.PRNGKey(0))
    params = init_encoder_params(kg)

    B, T = 2, 16
    x = jax.random.normal(kg(), (B, T, CFG["d_model"]), jnp.float32)

    fwd = jax.jit(encoder_forward)
    out = fwd(params, x)
    jax.block_until_ready(out)

    assert out.shape == (B, T, CFG["d_model"])
    assert bool(jnp.all(jnp.isfinite(out)))
    print("KERNEL_OK")
</pallas_src>

<mosaic_0001>
module attributes {stable_mosaic.version = 11 : i64} {
  func.func @_ffn_fused_kernel(%arg0: i32, %arg1: memref<1x16x128xf32, #tpu.memory_space<vmem>>, %arg2: memref<1x128xf32, #tpu.memory_space<vmem>>, %arg3: memref<1x128xf32, #tpu.memory_space<vmem>>, %arg4: memref<128x512xbf16, #tpu.memory_space<vmem>>, %arg5: memref<1x512xf32, #tpu.memory_space<vmem>>, %arg6: memref<512x128xbf16, #tpu.memory_space<vmem>>, %arg7: memref<1x128xf32, #tpu.memory_space<vmem>>, %arg8: memref<1x16x128xf32, #tpu.memory_space<vmem>>) attributes {dimension_semantics = [#tpu.dimension_semantics<parallel>], iteration_bounds = array<i64: 2>, scalar_prefetch = 0 : i64, scratch_operands = 0 : i64, tpu.core_type = #tpu.core_type<tc>, window_params = [{transform_indices = @transform_0, window_bounds = array<i64: 1, 16, 128>}, {pipeline_mode = #tpu.pipeline_mode<synchronous>, transform_indices = @transform_1, window_bounds = array<i64: 1, 128>}, {pipeline_mode = #tpu.pipeline_mode<synchronous>, transform_indices = @transform_2, window_bounds = array<i64: 1, 128>}, {pipeline_mode = #tpu.pipeline_mode<synchronous>, transform_indices = @transform_3, window_bounds = array<i64: 128, 512>}, {pipeline_mode = #tpu.pipeline_mode<synchronous>, transform_indices = @transform_4, window_bounds = array<i64: 1, 512>}, {pipeline_mode = #tpu.pipeline_mode<synchronous>, transform_indices = @transform_5, window_bounds = array<i64: 512, 128>}, {pipeline_mode = #tpu.pipeline_mode<synchronous>, transform_indices = @transform_6, window_bounds = array<i64: 1, 128>}, {transform_indices = @transform_7, window_bounds = array<i64: 1, 16, 128>}]} {
    %c0 = arith.constant 0 : index
    %c0_0 = arith.constant 0 : index
    %c0_1 = arith.constant 0 : index
    %0 = vector.load %arg1[%c0, %c0_0, %c0_1] : memref<1x16x128xf32, #tpu.memory_space<vmem>>, vector<1x16x128xf32>
    %1 = vector.shape_cast %0 : vector<1x16x128xf32> to vector<16x128xf32>
    %c0_2 = arith.constant 0 : index
    %c0_3 = arith.constant 0 : index
    %2 = vector.load %arg2[%c0_2, %c0_3] : memref<1x128xf32, #tpu.memory_space<vmem>>, vector<1x128xf32>
    %c0_4 = arith.constant 0 : index
    %c0_5 = arith.constant 0 : index
    %3 = vector.load %arg3[%c0_4, %c0_5] : memref<1x128xf32, #tpu.memory_space<vmem>>, vector<1x128xf32>
    %cst = arith.constant dense<0.000000e+00> : vector<16xf32>
    %4 = vector.multi_reduction <add>, %1, %cst [1] : vector<16x128xf32> to vector<16xf32>
    %5 = vector.shape_cast %4 : vector<16xf32> to vector<16x1xf32>
    %cst_6 = arith.constant 1.280000e+02 : f32
    %6 = vector.broadcast %cst_6 : f32 to vector<16x1xf32>
    %7 = arith.divf %5, %6 : vector<16x1xf32>
    %8 = vector.broadcast %7 : vector<16x1xf32> to vector<16x128xf32>
    %9 = arith.subf %1, %8 : vector<16x128xf32>
    %10 = arith.mulf %9, %9 : vector<16x128xf32>
    %cst_7 = arith.constant dense<0.000000e+00> : vector<16xf32>
    %11 = vector.multi_reduction <add>, %10, %cst_7 [1] : vector<16x128xf32> to vector<16xf32>
    %12 = vector.shape_cast %11 : vector<16xf32> to vector<16x1xf32>
    %cst_8 = arith.constant 1.280000e+02 : f32
    %13 = vector.broadcast %cst_8 : f32 to vector<16x1xf32>
    %14 = arith.divf %12, %13 : vector<16x1xf32>
    %cst_9 = arith.constant 9.99999974E-6 : f32
    %15 = vector.broadcast %cst_9 : f32 to vector<16x1xf32>
    %16 = arith.addf %14, %15 : vector<16x1xf32>
    %17 = math.rsqrt %16 : vector<16x1xf32>
    %18 = vector.broadcast %17 : vector<16x1xf32> to vector<16x128xf32>
    %19 = arith.mulf %9, %18 : vector<16x128xf32>
    %20 = vector.broadcast %2 : vector<1x128xf32> to vector<16x128xf32>
    %21 = arith.mulf %19, %20 : vector<16x128xf32>
    %22 = vector.broadcast %3 : vector<1x128xf32> to vector<16x128xf32>
    %23 = arith.addf %21, %22 : vector<16x128xf32>
    %c0_10 = arith.constant 0 : index
    %c0_11 = arith.constant 0 : index
    %24 = vector.load %arg4[%c0_10, %c0_11] : memref<128x512xbf16, #tpu.memory_space<vmem>>, vector<128x512xbf16>
    %25 = arith.truncf %23 : vector<16x128xf32> to vector<16x128xbf16>
    %cst_12 = arith.constant dense<0.000000e+00> : vector<16x512xf32>
    %26 = tpu.matmul %25, %24, %cst_12 {dimension_numbers = #tpu.dot_dimension_numbers<[1], [0], [0], [1], [0, 0, 1, 1], [], []>} : vector<16x128xbf16>, vector<128x512xbf16>, vector<16x512xf32> -> vector<16x512xf32>
    %c0_13 = arith.constant 0 : index
    %c0_14 = arith.constant 0 : index
    %27 = vector.load %arg5[%c0_13, %c0_14] : memref<1x512xf32, #tpu.memory_space<vmem>>, vector<1x512xf32>
    %28 = vector.broadcast %27 : vector<1x512xf32> to vector<16x512xf32>
    %29 = arith.addf %26, %28 : vector<16x512xf32>
    %30 = arith.negf %29 : vector<16x512xf32>
    %31 = math.exp %30 : vector<16x512xf32>
    %cst_15 = arith.constant 1.000000e+00 : f32
    %32 = vector.broadcast %cst_15 : f32 to vector<16x512xf32>
    %33 = arith.addf %32, %31 : vector<16x512xf32>
    %34 = arith.divf %32, %33 : vector<16x512xf32>
    %35 = arith.mulf %29, %34 : vector<16x512xf32>
    %c0_16 = arith.constant 0 : index
    %c0_17 = arith.constant 0 : index
    %36 = vector.load %arg6[%c0_16, %c0_17] : memref<512x128xbf16, #tpu.memory_space<vmem>>, vector<512x128xbf16>
    %37 = arith.truncf %35 : vector<16x512xf32> to vector<16x512xbf16>
    %cst_18 = arith.constant dense<0.000000e+00> : vector<16x128xf32>
    %38 = tpu.matmul %37, %36, %cst_18 {dimension_numbers = #tpu.dot_dimension_numbers<[1], [0], [0], [1], [0, 0, 1, 1], [], []>} : vector<16x512xbf16>, vector<512x128xbf16>, vector<16x128xf32> -> vector<16x128xf32>
    %c0_19 = arith.constant 0 : index
    %c0_20 = arith.constant 0 : index
    %39 = vector.load %arg7[%c0_19, %c0_20] : memref<1x128xf32, #tpu.memory_space<vmem>>, vector<1x128xf32>
    %40 = vector.broadcast %39 : vector<1x128xf32> to vector<16x128xf32>
    %41 = arith.addf %38, %40 : vector<16x128xf32>
    %cst_21 = arith.constant 5.000000e-01 : f32
    %42 = vector.broadcast %cst_21 : f32 to vector<16x128xf32>
    %43 = arith.mulf %42, %41 : vector<16x128xf32>
    %44 = arith.addf %1, %43 : vector<16x128xf32>
    %c0_22 = arith.constant 0 : index
    %c0_23 = arith.constant 0 : index
    %c0_24 = arith.constant 0 : index
    %45 = vector.load %arg8[%c0_22, %c0_23, %c0_24] : memref<1x16x128xf32, #tpu.memory_space<vmem>>, vector<1x16x128xf32>
    %46 = vector.shape_cast %45 : vector<1x16x128xf32> to vector<16x128xf32>
    %47 = vector.shape_cast %44 : vector<16x128xf32> to vector<1x16x128xf32>
    tpu.vector_store %arg8[%c0_22, %c0_23, %c0_24], %47 {strides = array<i32>} : memref<1x16x128xf32, #tpu.memory_space<vmem>>, vector<1x16x128xf32>,
    return
  }
  func.func @transform_0(%arg0: i32) -> (i32, i32, i32) {
    %c0_i32 = arith.constant 0 : i32
    %c0_i32_0 = arith.constant 0 : i32
    %c0_i32_1 = arith.constant 0 : i32
    return %arg0, %c0_i32, %c0_i32_0 : i32, i32, i32
  }
  func.func @transform_1(%arg0: i32) -> (i32, i32) {
    %c0_i32 = arith.constant 0 : i32
    %c0_i32_0 = arith.constant 0 : i32
    %c0_i32_1 = arith.constant 0 : i32
    return %c0_i32, %c0_i32_0 : i32, i32
  }
  func.func @transform_2(%arg0: i32) -> (i32, i32) {
    %c0_i32 = arith.constant 0 : i32
    %c0_i32_0 = arith.constant 0 : i32
    %c0_i32_1 = arith.constant 0 : i32
    return %c0_i32, %c0_i32_0 : i32, i32
  }
  func.func @transform_3(%arg0: i32) -> (i32, i32) {
    %c0_i32 = arith.constant 0 : i32
    %c0_i32_0 = arith.constant 0 : i32
    %c0_i32_1 = arith.constant 0 : i32
    return %c0_i32, %c0_i32_0 : i32, i32
  }
  func.func @transform_4(%arg0: i32) -> (i32, i32) {
    %c0_i32 = arith.constant 0 : i32
    %c0_i32_0 = arith.constant 0 : i32
    %c0_i32_1 = arith.constant 0 : i32
    return %c0_i32, %c0_i32_0 : i32, i32
  }
  func.func @transform_5(%arg0: i32) -> (i32, i32) {
    %c0_i32 = arith.constant 0 : i32
    %c0_i32_0 = arith.constant 0 : i32
    %c0_i32_1 = arith.constant 0 : i32
    return %c0_i32, %c0_i32_0 : i32, i32
  }
  func.func @transform_6(%arg0: i32) -> (i32, i32) {
    %c0_i32 = arith.constant 0 : i32
    %c0_i32_0 = arith.constant 0 : i32
    %c0_i32_1 = arith.constant 0 : i32
    return %c0_i32, %c0_i32_0 : i32, i32
  }
  func.func @transform_7(%arg0: i32) -> (i32, i32, i32) {
    %c0_i32 = arith.constant 0 : i32
    %c0_i32_0 = arith.constant 0 : i32
    %c0_i32_1 = arith.constant 0 : i32
    return %arg0, %c0_i32, %c0_i32_0 : i32, i32, i32
  }
}

module attributes {stable_mosaic.version = 11 : i64} {
  func.func @_ffn_fused_kernel(%arg0: i32, %arg1: memref<1x16x128xf32, #tpu.memory_space<vmem>>, %arg2: memref<1x128xf32, #tpu.memory_space<vmem>>, %arg3: memref<1x128xf32, #tpu.memory_space<vmem>>, %arg4: memref<128x512xbf16, #tpu.memory_space<vmem>>, %arg5: memref<1x512xf32, #tpu.memory_space<vmem>>, %arg6: memref<512x128xbf16, #tpu.memory_space<vmem>>, %arg7: memref<1x128xf32, #tpu.memory_space<vmem>>, %arg8: memref<1x128xf32, #tpu.memory_space<vmem>>, %arg9: memref<1x128xf32, #tpu.memory_space<vmem>>, %arg10: memref<1x16x128xf32, #tpu.memory_space<vmem>>) attributes {dimension_semantics = [#tpu.dimension_semantics<parallel>], iteration_bounds = array<i64: 2>, scalar_prefetch = 0 : i64, scratch_operands = 0 : i64, tpu.core_type = #tpu.core_type<tc>, window_params = [{transform_indices = @transform_0, window_bounds = array<i64: 1, 16, 128>}, {pipeline_mode = #tpu.pipeline_mode<synchronous>, transform_indices = @transform_1, window_bounds = array<i64: 1, 128>}, {pipeline_mode = #tpu.pipeline_mode<synchronous>, transform_indices = @transform_2, window_bounds = array<i64: 1, 128>}, {pipeline_mode = #tpu.pipeline_mode<synchronous>, transform_indices = @transform_3, window_bounds = array<i64: 128, 512>}, {pipeline_mode = #tpu.pipeline_mode<synchronous>, transform_indices = @transform_4, window_bounds = array<i64: 1, 512>}, {pipeline_mode = #tpu.pipeline_mode<synchronous>, transform_indices = @transform_5, window_bounds = array<i64: 512, 128>}, {pipeline_mode = #tpu.pipeline_mode<synchronous>, transform_indices = @transform_6, window_bounds = array<i64: 1, 128>}, {pipeline_mode = #tpu.pipeline_mode<synchronous>, transform_indices = @transform_7, window_bounds = array<i64: 1, 128>}, {pipeline_mode = #tpu.pipeline_mode<synchronous>, transform_indices = @transform_8, window_bounds = array<i64: 1, 128>}, {transform_indices = @transform_9, window_bounds = array<i64: 1, 16, 128>}]} {
    %c0 = arith.constant 0 : index
    %c0_0 = arith.constant 0 : index
    %c0_1 = arith.constant 0 : index
    %0 = vector.load %arg1[%c0, %c0_0, %c0_1] : memref<1x16x128xf32, #tpu.memory_space<vmem>>, vector<1x16x128xf32>
    %1 = vector.shape_cast %0 : vector<1x16x128xf32> to vector<16x128xf32>
    %c0_2 = arith.constant 0 : index
    %c0_3 = arith.constant 0 : index
    %2 = vector.load %arg2[%c0_2, %c0_3] : memref<1x128xf32, #tpu.memory_space<vmem>>, vector<1x128xf32>
    %c0_4 = arith.constant 0 : index
    %c0_5 = arith.constant 0 : index
    %3 = vector.load %arg3[%c0_4, %c0_5] : memref<1x128xf32, #tpu.memory_space<vmem>>, vector<1x128xf32>
    %cst = arith.constant dense<0.000000e+00> : vector<16xf32>
    %4 = vector.multi_reduction <add>, %1, %cst [1] : vector<16x128xf32> to vector<16xf32>
    %5 = vector.shape_cast %4 : vector<16xf32> to vector<16x1xf32>
    %cst_6 = arith.constant 1.280000e+02 : f32
    %6 = vector.broadcast %cst_6 : f32 to vector<16x1xf32>
    %7 = arith.divf %5, %6 : vector<16x1xf32>
    %8 = vector.broadcast %7 : vector<16x1xf32> to vector<16x128xf32>
    %9 = arith.subf %1, %8 : vector<16x128xf32>
    %10 = arith.mulf %9, %9 : vector<16x128xf32>
    %cst_7 = arith.constant dense<0.000000e+00> : vector<16xf32>
    %11 = vector.multi_reduction <add>, %10, %cst_7 [1] : vector<16x128xf32> to vector<16xf32>
    %12 = vector.shape_cast %11 : vector<16xf32> to vector<16x1xf32>
    %cst_8 = arith.constant 1.280000e+02 : f32
    %13 = vector.broadcast %cst_8 : f32 to vector<16x1xf32>
    %14 = arith.divf %12, %13 : vector<16x1xf32>
    %cst_9 = arith.constant 9.99999974E-6 : f32
    %15 = vector.broadcast %cst_9 : f32 to vector<16x1xf32>
    %16 = arith.addf %14, %15 : vector<16x1xf32>
    %17 = math.rsqrt %16 : vector<16x1xf32>
    %18 = vector.broadcast %17 : vector<16x1xf32> to vector<16x128xf32>
    %19 = arith.mulf %9, %18 : vector<16x128xf32>
    %20 = vector.broadcast %2 : vector<1x128xf32> to vector<16x128xf32>
    %21 = arith.mulf %19, %20 : vector<16x128xf32>
    %22 = vector.broadcast %3 : vector<1x128xf32> to vector<16x128xf32>
    %23 = arith.addf %21, %22 : vector<16x128xf32>
    %c0_10 = arith.constant 0 : index
    %c0_11 = arith.constant 0 : index
    %24 = vector.load %arg4[%c0_10, %c0_11] : memref<128x512xbf16, #tpu.memory_space<vmem>>, vector<128x512xbf16>
    %25 = arith.truncf %23 : vector<16x128xf32> to vector<16x128xbf16>
    %cst_12 = arith.constant dense<0.000000e+00> : vector<16x512xf32>
    %26 = tpu.matmul %25, %24, %cst_12 {dimension_numbers = #tpu.dot_dimension_numbers<[1], [0], [0], [1], [0, 0, 1, 1], [], []>} : vector<16x128xbf16>, vector<128x512xbf16>, vector<16x512xf32> -> vector<16x512xf32>
    %c0_13 = arith.constant 0 : index
    %c0_14 = arith.constant 0 : index
    %27 = vector.load %arg5[%c0_13, %c0_14] : memref<1x512xf32, #tpu.memory_space<vmem>>, vector<1x512xf32>
    %28 = vector.broadcast %27 : vector<1x512xf32> to vector<16x512xf32>
    %29 = arith.addf %26, %28 : vector<16x512xf32>
    %30 = arith.negf %29 : vector<16x512xf32>
    %31 = math.exp %30 : vector<16x512xf32>
    %cst_15 = arith.constant 1.000000e+00 : f32
    %32 = vector.broadcast %cst_15 : f32 to vector<16x512xf32>
    %33 = arith.addf %32, %31 : vector<16x512xf32>
    %34 = arith.divf %32, %33 : vector<16x512xf32>
    %35 = arith.mulf %29, %34 : vector<16x512xf32>
    %c0_16 = arith.constant 0 : index
    %c0_17 = arith.constant 0 : index
    %36 = vector.load %arg6[%c0_16, %c0_17] : memref<512x128xbf16, #tpu.memory_space<vmem>>, vector<512x128xbf16>
    %37 = arith.truncf %35 : vector<16x512xf32> to vector<16x512xbf16>
    %cst_18 = arith.constant dense<0.000000e+00> : vector<16x128xf32>
    %38 = tpu.matmul %37, %36, %cst_18 {dimension_numbers = #tpu.dot_dimension_numbers<[1], [0], [0], [1], [0, 0, 1, 1], [], []>} : vector<16x512xbf16>, vector<512x128xbf16>, vector<16x128xf32> -> vector<16x128xf32>
    %c0_19 = arith.constant 0 : index
    %c0_20 = arith.constant 0 : index
    %39 = vector.load %arg7[%c0_19, %c0_20] : memref<1x128xf32, #tpu.memory_space<vmem>>, vector<1x128xf32>
    %40 = vector.broadcast %39 : vector<1x128xf32> to vector<16x128xf32>
    %41 = arith.addf %38, %40 : vector<16x128xf32>
    %cst_21 = arith.constant 5.000000e-01 : f32
    %42 = vector.broadcast %cst_21 : f32 to vector<16x128xf32>
    %43 = arith.mulf %42, %41 : vector<16x128xf32>
    %44 = arith.addf %1, %43 : vector<16x128xf32>
    %c0_22 = arith.constant 0 : index
    %c0_23 = arith.constant 0 : index
    %45 = vector.load %arg8[%c0_22, %c0_23] : memref<1x128xf32, #tpu.memory_space<vmem>>, vector<1x128xf32>
    %c0_24 = arith.constant 0 : index
    %c0_25 = arith.constant 0 : index
    %46 = vector.load %arg9[%c0_24, %c0_25] : memref<1x128xf32, #tpu.memory_space<vmem>>, vector<1x128xf32>
    %cst_26 = arith.constant dense<0.000000e+00> : vector<16xf32>
    %47 = vector.multi_reduction <add>, %44, %cst_26 [1] : vector<16x128xf32> to vector<16xf32>
    %48 = vector.shape_cast %47 : vector<16xf32> to vector<16x1xf32>
    %cst_27 = arith.constant 1.280000e+02 : f32
    %49 = vector.broadcast %cst_27 : f32 to vector<16x1xf32>
    %50 = arith.divf %48, %49 : vector<16x1xf32>
    %51 = vector.broadcast %50 : vector<16x1xf32> to vector<16x128xf32>
    %52 = arith.subf %44, %51 : vector<16x128xf32>
    %53 = arith.mulf %52, %52 : vector<16x128xf32>
    %cst_28 = arith.constant dense<0.000000e+00> : vector<16xf32>
    %54 = vector.multi_reduction <add>, %53, %cst_28 [1] : vector<16x128xf32> to vector<16xf32>
    %55 = vector.shape_cast %54 : vector<16xf32> to vector<16x1xf32>
    %cst_29 = arith.constant 1.280000e+02 : f32
    %56 = vector.broadcast %cst_29 : f32 to vector<16x1xf32>
    %57 = arith.divf %55, %56 : vector<16x1xf32>
    %cst_30 = arith.constant 9.99999974E-6 : f32
    %58 = vector.broadcast %cst_30 : f32 to vector<16x1xf32>
    %59 = arith.addf %57, %58 : vector<16x1xf32>
    %60 = math.rsqrt %59 : vector<16x1xf32>
    %61 = vector.broadcast %60 : vector<16x1xf32> to vector<16x128xf32>
    %62 = arith.mulf %52, %61 : vector<16x128xf32>
    %63 = vector.broadcast %45 : vector<1x128xf32> to vector<16x128xf32>
    %64 = arith.mulf %62, %63 : vector<16x128xf32>
    %65 = vector.broadcast %46 : vector<1x128xf32> to vector<16x128xf32>
    %66 = arith.addf %64, %65 : vector<16x128xf32>
    %c0_31 = arith.constant 0 : index
    %c0_32 = arith.constant 0 : index
    %c0_33 = arith.constant 0 : index
    %67 = vector.load %arg10[%c0_31, %c0_32, %c0_33] : memref<1x16x128xf32, #tpu.memory_space<vmem>>, vector<1x16x128xf32>
    %68 = vector.shape_cast %67 : vector<1x16x128xf32> to vector<16x128xf32>
    %69 = vector.shape_cast %66 : vector<16x128xf32> to vector<1x16x128xf32>
    tpu.vector_store %arg10[%c0_31, %c0_32, %c0_33], %69 {strides = array<i32>} : memref<1x16x128xf32, #tpu.memory_space<vmem>>, vector<1x16x128xf32>,
    return
  }
  func.func @transform_0(%arg0: i32) -> (i32, i32, i32) {
    %c0_i32 = arith.constant 0 : i32
    %c0_i32_0 = arith.constant 0 : i32
    %c0_i32_1 = arith.constant 0 : i32
    return %arg0, %c0_i32, %c0_i32_0 : i32, i32, i32
  }
  func.func @transform_1(%arg0: i32) -> (i32, i32) {
    %c0_i32 = arith.constant 0 : i32
    %c0_i32_0 = arith.constant 0 : i32
    %c0_i32_1 = arith.constant 0 : i32
    return %c0_i32, %c0_i32_0 : i32, i32
  }
  func.func @transform_2(%arg0: i32) -> (i32, i32) {
    %c0_i32 = arith.constant 0 : i32
    %c0_i32_0 = arith.constant 0 : i32
    %c0_i32_1 = arith.constant 0 : i32
    return %c0_i32, %c0_i32_0 : i32, i32
  }
  func.func @transform_3(%arg0: i32) -> (i32, i32) {
    %c0_i32 = arith.constant 0 : i32
    %c0_i32_0 = arith.constant 0 : i32
    %c0_i32_1 = arith.constant 0 : i32
    return %c0_i32, %c0_i32_0 : i32, i32
  }
  func.func @transform_4(%arg0: i32) -> (i32, i32) {
    %c0_i32 = arith.constant 0 : i32
    %c0_i32_0 = arith.constant 0 : i32
    %c0_i32_1 = arith.constant 0 : i32
    return %c0_i32, %c0_i32_0 : i32, i32
  }
  func.func @transform_5(%arg0: i32) -> (i32, i32) {
    %c0_i32 = arith.constant 0 : i32
    %c0_i32_0 = arith.constant 0 : i32
    %c0_i32_1 = arith.constant 0 : i32
    return %c0_i32, %c0_i32_0 : i32, i32
  }
  func.func @transform_6(%arg0: i32) -> (i32, i32) {
    %c0_i32 = arith.constant 0 : i32
    %c0_i32_0 = arith.constant 0 : i32
    %c0_i32_1 = arith.constant 0 : i32
    return %c0_i32, %c0_i32_0 : i32, i32
  }
  func.func @transform_7(%arg0: i32) -> (i32, i32) {
    %c0_i32 = arith.constant 0 : i32
    %c0_i32_0 = arith.constant 0 : i32
    %c0_i32_1 = arith.constant 0 : i32
    return %c0_i32, %c0_i32_0 : i32, i32
  }
  func.func @transform_8(%arg0: i32) -> (i32, i32) {
    %c0_i32 = arith.constant 0 : i32
    %c0_i32_0 = arith.constant 0 : i32
    %c0_i32_1 = arith.constant 0 : i32
    return %c0_i32, %c0_i32_0 : i32, i32
  }
  func.func @transform_9(%arg0: i32) -> (i32, i32, i32) {
    %c0_i32 = arith.constant 0 : i32
    %c0_i32_0 = arith.constant 0 : i32
    %c0_i32_1 = arith.constant 0 : i32
    return %arg0, %c0_i32, %c0_i32_0 : i32, i32, i32
  }
}

module attributes {stable_mosaic.version = 11 : i64} {
  func.func @_mhsa_fused_kernel(%arg0: i32, %arg1: memref<1x16x128xf32, #tpu.memory_space<vmem>>, %arg2: memref<1x128xf32, #tpu.memory_space<vmem>>, %arg3: memref<1x128xf32, #tpu.memory_space<vmem>>, %arg4: memref<128x384xbf16, #tpu.memory_space<vmem>>, %arg5: memref<1x384xf32, #tpu.memory_space<vmem>>, %arg6: memref<128x128xbf16, #tpu.memory_space<vmem>>, %arg7: memref<1x128xf32, #tpu.memory_space<vmem>>, %arg8: memref<1x16x128xf32, #tpu.memory_space<vmem>>) attributes {dimension_semantics = [#tpu.dimension_semantics<parallel>], iteration_bounds = array<i64: 2>, scalar_prefetch = 0 : i64, scratch_operands = 0 : i64, tpu.core_type = #tpu.core_type<tc>, window_params = [{transform_indices = @transform_0, window_bounds = array<i64: 1, 16, 128>}, {pipeline_mode = #tpu.pipeline_mode<synchronous>, transform_indices = @transform_1, window_bounds = array<i64: 1, 128>}, {pipeline_mode = #tpu.pipeline_mode<synchronous>, transform_indices = @transform_2, window_bounds = array<i64: 1, 128>}, {pipeline_mode = #tpu.pipeline_mode<synchronous>, transform_indices = @transform_3, window_bounds = array<i64: 128, 384>}, {pipeline_mode = #tpu.pipeline_mode<synchronous>, transform_indices = @transform_4, window_bounds = array<i64: 1, 384>}, {pipeline_mode = #tpu.pipeline_mode<synchronous>, transform_indices = @transform_5, window_bounds = array<i64: 128, 128>}, {pipeline_mode = #tpu.pipeline_mode<synchronous>, transform_indices = @transform_6, window_bounds = array<i64: 1, 128>}, {transform_indices = @transform_7, window_bounds = array<i64: 1, 16, 128>}]} {
    %c0 = arith.constant 0 : index
    %c0_0 = arith.constant 0 : index
    %c0_1 = arith.constant 0 : index
    %0 = vector.load %arg1[%c0, %c0_0, %c0_1] : memref<1x16x128xf32, #tpu.memory_space<vmem>>, vector<1x16x128xf32>
    %1 = vector.shape_cast %0 : vector<1x16x128xf32> to vector<16x128xf32>
    %c0_2 = arith.constant 0 : index
    %c0_3 = arith.constant 0 : index
    %2 = vector.load %arg2[%c0_2, %c0_3] : memref<1x128xf32, #tpu.memory_space<vmem>>, vector<1x128xf32>
    %c0_4 = arith.constant 0 : index
    %c0_5 = arith.constant 0 : index
    %3 = vector.load %arg3[%c0_4, %c0_5] : memref<1x128xf32, #tpu.memory_space<vmem>>, vector<1x128xf32>
    %cst = arith.constant dense<0.000000e+00> : vector<16xf32>
    %4 = vector.multi_reduction <add>, %1, %cst [1] : vector<16x128xf32> to vector<16xf32>
    %5 = vector.shape_cast %4 : vector<16xf32> to vector<16x1xf32>
    %cst_6 = arith.constant 1.280000e+02 : f32
    %6 = vector.broadcast %cst_6 : f32 to vector<16x1xf32>
    %7 = arith.divf %5, %6 : vector<16x1xf32>
    %8 = vector.broadcast %7 : vector<16x1xf32> to vector<16x128xf32>
    %9 = arith.subf %1, %8 : vector<16x128xf32>
    %10 = arith.mulf %9, %9 : vector<16x128xf32>
    %cst_7 = arith.constant dense<0.000000e+00> : vector<16xf32>
    %11 = vector.multi_reduction <add>, %10, %cst_7 [1] : vector<16x128xf32> to vector<16xf32>
    %12 = vector.shape_cast %11 : vector<16xf32> to vector<16x1xf32>
    %cst_8 = arith.constant 1.280000e+02 : f32
    %13 = vector.broadcast %cst_8 : f32 to vector<16x1xf32>
    %14 = arith.divf %12, %13 : vector<16x1xf32>
    %cst_9 = arith.constant 9.99999974E-6 : f32
    %15 = vector.broadcast %cst_9 : f32 to vector<16x1xf32>
    %16 = arith.addf %14, %15 : vector<16x1xf32>
    %17 = math.rsqrt %16 : vector<16x1xf32>
    %18 = vector.broadcast %17 : vector<16x1xf32> to vector<16x128xf32>
    %19 = arith.mulf %9, %18 : vector<16x128xf32>
    %20 = vector.broadcast %2 : vector<1x128xf32> to vector<16x128xf32>
    %21 = arith.mulf %19, %20 : vector<16x128xf32>
    %22 = vector.broadcast %3 : vector<1x128xf32> to vector<16x128xf32>
    %23 = arith.addf %21, %22 : vector<16x128xf32>
    %c0_10 = arith.constant 0 : index
    %c0_11 = arith.constant 0 : index
    %24 = vector.load %arg4[%c0_10, %c0_11] : memref<128x384xbf16, #tpu.memory_space<vmem>>, vector<128x384xbf16>
    %25 = arith.truncf %23 : vector<16x128xf32> to vector<16x128xbf16>
    %cst_12 = arith.constant dense<0.000000e+00> : vector<16x384xf32>
    %26 = tpu.matmul %25, %24, %cst_12 {dimension_numbers = #tpu.dot_dimension_numbers<[1], [0], [0], [1], [0, 0, 1, 1], [], []>} : vector<16x128xbf16>, vector<128x384xbf16>, vector<16x384xf32> -> vector<16x384xf32>
    %c0_13 = arith.constant 0 : index
    %c0_14 = arith.constant 0 : index
    %27 = vector.load %arg5[%c0_13, %c0_14] : memref<1x384xf32, #tpu.memory_space<vmem>>, vector<1x384xf32>
    %28 = vector.broadcast %27 : vector<1x384xf32> to vector<16x384xf32>
    %29 = arith.addf %26, %28 : vector<16x384xf32>
    %30 = vector.extract_strided_slice %29 {offsets = [0, 0], sizes = [16, 32], strides = [1, 1]} : vector<16x384xf32> to vector<16x32xf32>
    %31 = vector.extract_strided_slice %29 {offsets = [0, 128], sizes = [16, 32], strides = [1, 1]} : vector<16x384xf32> to vector<16x32xf32>
    %32 = vector.extract_strided_slice %29 {offsets = [0, 256], sizes = [16, 32], strides = [1, 1]} : vector<16x384xf32> to vector<16x32xf32>
    %33 = arith.truncf %30 : vector<16x32xf32> to vector<16x32xbf16>
    %34 = arith.truncf %31 : vector<16x32xf32> to vector<16x32xbf16>
    %cst_15 = arith.constant dense<0.000000e+00> : vector<16x16xf32>
    %35 = tpu.matmul %33, %34, %cst_15 {dimension_numbers = #tpu.dot_dimension_numbers<[1], [1], [0], [0], [0, 0, 1, 0], [], []>} : vector<16x32xbf16>, vector<16x32xbf16>, vector<16x16xf32> -> vector<16x16xf32>
    %cst_16 = arith.constant 0.176776692 : f32
    %36 = vector.broadcast %cst_16 : f32 to vector<16x16xf32>
    %37 = arith.mulf %35, %36 : vector<16x16xf32>
    %cst_17 = arith.constant dense<0xFF800000> : vector<16xf32>
    %38 = vector.multi_reduction <maximumf>, %37, %cst_17 [1] : vector<16x16xf32> to vector<16xf32>
    %39 = vector.shape_cast %38 : vector<16xf32> to vector<16x1xf32>
    %40 = vector.broadcast %39 : vector<16x1xf32> to vector<16x16xf32>
    %41 = arith.subf %37, %40 : vector<16x16xf32>
    %42 = math.exp %41 : vector<16x16xf32>
    %cst_18 = arith.constant dense<0.000000e+00> : vector<16xf32>
    %43 = vector.multi_reduction <add>, %42, %cst_18 [1] : vector<16x16xf32> to vector<16xf32>
    %44 = vector.shape_cast %43 : vector<16xf32> to vector<16x1xf32>
    %45 = tpu.reciprocal %44 {approx = true} : vector<16x1xf32> -> vector<16x1xf32>
    %46 = vector.broadcast %45 : vector<16x1xf32> to vector<16x16xf32>
    %47 = arith.mulf %42, %46 : vector<16x16xf32>
    %48 = arith.truncf %47 : vector<16x16xf32> to vector<16x16xbf16>
    %49 = arith.truncf %32 : vector<16x32xf32> to vector<16x32xbf16>
    %cst_19 = arith.constant dense<0.000000e+00> : vector<16x32xf32>
    %50 = tpu.matmul %48, %49, %cst_19 {dimension_numbers = #tpu.dot_dimension_numbers<[1], [0], [0], [1], [0, 0, 1, 1], [], []>} : vector<16x16xbf16>, vector<16x32xbf16>, vector<16x32xf32> -> vector<16x32xf32>
    %51 = vector.extract_strided_slice %29 {offsets = [0, 32], sizes = [16, 32], strides = [1, 1]} : vector<16x384xf32> to vector<16x32xf32>
    %52 = vector.extract_strided_slice %29 {offsets = [0, 160], sizes = [16, 32], strides = [1, 1]} : vector<16x384xf32> to vector<16x32xf32>
    %53 = vector.extract_strided_slice %29 {offsets = [0, 288], sizes = [16, 32], strides = [1, 1]} : vector<16x384xf32> to vector<16x32xf32>
    %54 = arith.truncf %51 : vector<16x32xf32> to vector<16x32xbf16>
    %55 = arith.truncf %52 : vector<16x32xf32> to vector<16x32xbf16>
    %cst_20 = arith.constant dense<0.000000e+00> : vector<16x16xf32>
    %56 = tpu.matmul %54, %55, %cst_20 {dimension_numbers = #tpu.dot_dimension_numbers<[1], [1], [0], [0], [0, 0, 1, 0], [], []>} : vector<16x32xbf16>, vector<16x32xbf16>, vector<16x16xf32> -> vector<16x16xf32>
    %cst_21 = arith.constant 0.176776692 : f32
    %57 = vector.broadcast %cst_21 : f32 to vector<16x16xf32>
    %58 = arith.mulf %56, %57 : vector<16x16xf32>
    %cst_22 = arith.constant dense<0xFF800000> : vector<16xf32>
    %59 = vector.multi_reduction <maximumf>, %58, %cst_22 [1] : vector<16x16xf32> to vector<16xf32>
    %60 = vector.shape_cast %59 : vector<16xf32> to vector<16x1xf32>
    %61 = vector.broadcast %60 : vector<16x1xf32> to vector<16x16xf32>
    %62 = arith.subf %58, %61 : vector<16x16xf32>
    %63 = math.exp %62 : vector<16x16xf32>
    %cst_23 = arith.constant dense<0.000000e+00> : vector<16xf32>
    %64 = vector.multi_reduction <add>, %63, %cst_23 [1] : vector<16x16xf32> to vector<16xf32>
    %65 = vector.shape_cast %64 : vector<16xf32> to vector<16x1xf32>
    %66 = tpu.reciprocal %65 {approx = true} : vector<16x1xf32> -> vector<16x1xf32>
    %67 = vector.broadcast %66 : vector<16x1xf32> to vector<16x16xf32>
    %68 = arith.mulf %63, %67 : vector<16x16xf32>
    %69 = arith.truncf %68 : vector<16x16xf32> to vector<16x16xbf16>
    %70 = arith.truncf %53 : vector<16x32xf32> to vector<16x32xbf16>
    %cst_24 = arith.constant dense<0.000000e+00> : vector<16x32xf32>
    %71 = tpu.matmul %69, %70, %cst_24 {dimension_numbers = #tpu.dot_dimension_numbers<[1], [0], [0], [1], [0, 0, 1, 1], [], []>} : vector<16x16xbf16>, vector<16x32xbf16>, vector<16x32xf32> -> vector<16x32xf32>
    %72 = vector.extract_strided_slice %29 {offsets = [0, 64], sizes = [16, 32], strides = [1, 1]} : vector<16x384xf32> to vector<16x32xf32>
    %73 = vector.extract_strided_slice %29 {offsets = [0, 192], sizes = [16, 32], strides = [1, 1]} : vector<16x384xf32> to vector<16x32xf32>
    %74 = vector.extract_strided_slice %29 {offsets = [0, 320], sizes = [16, 32], strides = [1, 1]} : vector<16x384xf32> to vector<16x32xf32>
    %75 = arith.truncf %72 : vector<16x32xf32> to vector<16x32xbf16>
    %76 = arith.truncf %73 : vector<16x32xf32> to vector<16x32xbf16>
    %cst_25 = arith.constant dense<0.000000e+00> : vector<16x16xf32>
    %77 = tpu.matmul %75, %76, %cst_25 {dimension_numbers = #tpu.dot_dimension_numbers<[1], [1], [0], [0], [0, 0, 1, 0], [], []>} : vector<16x32xbf16>, vector<16x32xbf16>, vector<16x16xf32> -> vector<16x16xf32>
    %cst_26 = arith.constant 0.176776692 : f32
    %78 = vector.broadcast %cst_26 : f32 to vector<16x16xf32>
    %79 = arith.mulf %77, %78 : vector<16x16xf32>
    %cst_27 = arith.constant dense<0xFF800000> : vector<16xf32>
    %80 = vector.multi_reduction <maximumf>, %79, %cst_27 [1] : vector<16x16xf32> to vector<16xf32>
    %81 = vector.shape_cast %80 : vector<16xf32> to vector<16x1xf32>
    %82 = vector.broadcast %81 : vector<16x1xf32> to vector<16x16xf32>
    %83 = arith.subf %79, %82 : vector<16x16xf32>
    %84 = math.exp %83 : vector<16x16xf32>
    %cst_28 = arith.constant dense<0.000000e+00> : vector<16xf32>
    %85 = vector.multi_reduction <add>, %84, %cst_28 [1] : vector<16x16xf32> to vector<16xf32>
    %86 = vector.shape_cast %85 : vector<16xf32> to vector<16x1xf32>
    %87 = tpu.reciprocal %86 {approx = true} : vector<16x1xf32> -> vector<16x1xf32>
    %88 = vector.broadcast %87 : vector<16x1xf32> to vector<16x16xf32>
    %89 = arith.mulf %84, %88 : vector<16x16xf32>
    %90 = arith.truncf %89 : vector<16x16xf32> to vector<16x16xbf16>
    %91 = arith.truncf %74 : vector<16x32xf32> to vector<16x32xbf16>
    %cst_29 = arith.constant dense<0.000000e+00> : vector<16x32xf32>
    %92 = tpu.matmul %90, %91, %cst_29 {dimension_numbers = #tpu.dot_dimension_numbers<[1], [0], [0], [1], [0, 0, 1, 1], [], []>} : vector<16x16xbf16>, vector<16x32xbf16>, vector<16x32xf32> -> vector<16x32xf32>
    %93 = vector.extract_strided_slice %29 {offsets = [0, 96], sizes = [16, 32], strides = [1, 1]} : vector<16x384xf32> to vector<16x32xf32>
    %94 = vector.extract_strided_slice %29 {offsets = [0, 224], sizes = [16, 32], strides = [1, 1]} : vector<16x384xf32> to vector<16x32xf32>
    %95 = vector.extract_strided_slice %29 {offsets = [0, 352], sizes = [16, 32], strides = [1, 1]} : vector<16x384xf32> to vector<16x32xf32>
    %96 = arith.truncf %93 : vector<16x32xf32> to vector<16x32xbf16>
    %97 = arith.truncf %94 : vector<16x32xf32> to vector<16x32xbf16>
    %cst_30 = arith.constant dense<0.000000e+00> : vector<16x16xf32>
    %98 = tpu.matmul %96, %97, %cst_30 {dimension_numbers = #tpu.dot_dimension_numbers<[1], [1], [0], [0], [0, 0, 1, 0], [], []>} : vector<16x32xbf16>, vector<16x32xbf16>, vector<16x16xf32> -> vector<16x16xf32>
    %cst_31 = arith.constant 0.176776692 : f32
    %99 = vector.broadcast %cst_31 : f32 to vector<16x16xf32>
    %100 = arith.mulf %98, %99 : vector<16x16xf32>
    %cst_32 = arith.constant dense<0xFF800000> : vector<16xf32>
    %101 = vector.multi_reduction <maximumf>, %100, %cst_32 [1] : vector<16x16xf32> to vector<16xf32>
    %102 = vector.shape_cast %101 : vector<16xf32> to vector<16x1xf32>
    %103 = vector.broadcast %102 : vector<16x1xf32> to vector<16x16xf32>
    %104 = arith.subf %100, %103 : vector<16x16xf32>
    %105 = math.exp %104 : vector<16x16xf32>
    %cst_33 = arith.constant dense<0.000000e+00> : vector<16xf32>
    %106 = vector.multi_reduction <add>, %105, %cst_33 [1] : vector<16x16xf32> to vector<16xf32>
    %107 = vector.shape_cast %106 : vector<16xf32> to vector<16x1xf32>
    %108 = tpu.reciprocal %107 {approx = true} : vector<16x1xf32> -> vector<16x1xf32>
    %109 = vector.broadcast %108 : vector<16x1xf32> to vector<16x16xf32>
    %110 = arith.mulf %105, %109 : vector<16x16xf32>
    %111 = arith.truncf %110 : vector<16x16xf32> to vector<16x16xbf16>
    %112 = arith.truncf %95 : vector<16x32xf32> to vector<16x32xbf16>
    %cst_34 = arith.constant dense<0.000000e+00> : vector<16x32xf32>
    %113 = tpu.matmul %111, %112, %cst_34 {dimension_numbers = #tpu.dot_dimension_numbers<[1], [0], [0], [1], [0, 0, 1, 1], [], []>} : vector<16x16xbf16>, vector<16x32xbf16>, vector<16x32xf32> -> vector<16x32xf32>
    %114 = tpu.concatenate %50, %71, %92, %113 in 1 : vector<16x32xf32>, vector<16x32xf32>, vector<16x32xf32>, vector<16x32xf32> -> vector<16x128xf32>
    %c0_35 = arith.constant 0 : index
    %c0_36 = arith.constant 0 : index
    %115 = vector.load %arg6[%c0_35, %c0_36] : memref<128x128xbf16, #tpu.memory_space<vmem>>, vector<128x128xbf16>
    %116 = arith.truncf %114 : vector<16x128xf32> to vector<16x128xbf16>
    %cst_37 = arith.constant dense<0.000000e+00> : vector<16x128xf32>
    %117 = tpu.matmul %116, %115, %cst_37 {dimension_numbers = #tpu.dot_dimension_numbers<[1], [0], [0], [1], [0, 0, 1, 1], [], []>} : vector<16x128xbf16>, vector<128x128xbf16>, vector<16x128xf32> -> vector<16x128xf32>
    %c0_38 = arith.constant 0 : index
    %c0_39 = arith.constant 0 : index
    %118 = vector.load %arg7[%c0_38, %c0_39] : memref<1x128xf32, #tpu.memory_space<vmem>>, vector<1x128xf32>
    %119 = vector.broadcast %118 : vector<1x128xf32> to vector<16x128xf32>
    %120 = arith.addf %117, %119 : vector<16x128xf32>
    %121 = arith.addf %1, %120 : vector<16x128xf32>
    %c0_40 = arith.constant 0 : index
    %c0_41 = arith.constant 0 : index
    %c0_42 = arith.constant 0 : index
    %122 = vector.load %arg8[%c0_40, %c0_41, %c0_42] : memref<1x16x128xf32, #tpu.memory_space<vmem>>, vector<1x16x128xf32>
    %123 = vector.shape_cast %122 : vector<1x16x128xf32> to vector<16x128xf32>
    %124 = vector.shape_cast %121 : vector<16x128xf32> to vector<1x16x128xf32>
    tpu.vector_store %arg8[%c0_40, %c0_41, %c0_42], %124 {strides = array<i32>} : memref<1x16x128xf32, #tpu.memory_space<vmem>>, vector<1x16x128xf32>,
    return
  }
  func.func @transform_0(%arg0: i32) -> (i32, i32, i32) {
    %c0_i32 = arith.constant 0 : i32
    %c0_i32_0 = arith.constant 0 : i32
    %c0_i32_1 = arith.constant 0 : i32
    return %arg0, %c0_i32, %c0_i32_0 : i32, i32, i32
  }
  func.func @transform_1(%arg0: i32) -> (i32, i32) {
    %c0_i32 = arith.constant 0 : i32
    %c0_i32_0 = arith.constant 0 : i32
    %c0_i32_1 = arith.constant 0 : i32
    return %c0_i32, %c0_i32_0 : i32, i32
  }
  func.func @transform_2(%arg0: i32) -> (i32, i32) {
    %c0_i32 = arith.constant 0 : i32
    %c0_i32_0 = arith.constant 0 : i32
    %c0_i32_1 = arith.constant 0 : i32
    return %c0_i32, %c0_i32_0 : i32, i32
  }
  func.func @transform_3(%arg0: i32) -> (i32, i32) {
    %c0_i32 = arith.constant 0 : i32
    %c0_i32_0 = arith.constant 0 : i32
    %c0_i32_1 = arith.constant 0 : i32
    return %c0_i32, %c0_i32_0 : i32, i32
  }
  func.func @transform_4(%arg0: i32) -> (i32, i32) {
    %c0_i32 = arith.constant 0 : i32
    %c0_i32_0 = arith.constant 0 : i32
    %c0_i32_1 = arith.constant 0 : i32
    return %c0_i32, %c0_i32_0 : i32, i32
  }
  func.func @transform_5(%arg0: i32) -> (i32, i32) {
    %c0_i32 = arith.constant 0 : i32
    %c0_i32_0 = arith.constant 0 : i32
    %c0_i32_1 = arith.constant 0 : i32
    return %c0_i32, %c0_i32_0 : i32, i32
  }
  func.func @transform_6(%arg0: i32) -> (i32, i32) {
    %c0_i32 = arith.constant 0 : i32
    %c0_i32_0 = arith.constant 0 : i32
    %c0_i32_1 = arith.constant 0 : i32
    return %c0_i32, %c0_i32_0 : i32, i32
  }
  func.func @transform_7(%arg0: i32) -> (i32, i32, i32) {
    %c0_i32 = arith.constant 0 : i32
    %c0_i32_0 = arith.constant 0 : i32
    %c0_i32_1 = arith.constant 0 : i32
    return %arg0, %c0_i32, %c0_i32_0 : i32, i32, i32
  }
}

module attributes {stable_mosaic.version = 11 : i64} {
  func.func @_conv_fused_kernel(%arg0: i32, %arg1: memref<1x16x128xf32, #tpu.memory_space<vmem>>, %arg2: memref<1x128xf32, #tpu.memory_space<vmem>>, %arg3: memref<1x128xf32, #tpu.memory_space<vmem>>, %arg4: memref<128x256xbf16, #tpu.memory_space<vmem>>, %arg5: memref<1x256xf32, #tpu.memory_space<vmem>>, %arg6: memref<3x128xf32, #tpu.memory_space<vmem>>, %arg7: memref<1x128xf32, #tpu.memory_space<vmem>>, %arg8: memref<1x128xf32, #tpu.memory_space<vmem>>, %arg9: memref<128x128xbf16, #tpu.memory_space<vmem>>, %arg10: memref<1x128xf32, #tpu.memory_space<vmem>>, %arg11: memref<1x16x128xf32, #tpu.memory_space<vmem>>) attributes {dimension_semantics = [#tpu.dimension_semantics<parallel>], iteration_bounds = array<i64: 2>, scalar_prefetch = 0 : i64, scratch_operands = 0 : i64, tpu.core_type = #tpu.core_type<tc>, window_params = [{transform_indices = @transform_0, window_bounds = array<i64: 1, 16, 128>}, {pipeline_mode = #tpu.pipeline_mode<synchronous>, transform_indices = @transform_1, window_bounds = array<i64: 1, 128>}, {pipeline_mode = #tpu.pipeline_mode<synchronous>, transform_indices = @transform_2, window_bounds = array<i64: 1, 128>}, {pipeline_mode = #tpu.pipeline_mode<synchronous>, transform_indices = @transform_3, window_bounds = array<i64: 128, 256>}, {pipeline_mode = #tpu.pipeline_mode<synchronous>, transform_indices = @transform_4, window_bounds = array<i64: 1, 256>}, {pipeline_mode = #tpu.pipeline_mode<synchronous>, transform_indices = @transform_5, window_bounds = array<i64: 3, 128>}, {pipeline_mode = #tpu.pipeline_mode<synchronous>, transform_indices = @transform_6, window_bounds = array<i64: 1, 128>}, {pipeline_mode = #tpu.pipeline_mode<synchronous>, transform_indices = @transform_7, window_bounds = array<i64: 1, 128>}, {pipeline_mode = #tpu.pipeline_mode<synchronous>, transform_indices = @transform_8, window_bounds = array<i64: 128, 128>}, {pipeline_mode = #tpu.pipeline_mode<synchronous>, transform_indices = @transform_9, window_bounds = array<i64: 1, 128>}, {transform_indices = @transform_10, window_bounds = array<i64: 1, 16, 128>}]} {
    %c0 = arith.constant 0 : index
    %c0_0 = arith.constant 0 : index
    %c0_1 = arith.constant 0 : index
    %0 = vector.load %arg1[%c0, %c0_0, %c0_1] : memref<1x16x128xf32, #tpu.memory_space<vmem>>, vector<1x16x128xf32>
    %1 = vector.shape_cast %0 : vector<1x16x128xf32> to vector<16x128xf32>
    %c0_2 = arith.constant 0 : index
    %c0_3 = arith.constant 0 : index
    %2 = vector.load %arg2[%c0_2, %c0_3] : memref<1x128xf32, #tpu.memory_space<vmem>>, vector<1x128xf32>
    %c0_4 = arith.constant 0 : index
    %c0_5 = arith.constant 0 : index
    %3 = vector.load %arg3[%c0_4, %c0_5] : memref<1x128xf32, #tpu.memory_space<vmem>>, vector<1x128xf32>
    %cst = arith.constant dense<0.000000e+00> : vector<16xf32>
    %4 = vector.multi_reduction <add>, %1, %cst [1] : vector<16x128xf32> to vector<16xf32>
    %5 = vector.shape_cast %4 : vector<16xf32> to vector<16x1xf32>
    %cst_6 = arith.constant 1.280000e+02 : f32
    %6 = vector.broadcast %cst_6 : f32 to vector<16x1xf32>
    %7 = arith.divf %5, %6 : vector<16x1xf32>
    %8 = vector.broadcast %7 : vector<16x1xf32> to vector<16x128xf32>
    %9 = arith.subf %1, %8 : vector<16x128xf32>
    %10 = arith.mulf %9, %9 : vector<16x128xf32>
    %cst_7 = arith.constant dense<0.000000e+00> : vector<16xf32>
    %11 = vector.multi_reduction <add>, %10, %cst_7 [1] : vector<16x128xf32> to vector<16xf32>
    %12 = vector.shape_cast %11 : vector<16xf32> to vector<16x1xf32>
    %cst_8 = arith.constant 1.280000e+02 : f32
    %13 = vector.broadcast %cst_8 : f32 to vector<16x1xf32>
    %14 = arith.divf %12, %13 : vector<16x1xf32>
    %cst_9 = arith.constant 9.99999974E-6 : f32
    %15 = vector.broadcast %cst_9 : f32 to vector<16x1xf32>
    %16 = arith.addf %14, %15 : vector<16x1xf32>
    %17 = math.rsqrt %16 : vector<16x1xf32>
    %18 = vector.broadcast %17 : vector<16x1xf32> to vector<16x128xf32>
    %19 = arith.mulf %9, %18 : vector<16x128xf32>
    %20 = vector.broadcast %2 : vector<1x128xf32> to vector<16x128xf32>
    %21 = arith.mulf %19, %20 : vector<16x128xf32>
    %22 = vector.broadcast %3 : vector<1x128xf32> to vector<16x128xf32>
    %23 = arith.addf %21, %22 : vector<16x128xf32>
    %c0_10 = arith.constant 0 : index
    %c0_11 = arith.constant 0 : index
    %24 = vector.load %arg4[%c0_10, %c0_11] : memref<128x256xbf16, #tpu.memory_space<vmem>>, vector<128x256xbf16>
    %25 = arith.truncf %23 : vector<16x128xf32> to vector<16x128xbf16>
    %cst_12 = arith.constant dense<0.000000e+00> : vector<16x256xf32>
    %26 = tpu.matmul %25, %24, %cst_12 {dimension_numbers = #tpu.dot_dimension_numbers<[1], [0], [0], [1], [0, 0, 1, 1], [], []>} : vector<16x128xbf16>, vector<128x256xbf16>, vector<16x256xf32> -> vector<16x256xf32>
    %c0_13 = arith.constant 0 : index
    %c0_14 = arith.constant 0 : index
    %27 = vector.load %arg5[%c0_13, %c0_14] : memref<1x256xf32, #tpu.memory_space<vmem>>, vector<1x256xf32>
    %28 = vector.broadcast %27 : vector<1x256xf32> to vector<16x256xf32>
    %29 = arith.addf %26, %28 : vector<16x256xf32>
    %30 = vector.extract_strided_slice %29 {offsets = [0, 0], sizes = [16, 128], strides = [1, 1]} : vector<16x256xf32> to vector<16x128xf32>
    %31 = vector.extract_strided_slice %29 {offsets = [0, 128], sizes = [16, 128], strides = [1, 1]} : vector<16x256xf32> to vector<16x128xf32>
    %32 = arith.negf %31 : vector<16x128xf32>
    %33 = math.exp %32 : vector<16x128xf32>
    %cst_15 = arith.constant 1.000000e+00 : f32
    %34 = vector.broadcast %cst_15 : f32 to vector<16x128xf32>
    %35 = arith.addf %34, %33 : vector<16x128xf32>
    %36 = arith.divf %34, %35 : vector<16x128xf32>
    %37 = arith.mulf %30, %36 : vector<16x128xf32>
    %cst_16 = arith.constant 0.000000e+00 : f32
    %38 = vector.broadcast %cst_16 : f32 to vector<1x128xf32>
    %39 = tpu.concatenate %38, %37, %38 in 0 : vector<1x128xf32>, vector<16x128xf32>, vector<1x128xf32> -> vector<18x128xf32>
    %c0_17 = arith.constant 0 : index
    %c0_18 = arith.constant 0 : index
    %40 = vector.load %arg6[%c0_17, %c0_18] : memref<3x128xf32, #tpu.memory_space<vmem>>, vector<3x128xf32>
    %cst_19 = arith.constant 0.000000e+00 : f32
    %41 = vector.broadcast %cst_19 : f32 to vector<16x128xf32>
    %42 = vector.extract_strided_slice %39 {offsets = [0, 0], sizes = [16, 128], strides = [1, 1]} : vector<18x128xf32> to vector<16x128xf32>
    %43 = vector.extract_strided_slice %40 {offsets = [0, 0], sizes = [1, 128], strides = [1, 1]} : vector<3x128xf32> to vector<1x128xf32>
    %44 = vector.broadcast %43 : vector<1x128xf32> to vector<16x128xf32>
    %45 = arith.mulf %42, %44 : vector<16x128xf32>
    %46 = arith.addf %41, %45 : vector<16x128xf32>
    %47 = vector.extract_strided_slice %39 {offsets = [1, 0], sizes = [16, 128], strides = [1, 1]} : vector<18x128xf32> to vector<16x128xf32>
    %48 = vector.extract_strided_slice %40 {offsets = [1, 0], sizes = [1, 128], strides = [1, 1]} : vector<3x128xf32> to vector<1x128xf32>
    %49 = vector.broadcast %48 : vector<1x128xf32> to vector<16x128xf32>
    %50 = arith.mulf %47, %49 : vector<16x128xf32>
    %51 = arith.addf %46, %50 : vector<16x128xf32>
    %52 = vector.extract_strided_slice %39 {offsets = [2, 0], sizes = [16, 128], strides = [1, 1]} : vector<18x128xf32> to vector<16x128xf32>
    %53 = vector.extract_strided_slice %40 {offsets = [2, 0], sizes = [1, 128], strides = [1, 1]} : vector<3x128xf32> to vector<1x128xf32>
    %54 = vector.broadcast %53 : vector<1x128xf32> to vector<16x128xf32>
    %55 = arith.mulf %52, %54 : vector<16x128xf32>
    %56 = arith.addf %51, %55 : vector<16x128xf32>
    %c0_20 = arith.constant 0 : index
    %c0_21 = arith.constant 0 : index
    %57 = vector.load %arg7[%c0_20, %c0_21] : memref<1x128xf32, #tpu.memory_space<vmem>>, vector<1x128xf32>
    %58 = vector.broadcast %57 : vector<1x128xf32> to vector<16x128xf32>
    %59 = arith.mulf %56, %58 : vector<16x128xf32>
    %c0_22 = arith.constant 0 : index
    %c0_23 = arith.constant 0 : index
    %60 = vector.load %arg8[%c0_22, %c0_23] : memref<1x128xf32, #tpu.memory_space<vmem>>, vector<1x128xf32>
    %61 = vector.broadcast %60 : vector<1x128xf32> to vector<16x128xf32>
    %62 = arith.addf %59, %61 : vector<16x128xf32>
    %63 = arith.negf %62 : vector<16x128xf32>
    %64 = math.exp %63 : vector<16x128xf32>
    %cst_24 = arith.constant 1.000000e+00 : f32
    %65 = vector.broadcast %cst_24 : f32 to vector<16x128xf32>
    %66 = arith.addf %65, %64 : vector<16x128xf32>
    %67 = arith.divf %65, %66 : vector<16x128xf32>
    %68 = arith.mulf %62, %67 : vector<16x128xf32>
    %c0_25 = arith.constant 0 : index
    %c0_26 = arith.constant 0 : index
    %69 = vector.load %arg9[%c0_25, %c0_26] : memref<128x128xbf16, #tpu.memory_space<vmem>>, vector<128x128xbf16>
    %70 = arith.truncf %68 : vector<16x128xf32> to vector<16x128xbf16>
    %cst_27 = arith.constant dense<0.000000e+00> : vector<16x128xf32>
    %71 = tpu.matmul %70, %69, %cst_27 {dimension_numbers = #tpu.dot_dimension_numbers<[1], [0], [0], [1], [0, 0, 1, 1], [], []>} : vector<16x128xbf16>, vector<128x128xbf16>, vector<16x128xf32> -> vector<16x128xf32>
    %c0_28 = arith.constant 0 : index
    %c0_29 = arith.constant 0 : index
    %72 = vector.load %arg10[%c0_28, %c0_29] : memref<1x128xf32, #tpu.memory_space<vmem>>, vector<1x128xf32>
    %73 = vector.broadcast %72 : vector<1x128xf32> to vector<16x128xf32>
    %74 = arith.addf %71, %73 : vector<16x128xf32>
    %75 = arith.addf %1, %74 : vector<16x128xf32>
    %c0_30 = arith.constant 0 : index
    %c0_31 = arith.constant 0 : index
    %c0_32 = arith.constant 0 : index
    %76 = vector.load %arg11[%c0_30, %c0_31, %c0_32] : memref<1x16x128xf32, #tpu.memory_space<vmem>>, vector<1x16x128xf32>
    %77 = vector.shape_cast %76 : vector<1x16x128xf32> to vector<16x128xf32>
    %78 = vector.shape_cast %75 : vector<16x128xf32> to vector<1x16x128xf32>
    tpu.vector_store %arg11[%c0_30, %c0_31, %c0_32], %78 {strides = array<i32>} : memref<1x16x128xf32, #tpu.memory_space<vmem>>, vector<1x16x128xf32>,
    return
  }
  func.func @transform_0(%arg0: i32) -> (i32, i32, i32) {
    %c0_i32 = arith.constant 0 : i32
    %c0_i32_0 = arith.constant 0 : i32
    %c0_i32_1 = arith.constant 0 : i32
    return %arg0, %c0_i32, %c0_i32_0 : i32, i32, i32
  }
  func.func @transform_1(%arg0: i32) -> (i32, i32) {
    %c0_i32 = arith.constant 0 : i32
    %c0_i32_0 = arith.constant 0 : i32
    %c0_i32_1 = arith.constant 0 : i32
    return %c0_i32, %c0_i32_0 : i32, i32
  }
  func.func @transform_2(%arg0: i32) -> (i32, i32) {
    %c0_i32 = arith.constant 0 : i32
    %c0_i32_0 = arith.constant 0 : i32
    %c0_i32_1 = arith.constant 0 : i32
    return %c0_i32, %c0_i32_0 : i32, i32
  }
  func.func @transform_3(%arg0: i32) -> (i32, i32) {
    %c0_i32 = arith.constant 0 : i32
    %c0_i32_0 = arith.constant 0 : i32
    %c0_i32_1 = arith.constant 0 : i32
    return %c0_i32, %c0_i32_0 : i32, i32
  }
  func.func @transform_4(%arg0: i32) -> (i32, i32) {
    %c0_i32 = arith.constant 0 : i32
    %c0_i32_0 = arith.constant 0 : i32
    %c0_i32_1 = arith.constant 0 : i32
    return %c0_i32, %c0_i32_0 : i32, i32
  }
  func.func @transform_5(%arg0: i32) -> (i32, i32) {
    %c0_i32 = arith.constant 0 : i32
    %c0_i32_0 = arith.constant 0 : i32
    %c0_i32_1 = arith.constant 0 : i32
    return %c0_i32, %c0_i32_0 : i32, i32
  }
  func.func @transform_6(%arg0: i32) -> (i32, i32) {
    %c0_i32 = arith.constant 0 : i32
    %c0_i32_0 = arith.constant 0 : i32
    %c0_i32_1 = arith.constant 0 : i32
    return %c0_i32, %c0_i32_0 : i32, i32
  }
  func.func @transform_7(%arg0: i32) -> (i32, i32) {
    %c0_i32 = arith.constant 0 : i32
    %c0_i32_0 = arith.constant 0 : i32
    %c0_i32_1 = arith.constant 0 : i32
    return %c0_i32, %c0_i32_0 : i32, i32
  }
  func.func @transform_8(%arg0: i32) -> (i32, i32) {
    %c0_i32 = arith.constant 0 : i32
    %c0_i32_0 = arith.constant 0 : i32
    %c0_i32_1 = arith.constant 0 : i32
    return %c0_i32, %c0_i32_0 : i32, i32
  }
  func.func @transform_9(%arg0: i32) -> (i32, i32) {
    %c0_i32 = arith.constant 0 : i32
    %c0_i32_0 = arith.constant 0 : i32
    %c0_i32_1 = arith.constant 0 : i32
    return %c0_i32, %c0_i32_0 : i32, i32
  }
  func.func @transform_10(%arg0: i32) -> (i32, i32, i32) {
    %c0_i32 = arith.constant 0 : i32
    %c0_i32_0 = arith.constant 0 : i32
    %c0_i32_1 = arith.constant 0 : i32
    return %arg0, %c0_i32, %c0_i32_0 : i32, i32, i32
  }
}

module attributes {stable_mosaic.version = 11 : i64} {
  func.func @_ffn_fused_kernel(%arg0: i32, %arg1: memref<1x16x128xf32, #tpu.memory_space<vmem>>, %arg2: memref<1x128xf32, #tpu.memory_space<vmem>>, %arg3: memref<1x128xf32, #tpu.memory_space<vmem>>, %arg4: memref<128x512xbf16, #tpu.memory_space<vmem>>, %arg5: memref<1x512xf32, #tpu.memory_space<vmem>>, %arg6: memref<512x128xbf16, #tpu.memory_space<vmem>>, %arg7: memref<1x128xf32, #tpu.memory_space<vmem>>, %arg8: memref<1x128xf32, #tpu.memory_space<vmem>>, %arg9: memref<1x128xf32, #tpu.memory_space<vmem>>, %arg10: memref<1x16x128xf32, #tpu.memory_space<vmem>>) attributes {dimension_semantics = [#tpu.dimension_semantics<parallel>], iteration_bounds = array<i64: 2>, scalar_prefetch = 0 : i64, scratch_operands = 0 : i64, tpu.core_type = #tpu.core_type<tc>, window_params = [{transform_indices = @transform_0, window_bounds = array<i64: 1, 16, 128>}, {pipeline_mode = #tpu.pipeline_mode<synchronous>, transform_indices = @transform_1, window_bounds = array<i64: 1, 128>}, {pipeline_mode = #tpu.pipeline_mode<synchronous>, transform_indices = @transform_2, window_bounds = array<i64: 1, 128>}, {pipeline_mode = #tpu.pipeline_mode<synchronous>, transform_indices = @transform_3, window_bounds = array<i64: 128, 512>}, {pipeline_mode = #tpu.pipeline_mode<synchronous>, transform_indices = @transform_4, window_bounds = array<i64: 1, 512>}, {pipeline_mode = #tpu.pipeline_mode<synchronous>, transform_indices = @transform_5, window_bounds = array<i64: 512, 128>}, {pipeline_mode = #tpu.pipeline_mode<synchronous>, transform_indices = @transform_6, window_bounds = array<i64: 1, 128>}, {pipeline_mode = #tpu.pipeline_mode<synchronous>, transform_indices = @transform_7, window_bounds = array<i64: 1, 128>}, {pipeline_mode = #tpu.pipeline_mode<synchronous>, transform_indices = @transform_8, window_bounds = array<i64: 1, 128>}, {transform_indices = @transform_9, window_bounds = array<i64: 1, 16, 128>}]} {
    %c0 = arith.constant 0 : index
    %c0_0 = arith.constant 0 : index
    %c0_1 = arith.constant 0 : index
    %0 = vector.load %arg1[%c0, %c0_0, %c0_1] : memref<1x16x128xf32, #tpu.memory_space<vmem>>, vector<1x16x128xf32>
    %1 = vector.shape_cast %0 : vector<1x16x128xf32> to vector<16x128xf32>
    %c0_2 = arith.constant 0 : index
    %c0_3 = arith.constant 0 : index
    %2 = vector.load %arg2[%c0_2, %c0_3] : memref<1x128xf32, #tpu.memory_space<vmem>>, vector<1x128xf32>
    %c0_4 = arith.constant 0 : index
    %c0_5 = arith.constant 0 : index
    %3 = vector.load %arg3[%c0_4, %c0_5] : memref<1x128xf32, #tpu.memory_space<vmem>>, vector<1x128xf32>
    %cst = arith.constant dense<0.000000e+00> : vector<16xf32>
    %4 = vector.multi_reduction <add>, %1, %cst [1] : vector<16x128xf32> to vector<16xf32>
    %5 = vector.shape_cast %4 : vector<16xf32> to vector<16x1xf32>
    %cst_6 = arith.constant 1.280000e+02 : f32
    %6 = vector.broadcast %cst_6 : f32 to vector<16x1xf32>
    %7 = arith.divf %5, %6 : vector<16x1xf32>
    %8 = vector.broadcast %7 : vector<16x1xf32> to vector<16x128xf32>
    %9 = arith.subf %1, %8 : vector<16x128xf32>
    %10 = arith.mulf %9, %9 : vector<16x128xf32>
    %cst_7 = arith.constant dense<0.000000e+00> : vector<16xf32>
    %11 = vector.multi_reduction <add>, %10, %cst_7 [1] : vector<16x128xf32> to vector<16xf32>
    %12 = vector.shape_cast %11 : vector<16xf32> to vector<16x1xf32>
    %cst_8 = arith.constant 1.280000e+02 : f32
    %13 = vector.broadcast %cst_8 : f32 to vector<16x1xf32>
    %14 = arith.divf %12, %13 : vector<16x1xf32>
    %cst_9 = arith.constant 9.99999974E-6 : f32
    %15 = vector.broadcast %cst_9 : f32 to vector<16x1xf32>
    %16 = arith.addf %14, %15 : vector<16x1xf32>
    %17 = math.rsqrt %16 : vector<16x1xf32>
    %18 = vector.broadcast %17 : vector<16x1xf32> to vector<16x128xf32>
    %19 = arith.mulf %9, %18 : vector<16x128xf32>
    %20 = vector.broadcast %2 : vector<1x128xf32> to vector<16x128xf32>
    %21 = arith.mulf %19, %20 : vector<16x128xf32>
    %22 = vector.broadcast %3 : vector<1x128xf32> to vector<16x128xf32>
    %23 = arith.addf %21, %22 : vector<16x128xf32>
    %c0_10 = arith.constant 0 : index
    %c0_11 = arith.constant 0 : index
    %24 = vector.load %arg4[%c0_10, %c0_11] : memref<128x512xbf16, #tpu.memory_space<vmem>>, vector<128x512xbf16>
    %25 = arith.truncf %23 : vector<16x128xf32> to vector<16x128xbf16>
    %cst_12 = arith.constant dense<0.000000e+00> : vector<16x512xf32>
    %26 = tpu.matmul %25, %24, %cst_12 {dimension_numbers = #tpu.dot_dimension_numbers<[1], [0], [0], [1], [0, 0, 1, 1], [], []>} : vector<16x128xbf16>, vector<128x512xbf16>, vector<16x512xf32> -> vector<16x512xf32>
    %c0_13 = arith.constant 0 : index
    %c0_14 = arith.constant 0 : index
    %27 = vector.load %arg5[%c0_13, %c0_14] : memref<1x512xf32, #tpu.memory_space<vmem>>, vector<1x512xf32>
    %28 = vector.broadcast %27 : vector<1x512xf32> to vector<16x512xf32>
    %29 = arith.addf %26, %28 : vector<16x512xf32>
    %30 = arith.negf %29 : vector<16x512xf32>
    %31 = math.exp %30 : vector<16x512xf32>
    %cst_15 = arith.constant 1.000000e+00 : f32
    %32 = vector.broadcast %cst_15 : f32 to vector<16x512xf32>
    %33 = arith.addf %32, %31 : vector<16x512xf32>
    %34 = arith.divf %32, %33 : vector<16x512xf32>
    %35 = arith.mulf %29, %34 : vector<16x512xf32>
    %c0_16 = arith.constant 0 : index
    %c0_17 = arith.constant 0 : index
    %36 = vector.load %arg6[%c0_16, %c0_17] : memref<512x128xbf16, #tpu.memory_space<vmem>>, vector<512x128xbf16>
    %37 = arith.truncf %35 : vector<16x512xf32> to vector<16x512xbf16>
    %cst_18 = arith.constant dense<0.000000e+00> : vector<16x128xf32>
    %38 = tpu.matmul %37, %36, %cst_18 {dimension_numbers = #tpu.dot_dimension_numbers<[1], [0], [0], [1], [0, 0, 1, 1], [], []>} : vector<16x512xbf16>, vector<512x128xbf16>, vector<16x128xf32> -> vector<16x128xf32>
    %c0_19 = arith.constant 0 : index
    %c0_20 = arith.constant 0 : index
    %39 = vector.load %arg7[%c0_19, %c0_20] : memref<1x128xf32, #tpu.memory_space<vmem>>, vector<1x128xf32>
    %40 = vector.broadcast %39 : vector<1x128xf32> to vector<16x128xf32>
    %41 = arith.addf %38, %40 : vector<16x128xf32>
    %cst_21 = arith.constant 5.000000e-01 : f32
    %42 = vector.broadcast %cst_21 : f32 to vector<16x128xf32>
    %43 = arith.mulf %42, %41 : vector<16x128xf32>
    %44 = arith.addf %1, %43 : vector<16x128xf32>
    %c0_22 = arith.constant 0 : index
    %c0_23 = arith.constant 0 : index
    %45 = vector.load %arg8[%c0_22, %c0_23] : memref<1x128xf32, #tpu.memory_space<vmem>>, vector<1x128xf32>
    %c0_24 = arith.constant 0 : index
    %c0_25 = arith.constant 0 : index
    %46 = vector.load %arg9[%c0_24, %c0_25] : memref<1x128xf32, #tpu.memory_space<vmem>>, vector<1x128xf32>
    %cst_26 = arith.constant dense<0.000000e+00> : vector<16xf32>
    %47 = vector.multi_reduction <add>, %44, %cst_26 [1] : vector<16x128xf32> to vector<16xf32>
    %48 = vector.shape_cast %47 : vector<16xf32> to vector<16x1xf32>
    %cst_27 = arith.constant 1.280000e+02 : f32
    %49 = vector.broadcast %cst_27 : f32 to vector<16x1xf32>
    %50 = arith.divf %48, %49 : vector<16x1xf32>
    %51 = vector.broadcast %50 : vector<16x1xf32> to vector<16x128xf32>
    %52 = arith.subf %44, %51 : vector<16x128xf32>
    %53 = arith.mulf %52, %52 : vector<16x128xf32>
    %cst_28 = arith.constant dense<0.000000e+00> : vector<16xf32>
    %54 = vector.multi_reduction <add>, %53, %cst_28 [1] : vector<16x128xf32> to vector<16xf32>
    %55 = vector.shape_cast %54 : vector<16xf32> to vector<16x1xf32>
    %cst_29 = arith.constant 1.280000e+02 : f32
    %56 = vector.broadcast %cst_29 : f32 to vector<16x1xf32>
    %57 = arith.divf %55, %56 : vector<16x1xf32>
    %cst_30 = arith.constant 9.99999974E-6 : f32
    %58 = vector.broadcast %cst_30 : f32 to vector<16x1xf32>
    %59 = arith.addf %57, %58 : vector<16x1xf32>
    %60 = math.rsqrt %59 : vector<16x1xf32>
    %61 = vector.broadcast %60 : vector<16x1xf32> to vector<16x128xf32>
    %62 = arith.mulf %52, %61 : vector<16x128xf32>
    %63 = vector.broadcast %45 : vector<1x128xf32> to vector<16x128xf32>
    %64 = arith.mulf %62, %63 : vector<16x128xf32>
    %65 = vector.broadcast %46 : vector<1x128xf32> to vector<16x128xf32>
    %66 = arith.addf %64, %65 : vector<16x128xf32>
    %c0_31 = arith.constant 0 : index
    %c0_32 = arith.constant 0 : index
    %c0_33 = arith.constant 0 : index
    %67 = vector.load %arg10[%c0_31, %c0_32, %c0_33] : memref<1x16x128xf32, #tpu.memory_space<vmem>>, vector<1x16x128xf32>
    %68 = vector.shape_cast %67 : vector<1x16x128xf32> to vector<16x128xf32>
    %69 = vector.shape_cast %66 : vector<16x128xf32> to vector<1x16x128xf32>
    tpu.vector_store %arg10[%c0_31, %c0_32, %c0_33], %69 {strides = array<i32>} : memref<1x16x128xf32, #tpu.memory_space<vmem>>, vector<1x16x128xf32>,
    return
  }
  func.func @transform_0(%arg0: i32) -> (i32, i32, i32) {
    %c0_i32 = arith.constant 0 : i32
    %c0_i32_0 = arith.constant 0 : i32
    %c0_i32_1 = arith.constant 0 : i32
    return %arg0, %c0_i32, %c0_i32_0 : i32, i32, i32
  }
  func.func @transform_1(%arg0: i32) -> (i32, i32) {
    %c0_i32 = arith.constant 0 : i32
    %c0_i32_0 = arith.constant 0 : i32
    %c0_i32_1 = arith.constant 0 : i32
    return %c0_i32, %c0_i32_0 : i32, i32
  }
  func.func @transform_2(%arg0: i32) -> (i32, i32) {
    %c0_i32 = arith.constant 0 : i32
    %c0_i32_0 = arith.constant 0 : i32
    %c0_i32_1 = arith.constant 0 : i32
    return %c0_i32, %c0_i32_0 : i32, i32
  }
  func.func @transform_3(%arg0: i32) -> (i32, i32) {
    %c0_i32 = arith.constant 0 : i32
    %c0_i32_0 = arith.constant 0 : i32
    %c0_i32_1 = arith.constant 0 : i32
    return %c0_i32, %c0_i32_0 : i32, i32
  }
  func.func @transform_4(%arg0: i32) -> (i32, i32) {
    %c0_i32 = arith.constant 0 : i32
    %c0_i32_0 = arith.constant 0 : i32
    %c0_i32_1 = arith.constant 0 : i32
    return %c0_i32, %c0_i32_0 : i32, i32
  }
  func.func @transform_5(%arg0: i32) -> (i32, i32) {
    %c0_i32 = arith.constant 0 : i32
    %c0_i32_0 = arith.constant 0 : i32
    %c0_i32_1 = arith.constant 0 : i32
    return %c0_i32, %c0_i32_0 : i32, i32
  }
  func.func @transform_6(%arg0: i32) -> (i32, i32) {
    %c0_i32 = arith.constant 0 : i32
    %c0_i32_0 = arith.constant 0 : i32
    %c0_i32_1 = arith.constant 0 : i32
    return %c0_i32, %c0_i32_0 : i32, i32
  }
  func.func @transform_7(%arg0: i32) -> (i32, i32) {
    %c0_i32 = arith.constant 0 : i32
    %c0_i32_0 = arith.constant 0 : i32
    %c0_i32_1 = arith.constant 0 : i32
    return %c0_i32, %c0_i32_0 : i32, i32
  }
  func.func @transform_8(%arg0: i32) -> (i32, i32) {
    %c0_i32 = arith.constant 0 : i32
    %c0_i32_0 = arith.constant 0 : i32
    %c0_i32_1 = arith.constant 0 : i32
    return %c0_i32, %c0_i32_0 : i32, i32
  }
  func.func @transform_9(%arg0: i32) -> (i32, i32, i32) {
    %c0_i32 = arith.constant 0 : i32
    %c0_i32_0 = arith.constant 0 : i32
    %c0_i32_1 = arith.constant 0 : i32
    return %arg0, %c0_i32, %c0_i32_0 : i32, i32, i32
  }
}

module attributes {stable_mosaic.version = 11 : i64} {
  func.func @_ffn_fused_kernel(%arg0: i32, %arg1: memref<1x16x128xf32, #tpu.memory_space<vmem>>, %arg2: memref<1x128xf32, #tpu.memory_space<vmem>>, %arg3: memref<1x128xf32, #tpu.memory_space<vmem>>, %arg4: memref<128x512xbf16, #tpu.memory_space<vmem>>, %arg5: memref<1x512xf32, #tpu.memory_space<vmem>>, %arg6: memref<512x128xbf16, #tpu.memory_space<vmem>>, %arg7: memref<1x128xf32, #tpu.memory_space<vmem>>, %arg8: memref<1x16x128xf32, #tpu.memory_space<vmem>>) attributes {dimension_semantics = [#tpu.dimension_semantics<parallel>], iteration_bounds = array<i64: 2>, scalar_prefetch = 0 : i64, scratch_operands = 0 : i64, tpu.core_type = #tpu.core_type<tc>, window_params = [{transform_indices = @transform_0, window_bounds = array<i64: 1, 16, 128>}, {pipeline_mode = #tpu.pipeline_mode<synchronous>, transform_indices = @transform_1, window_bounds = array<i64: 1, 128>}, {pipeline_mode = #tpu.pipeline_mode<synchronous>, transform_indices = @transform_2, window_bounds = array<i64: 1, 128>}, {pipeline_mode = #tpu.pipeline_mode<synchronous>, transform_indices = @transform_3, window_bounds = array<i64: 128, 512>}, {pipeline_mode = #tpu.pipeline_mode<synchronous>, transform_indices = @transform_4, window_bounds = array<i64: 1, 512>}, {pipeline_mode = #tpu.pipeline_mode<synchronous>, transform_indices = @transform_5, window_bounds = array<i64: 512, 128>}, {pipeline_mode = #tpu.pipeline_mode<synchronous>, transform_indices = @transform_6, window_bounds = array<i64: 1, 128>}, {transform_indices = @transform_7, window_bounds = array<i64: 1, 16, 128>}]} {
    %c0 = arith.constant 0 : index
    %c0_0 = arith.constant 0 : index
    %c0_1 = arith.constant 0 : index
    %0 = vector.load %arg1[%c0, %c0_0, %c0_1] : memref<1x16x128xf32, #tpu.memory_space<vmem>>, vector<1x16x128xf32>
    %1 = vector.shape_cast %0 : vector<1x16x128xf32> to vector<16x128xf32>
    %c0_2 = arith.constant 0 : index
    %c0_3 = arith.constant 0 : index
    %2 = vector.load %arg2[%c0_2, %c0_3] : memref<1x128xf32, #tpu.memory_space<vmem>>, vector<1x128xf32>
    %c0_4 = arith.constant 0 : index
    %c0_5 = arith.constant 0 : index
    %3 = vector.load %arg3[%c0_4, %c0_5] : memref<1x128xf32, #tpu.memory_space<vmem>>, vector<1x128xf32>
    %cst = arith.constant dense<0.000000e+00> : vector<16xf32>
    %4 = vector.multi_reduction <add>, %1, %cst [1] : vector<16x128xf32> to vector<16xf32>
    %5 = vector.shape_cast %4 : vector<16xf32> to vector<16x1xf32>
    %cst_6 = arith.constant 1.280000e+02 : f32
    %6 = vector.broadcast %cst_6 : f32 to vector<16x1xf32>
    %7 = arith.divf %5, %6 : vector<16x1xf32>
    %8 = vector.broadcast %7 : vector<16x1xf32> to vector<16x128xf32>
    %9 = arith.subf %1, %8 : vector<16x128xf32>
    %10 = arith.mulf %9, %9 : vector<16x128xf32>
    %cst_7 = arith.constant dense<0.000000e+00> : vector<16xf32>
    %11 = vector.multi_reduction <add>, %10, %cst_7 [1] : vector<16x128xf32> to vector<16xf32>
    %12 = vector.shape_cast %11 : vector<16xf32> to vector<16x1xf32>
    %cst_8 = arith.constant 1.280000e+02 : f32
    %13 = vector.broadcast %cst_8 : f32 to vector<16x1xf32>
    %14 = arith.divf %12, %13 : vector<16x1xf32>
    %cst_9 = arith.constant 9.99999974E-6 : f32
    %15 = vector.broadcast %cst_9 : f32 to vector<16x1xf32>
    %16 = arith.addf %14, %15 : vector<16x1xf32>
    %17 = math.rsqrt %16 : vector<16x1xf32>
    %18 = vector.broadcast %17 : vector<16x1xf32> to vector<16x128xf32>
    %19 = arith.mulf %9, %18 : vector<16x128xf32>
    %20 = vector.broadcast %2 : vector<1x128xf32> to vector<16x128xf32>
    %21 = arith.mulf %19, %20 : vector<16x128xf32>
    %22 = vector.broadcast %3 : vector<1x128xf32> to vector<16x128xf32>
    %23 = arith.addf %21, %22 : vector<16x128xf32>
    %c0_10 = arith.constant 0 : index
    %c0_11 = arith.constant 0 : index
    %24 = vector.load %arg4[%c0_10, %c0_11] : memref<128x512xbf16, #tpu.memory_space<vmem>>, vector<128x512xbf16>
    %25 = arith.truncf %23 : vector<16x128xf32> to vector<16x128xbf16>
    %cst_12 = arith.constant dense<0.000000e+00> : vector<16x512xf32>
    %26 = tpu.matmul %25, %24, %cst_12 {dimension_numbers = #tpu.dot_dimension_numbers<[1], [0], [0], [1], [0, 0, 1, 1], [], []>} : vector<16x128xbf16>, vector<128x512xbf16>, vector<16x512xf32> -> vector<16x512xf32>
    %c0_13 = arith.constant 0 : index
    %c0_14 = arith.constant 0 : index
    %27 = vector.load %arg5[%c0_13, %c0_14] : memref<1x512xf32, #tpu.memory_space<vmem>>, vector<1x512xf32>
    %28 = vector.broadcast %27 : vector<1x512xf32> to vector<16x512xf32>
    %29 = arith.addf %26, %28 : vector<16x512xf32>
    %30 = arith.negf %29 : vector<16x512xf32>
    %31 = math.exp %30 : vector<16x512xf32>
    %cst_15 = arith.constant 1.000000e+00 : f32
    %32 = vector.broadcast %cst_15 : f32 to vector<16x512xf32>
    %33 = arith.addf %32, %31 : vector<16x512xf32>
    %34 = arith.divf %32, %33 : vector<16x512xf32>
    %35 = arith.mulf %29, %34 : vector<16x512xf32>
    %c0_16 = arith.constant 0 : index
    %c0_17 = arith.constant 0 : index
    %36 = vector.load %arg6[%c0_16, %c0_17] : memref<512x128xbf16, #tpu.memory_space<vmem>>, vector<512x128xbf16>
    %37 = arith.truncf %35 : vector<16x512xf32> to vector<16x512xbf16>
    %cst_18 = arith.constant dense<0.000000e+00> : vector<16x128xf32>
    %38 = tpu.matmul %37, %36, %cst_18 {dimension_numbers = #tpu.dot_dimension_numbers<[1], [0], [0], [1], [0, 0, 1, 1], [], []>} : vector<16x512xbf16>, vector<512x128xbf16>, vector<16x128xf32> -> vector<16x128xf32>
    %c0_19 = arith.constant 0 : index
    %c0_20 = arith.constant 0 : index
    %39 = vector.load %arg7[%c0_19, %c0_20] : memref<1x128xf32, #tpu.memory_space<vmem>>, vector<1x128xf32>
    %40 = vector.broadcast %39 : vector<1x128xf32> to vector<16x128xf32>
    %41 = arith.addf %38, %40 : vector<16x128xf32>
    %cst_21 = arith.constant 5.000000e-01 : f32
    %42 = vector.broadcast %cst_21 : f32 to vector<16x128xf32>
    %43 = arith.mulf %42, %41 : vector<16x128xf32>
    %44 = arith.addf %1, %43 : vector<16x128xf32>
    %c0_22 = arith.constant 0 : index
    %c0_23 = arith.constant 0 : index
    %c0_24 = arith.constant 0 : index
    %45 = vector.load %arg8[%c0_22, %c0_23, %c0_24] : memref<1x16x128xf32, #tpu.memory_space<vmem>>, vector<1x16x128xf32>
    %46 = vector.shape_cast %45 : vector<1x16x128xf32> to vector<16x128xf32>
    %47 = vector.shape_cast %44 : vector<16x128xf32> to vector<1x16x128xf32>
    tpu.vector_store %arg8[%c0_22, %c0_23, %c0_24], %47 {strides = array<i32>} : memref<1x16x128xf32, #tpu.memory_space<vmem>>, vector<1x16x128xf32>,
    return
  }
  func.func @transform_0(%arg0: i32) -> (i32, i32, i32) {
    %c0_i32 = arith.constant 0 : i32
    %c0_i32_0 = arith.constant 0 : i32
    %c0_i32_1 = arith.constant 0 : i32
    return %arg0, %c0_i32, %c0_i32_0 : i32, i32, i32
  }
  func.func @transform_1(%arg0: i32) -> (i32, i32) {
    %c0_i32 = arith.constant 0 : i32
    %c0_i32_0 = arith.constant 0 : i32
    %c0_i32_1 = arith.constant 0 : i32
    return %c0_i32, %c0_i32_0 : i32, i32
  }
  func.func @transform_2(%arg0: i32) -> (i32, i32) {
    %c0_i32 = arith.constant 0 : i32
    %c0_i32_0 = arith.constant 0 : i32
    %c0_i32_1 = arith.constant 0 : i32
    return %c0_i32, %c0_i32_0 : i32, i32
  }
  func.func @transform_3(%arg0: i32) -> (i32, i32) {
    %c0_i32 = arith.constant 0 : i32
    %c0_i32_0 = arith.constant 0 : i32
    %c0_i32_1 = arith.constant 0 : i32
    return %c0_i32, %c0_i32_0 : i32, i32
  }
  func.func @transform_4(%arg0: i32) -> (i32, i32) {
    %c0_i32 = arith.constant 0 : i32
    %c0_i32_0 = arith.constant 0 : i32
    %c0_i32_1 = arith.constant 0 : i32
    return %c0_i32, %c0_i32_0 : i32, i32
  }
  func.func @transform_5(%arg0: i32) -> (i32, i32) {
    %c0_i32 = arith.constant 0 : i32
    %c0_i32_0 = arith.constant 0 : i32
    %c0_i32_1 = arith.constant 0 : i32
    return %c0_i32, %c0_i32_0 : i32, i32
  }
  func.func @transform_6(%arg0: i32) -> (i32, i32) {
    %c0_i32 = arith.constant 0 : i32
    %c0_i32_0 = arith.constant 0 : i32
    %c0_i32_1 = arith.constant 0 : i32
    return %c0_i32, %c0_i32_0 : i32, i32
  }
  func.func @transform_7(%arg0: i32) -> (i32, i32, i32) {
    %c0_i32 = arith.constant 0 : i32
    %c0_i32_0 = arith.constant 0 : i32
    %c0_i32_1 = arith.constant 0 : i32
    return %arg0, %c0_i32, %c0_i32_0 : i32, i32, i32
  }
}

</mosaic_0001>

<bundles_post_ra>
// kernel: encoder_forward.10
= control target key start
LH: loop header
LB: loop body
LE: loop exit
PB: predicated region body
PF: predicated region fallthrough
CT: control target
= control target key end

     0   :  { %s1038_s13 = smov 0   ;;  %s1165_s0 = inlined_call_operand.vmem [shape: f32[2,16,128], index: 0, kind: input, shape index: {}]   ;;  %s1166_s1 = inlined_call_operand.vmem [shape: f32[1,128], index: 1, kind: input, shape index: {}]   ;;  %s1167_s2 = inlined_call_operand.vmem [shape: f32[1,128], index: 2, kind: input, shape index: {}]   ;;  %s1168_s3 = inlined_call_operand.vmem [shape: bf16[128,256], index: 3, kind: input, shape index: {}]   ;;  %s1169_s4 = inlined_call_operand.vmem [shape: f32[1,256], index: 4, kind: input, shape index: {}]   ;;  %s1170_s5 = inlined_call_operand.vmem [shape: f32[3,128], index: 5, kind: input, shape index: {}]   ;;  %s1171_s6 = inlined_call_operand.vmem [shape: f32[1,128], index: 6, kind: input, shape index: {}]   ;;  %s1172_s7 = inlined_call_operand.vmem [shape: f32[1,128], index: 7, kind: input, shape index: {}]   ;;  %s1173_s8 = inlined_call_operand.vmem [shape: bf16[128,128], index: 8, kind: input, shape index: {}]   ;;  %s1174_s9 = inlined_call_operand.vmem [shape: f32[1,128], index: 9, kind: input, shape index: {}]   ;;  %s1175_s10 = inlined_call_operand.vmem [shape: f32[2,16,128], index: 10, kind: output, shape index: {}]  }
   0x1 LB: > { %s834_s14 = sadd.s32 4294967295, %s978_s13   ;;  %p838_p0 = scmp.ge.s32.totalorder %s978_s13, 1  ;;  %s978_s13 = sphi %s1038_s13, %s20_s13  }
   0x2   : > { %p312_p1 = scmp.lt.s32.totalorder %s978_s13, 3 }
   0x4   : > { %p313_p2 = pnand %p838_p0, %p312_p1 }
   0x5   : > { %p350_p3 = scmp.lt.s32.totalorder (!%p313_p2), %s834_s14, 1  ;;  %v920_v2 = vld [vmem:[%s1168_s3 + $0x4] ss:$8 sps:$4 sm:$0xff] (!%p313_p2)   ;;  %v922_v3 = vld [vmem:[%s1168_s3] ss:$8 sps:$4 sm:$0xff] (!%p313_p2)   ;;  %v980_v21 = vmov (!%p313_p2), 0   ;;  %v423_v53 = vlaneseq (!%p313_p2) }
   0x6   : > { %316 = sbr.rel (%p313_p2) target bundleno = 845 (0x34d), region = 60  ;;  %v923_v4 = vld [vmem:[%s1168_s3 + $0x14] ss:$8 sps:$4 sm:$0xff] (!%p313_p2)   ;;  %513 = vmatprep.subr.bf16.mxu0 (!%p313_p2), %v920_v2  ;;  %v925_v13 = vld [vmem:[%s1168_s3 + $0x10] ss:$8 sps:$4 sm:$0xff] (!%p313_p2)   ;;  %545 = vmatprep.mubr.bf16.mxu0 (!%p313_p2), %v980_v21  ;;  %v944_v44 = vld [vmem:[%s1173_s8] sm:$0xff] (!%p313_p2)  }
   0x7   : > { %514 = vmatpush1.bf16.msra.mxu0 (!%p313_p2), %v922_v3  ;;  %v926_v14 = vld [vmem:[%s1168_s3 + $0x24] ss:$8 sps:$4 sm:$0xff] (!%p313_p2)   ;;  %v928_v15 = vld [vmem:[%s1168_s3 + $0x20] ss:$8 sps:$4 sm:$0xff] (!%p313_p2)   ;;  %v929_v16 = vld [vmem:[%s1168_s3 + $0x34] ss:$8 sps:$4 sm:$0xff] (!%p313_p2)  }
   0x8   : > { %515 = vmatprep.subr.bf16.mxu0 (!%p313_p2), %v923_v4  ;;  %v931_v17 = vld [vmem:[%s1168_s3 + $0x30] ss:$8 sps:$4 sm:$0xff] (!%p313_p2)   ;;  %v932_v18 = vld [vmem:[%s1168_s3 + $0x44] ss:$8 sps:$4 sm:$0xff] (!%p313_p2)   ;;  %v934_v19 = vld [vmem:[%s1168_s3 + $0x40] ss:$8 sps:$4 sm:$0xff] (!%p313_p2)  }
   0x9   : > { %v935_v20 = vld [vmem:[%s1168_s3 + $0x54] ss:$8 sps:$4 sm:$0xff] (!%p313_p2)   ;;  %v937_v22 = vld [vmem:[%s1168_s3 + $0x50] ss:$8 sps:$4 sm:$0xff] (!%p313_p2)   ;;  %v938_v23 = vld [vmem:[%s1168_s3 + $0x64] ss:$8 sps:$4 sm:$0xff] (!%p313_p2)  }
   0xa   : > { %v940_v24 = vld [vmem:[%s1168_s3 + $0x60] ss:$8 sps:$4 sm:$0xff] (!%p313_p2)   ;;  %v941_v25 = vld [vmem:[%s1168_s3 + $0x74] ss:$8 sps:$4 sm:$0xff] (!%p313_p2)   ;;  %v943_v26 = vld [vmem:[%s1168_s3 + $0x70] ss:$8 sps:$4 sm:$0xff] (!%p313_p2)  }
   0xb   : > { %516 = vmatpush1.bf16.msra.mxu0 (!%p313_p2), %v925_v13  ;;  %v843_v35 = vld [vmem:[%s1166_s1] ss:$0 sm:$0xff] (!%p313_p2)  ;;  %v981_v45 = vmov (!%p313_p2), 0.0   ;;  %vm982_vm0 = vmmov (!%p313_p2), 0   ;;  %v945_v46 = vld [vmem:[%s1173_s8 + $0x8] sm:$0xff] (!%p313_p2)   ;;  %v946_v47 = vld [vmem:[%s1173_s8 + $0x10] sm:$0xff] (!%p313_p2)  }
   0xc   : > { %517 = vmatprep.subr.bf16.mxu0 (!%p313_p2), %v926_v14  ;;  %v844_v39 = vld [vmem:[%s1167_s2] ss:$0 sm:$0xff] (!%p313_p2)  ;;  %889 = vmatprep.subr.bf16.mxu1 (!%p313_p2), %v981_v45  ;;  %v947_v48 = vld [vmem:[%s1173_s8 + $0x18] sm:$0xff] (!%p313_p2)   ;;  %v949_v50 = vld [vmem:[%s1173_s8 + $0x28] sm:$0xff] (!%p313_p2)   ;;  %v424_v54 = vshrl.u32 (!%p313_p2), %v423_v53, 7  ;;  %vm572_vm1 = vcmask (!%p313_p2), 1040384  }
   0xd   : > { %s1177_s14 = smov (!%p350_p3, %s834_s14), 1  ;;  %905 = vmatprep.mubr.msk.bf16.mxu1 %vm982_vm0, %v981_v45  ;;  %890 = vmatpush3.bf16.msra.mxu1 %v944_v44  ;;  %v948_v49 = vld [vmem:[%s1173_s8 + $0x20] sm:$0xff]   ;;  %v950_v51 = vld [vmem:[%s1173_s8 + $0x30] sm:$0xff]   ;;  %v951_v52 = vld [vmem:[%s1173_s8 + $0x38] sm:$0xff]   ;;  %vm600_vm2 = vcmask 1046528   ;;  %vm620_vm3 = vcmask 1045504  }
   0xe   : > { %s878_s15 = sshll.u32 %s1177_s14, 4  ;;  %891 = vmatprep.subr.bf16.mxu1 %v981_v45  ;;  %v429_v55 = vsub.s32 1, %v424_v54  ;;  %v421_v56 = vld [vmem:[%s1169_s4] sm:$0x3] }
   0xf   : > { %s354_s18 = scalar_lea.vmem %s1165_s0, %s878_s15  ;;  %518 = vmatpush1.bf16.msra.mxu0 %v928_v15  ;;  %s359_s12 = scalar_lea.vmem %s1175_s10, %s878_s15 }
  0x10   : > { %v1054_v0 = vld [vmem:[%s354_s18] sm:$0xff]  ;;  %v1056_v1 = vld [vmem:[%s354_s18 + $0x8] sm:$0xff]  ;;  %519 = vmatprep.subr.bf16.mxu0 %v929_v16  ;;  %v430_v57 = vrot.slane %v421_v56, %v429_v55 }
  0x11   : > { %365 = vadd.xlane.f32.xlu0 %v1054_v0  ;;  %892 = vmatpush3.bf16.msra.mxu1 %v945_v46  ;;  %v863_v46 = vld [vmem:[%s1171_s6] ss:$0 sm:$0xff] }
  0x12   : > { %893 = vmatprep.subr.bf16.mxu1 %v981_v45 }
  0x13   : > { %520 = vmatpush1.bf16.msra.mxu0 %v931_v17 }
  0x14   : > { %521 = vmatprep.subr.bf16.mxu0 %v932_v18 }
  0x15   : > { %367 = vadd.xlane.f32.xlu0 %v1056_v1  ;;  %894 = vmatpush3.bf16.msra.mxu1 %v946_v47 }
  0x16   : > { %895 = vmatprep.subr.bf16.mxu1 %v981_v45 }
  0x17   : > { %522 = vmatpush1.bf16.msra.mxu0 %v934_v19 }
  0x18   : > { %523 = vmatprep.subr.bf16.mxu0 %v935_v20 }
  0x19   : > { %896 = vmatpush3.bf16.msra.mxu1 %v947_v48 }
  0x1a   : > { %897 = vmatprep.subr.bf16.mxu1 %v981_v45 }
  0x1b   : > { %524 = vmatpush1.bf16.msra.mxu0 %v937_v22 }
  0x1c   : > { %525 = vmatprep.subr.bf16.mxu0 %v938_v23 }
  0x1d   : > { %898 = vmatpush3.bf16.msra.mxu1 %v948_v49  ;;  %v864_v49 = vld [vmem:[%s1172_s7] ss:$0 sm:$0xff] }
  0x1e   : > { %899 = vmatprep.subr.bf16.mxu1 %v981_v45 }
  0x1f   : > { %526 = vmatpush1.bf16.msra.mxu0 %v940_v24 }
  0x20   : > { %527 = vmatprep.subr.bf16.mxu0 %v941_v25 }
  0x21   : > { %900 = vmatpush3.bf16.msra.mxu1 %v949_v50 }
  0x22   : > { %901 = vmatprep.subr.bf16.mxu1 %v981_v45 }
  0x23   : > { %528 = vmatpush1.bf16.msra.mxu0 %v943_v26 }
  0x25   : > { %902 = vmatpush3.bf16.msra.mxu1 %v950_v51 }
  0x26   : > { %903 = vmatprep.subr.bf16.mxu1 %v981_v45 }
  0x29   : > { %904 = vmatpush3.bf16.msra.mxu1 %v951_v52 }
  0x9e   : > { %v366_v5 = vpop.xlane.xlu0 %365 }
  0x9f   : > { %v370_v6 = vmul.f32 0.0078125, %v366_v5 }
  0xa1   : > { %v372_v7 = vsub.f32 %v1054_v0, %v370_v6 }
  0xa2   : > { %v368_v8 = vpop.xlane.xlu0 %367 }
  0xa3   : > { %v371_v9 = vmul.f32 0.0078125, %v368_v8  ;;  %v374_v10 = vmul.f32 %v372_v7, %v372_v7  ;;  %v425_v8 = vsub.s32 0, %v424_v54 }
  0xa5   : > { %v373_v11 = vsub.f32 %v1056_v1, %v371_v9  ;;  %376 = vadd.xlane.f32.xlu1 %v374_v10  ;;  %v426_v9 = vrot.slane %v421_v56, %v425_v8 }
  0xa7   : > { %v375_v12 = vmul.f32 %v373_v11, %v373_v11 }
  0xa9   : > { %378 = vadd.xlane.f32.xlu1 %v375_v12  ;;  %v612_v12 = vsub.s32 2, %v424_v54 }
 0x132   : > { %v377_v27 = vpop.xlane.xlu1 %376 }
 0x133   : > { %v380_v28 = vmul.f32 0.0078125, %v377_v27 }
 0x135   : > { %v382_v29 = vadd.f32 1e-05, %v380_v28 }
 0x136   : > { %v379_v30 = vpop.xlane.xlu1 %378 }
 0x137   : > { %952 = vrsqrt.f32 %v382_v29  ;;  %v381_v31 = vmul.f32 0.0078125, %v379_v30 }
 0x139   : > { %v383_v32 = vadd.f32 1e-05, %v381_v31 }
 0x13b   : > { %954 = vrsqrt.f32 %v383_v32 }
 0x141   : > { %v953_v33 = vpop.eup %952 }
 0x142   : > { %v386_v34 = vmul.f32 %v953_v33, %v372_v7 }
 0x144   : > { %v394_v38 = vmul.f32 %v843_v35, %v386_v34 }
 0x145   : > { %v955_v36 = vpop.eup %954 }
 0x146   : > { %v387_v37 = vmul.f32 %v955_v36, %v373_v11  ;;  %v402_v41 = vadd.f32 %v844_v39, %v394_v38  ;;  %v581_v11 = vld [vmem:[%s1170_s5] sm:$0x7] }
 0x147   : > { %v593_v17 = vrot.slane %v581_v11, %v429_v55  ;;  %v613_v18 = vrot.slane %v581_v11, %v612_v12  ;;  %v585_v27 = vrot.slane %v581_v11, %v425_v8 }
 0x148   : > { %v395_v40 = vmul.f32 %v843_v35, %v387_v37 }
 0x14a   : > { %v403_v42 = vadd.f32 %v844_v39, %v395_v40 }
 0x14c   : > { %v420_v43 = vpack.c.bf16 %v403_v42, %v402_v41 }
 0x14e   : > { %546 = vmatmul.mubr.bf16.vlgmr.msra.gmra.mrb[0].mxu0 %v420_v43 }
 0x221   : > { %v547_v58 = vpop.f32.mrb[0].mxu0 }
 0x222   : > { %v549_v59 = vpop.f32.mrb[1].mxu0  ;;  %v548_v10 = vadd.f32 %v547_v58, %v426_v9 }
 0x223   : > { %v550_v60 = vadd.f32 %v549_v59, %v430_v57  ;;  %v551_v61 = vpop.f32.mrb[2].mxu0 }
 0x224   : > { %v553_v62 = vpop.f32.mrb[3].mxu0  ;;  %v552_v15 = vadd.f32 %v551_v61, %v426_v9 }
 0x225   : > { %v861_v63 = vmul.f32 -1.442695, %v550_v60  ;;  %v554_v2 = vadd.f32 %v553_v62, %v430_v57 }
 0x227   : > { %956 = vpow2.f32 %v861_v63  ;;  %v862_v3 = vmul.f32 -1.442695, %v554_v2 }
 0x229   : > { %958 = vpow2.f32 %v862_v3  ;;  %v867_v3 = vld [vmem:[%s1174_s9] ss:$0 sm:$0xff] }
 0x231   : > { %v957_v4 = vpop.eup %956 }
 0x232   : > { %v562_v5 = vadd.f32 1.0, %v957_v4 }
 0x233   : > { %v959_v6 = vpop.eup %958 }
 0x234   : > { %960 = vrcp.f32 %v562_v5  ;;  %v563_v7 = vadd.f32 1.0, %v959_v6 }
 0x236   : > { %962 = vrcp.f32 %v563_v7 }
 0x23e   : > { %v961_v13 = vpop.eup %960 }
 0x23f   : > { %v568_v14 = vmul.f32 %v961_v13, %v548_v10 }
 0x240   : > { %v963_v16 = vpop.eup %962 }
 0x241   : > { %v573_v19 = vrot.slane %v568_v14, 7  ;;  %v569_v20 = vmul.f32 %v963_v16, %v552_v15 }
 0x243   : > { %v579_v21 = vsel %vm572_vm1, 0.0, %v573_v19  ;;  %v574_v22 = vrot.slane %v569_v20, 7 }
 0x244   : > { %v594_v23 = vmul.f32 %v593_v17, %v579_v21  ;;  %v614_v24 = vmul.f32 %v613_v18, %v579_v21  ;;  %v586_v38 = vmul.f32 %v585_v27, %v579_v21 }
 0x245   : > { %v580_v25 = vsel %vm572_vm1, %v574_v22, 0.0  ;;  %v575_v26 = vsel %vm572_vm1, %v573_v19, %v574_v22 }
 0x246   : > { %v596_v28 = vmul.f32 %v593_v17, %v580_v25  ;;  %v595_v29 = vmul.f32 %v593_v17, %v575_v26  ;;  %v615_v30 = vmul.f32 %v613_v18, %v575_v26  ;;  %v616_v31 = vmul.f32 %v613_v18, %v580_v25 }
 0x247   : > { %v601_v32 = vrot.slane %v594_v23, 1  ;;  %v621_v34 = vrot.slane %v614_v24, 2  ;;  %v587_v39 = vmul.f32 %v585_v27, %v575_v26 }
 0x248   : > { %v604_v33 = vrot.slane %v596_v28, 1  ;;  %v602_v35 = vrot.slane %v595_v29, 1  ;;  %v622_v36 = vrot.slane %v615_v30, 2  ;;  %v624_v37 = vrot.slane %v616_v31, 2 }
 0x24a   : > { %v603_v40 = vsel %vm600_vm2, %v601_v32, %v602_v35  ;;  %v605_v41 = vsel %vm600_vm2, %v602_v35, %v604_v33  ;;  %v623_v42 = vsel %vm620_vm3, %v621_v34, %v622_v36  ;;  %v625_v43 = vsel %vm620_vm3, %v622_v36, %v624_v37 }
 0x24b   : > { %v608_v44 = vadd.f32 %v603_v40, %v586_v38  ;;  %v609_v45 = vadd.f32 %v605_v41, %v587_v39 }
 0x24d   : > { %v628_v47 = vadd.f32 %v623_v42, %v608_v44  ;;  %v629_v48 = vadd.f32 %v625_v43, %v609_v45 }
 0x24f   : > { %v637_v50 = vmul.f32 %v863_v46, %v628_v47  ;;  %v638_v51 = vmul.f32 %v863_v46, %v629_v48 }
 0x251   : > { %v646_v52 = vadd.f32 %v864_v49, %v637_v50  ;;  %v647_v53 = vadd.f32 %v864_v49, %v638_v51 }
 0x253   : > { %v865_v54 = vmul.f32 -1.442695, %v646_v52  ;;  %v866_v55 = vmul.f32 -1.442695, %v647_v53 }
 0x255   : > { %964 = vpow2.f32 %v865_v54 }
 0x256   : > { %966 = vpow2.f32 %v866_v55 }
 0x25f   : > { %v965_v56 = vpop.eup %964 }
 0x260   : > { %v967_v57 = vpop.eup %966  ;;  %v654_v58 = vadd.f32 1.0, %v965_v56 }
 0x261   : > { %v655_v59 = vadd.f32 1.0, %v967_v57 }
 0x262   : > { %968 = vrcp.f32 %v654_v58 }
 0x263   : > { %970 = vrcp.f32 %v655_v59 }
 0x26c   : > { %v969_v60 = vpop.eup %968 }
 0x26d   : > { %v971_v61 = vpop.eup %970  ;;  %v660_v62 = vmul.f32 %v969_v60, %v646_v52 }
 0x26e   : > { %v661_v63 = vmul.f32 %v971_v61, %v647_v53 }
 0x270   : > { %v678_v2 = vpack.c.bf16 %v661_v63, %v660_v62 }
 0x272   : > { %906 = vmatmul.mubr.bf16.vlgmr.msra.gmra.mrb[0].mxu1 %v678_v2 }
 0x345   : > { %v768_v4 = vpop.f32.mrb[0].mxu1 }
 0x346   : > { %v769_v5 = vadd.f32 %v867_v3, %v768_v4  ;;  %v907_v6 = vpop.f32.mrb[1].mxu1 }
 0x347   : > { %v771_v7 = vpop.f32.mrb[2].mxu1 }
 0x348   : > { %v775_v8 = vadd.f32 %v769_v5, %v1054_v0  ;;  %v772_v9 = vadd.f32 %v867_v3, %v771_v7  ;;  %v908_v10 = vpop.f32.mrb[3].mxu1 }
 0x34a   : > { %777 = vst [vmem:[%s359_s12] sm:$0xff] %v775_v8  ;;  %v776_v11 = vadd.f32 %v772_v9, %v1056_v1 }
 0x34c   : > { %778 = vst [vmem:[%s359_s12 + $0x8] sm:$0xff] %v776_v11 }
 0x34d PF: > { %s20_s13 = sadd.s32 1, %s978_s13  }
 0x34e   : > { %p17_p4 = scmp.ge.s32.totalorder %s20_s13, 4  }
 0x350   :  { %19 = sbr.rel (!%p17_p4) target bundleno = 1 (0x1), region = 90 }

// kernel: encoder_forward.9
= control target key start
LH: loop header
LB: loop body
LE: loop exit
PB: predicated region body
PF: predicated region fallthrough
CT: control target
= control target key end

     0   :  { %s1619_s24 = smov 0   ;;  %s1869_s0 = inlined_call_operand.vmem [shape: f32[2,16,128], index: 0, kind: input, shape index: {}]   ;;  %s1870_s1 = inlined_call_operand.vmem [shape: f32[1,128], index: 1, kind: input, shape index: {}]   ;;  %s1871_s2 = inlined_call_operand.vmem [shape: f32[1,128], index: 2, kind: input, shape index: {}]   ;;  %s1872_s3 = inlined_call_operand.vmem [shape: bf16[128,384], index: 3, kind: input, shape index: {}]   ;;  %s1873_s4 = inlined_call_operand.vmem [shape: f32[1,384], index: 4, kind: input, shape index: {}]   ;;  %s1874_s5 = inlined_call_operand.vmem [shape: bf16[128,128], index: 5, kind: input, shape index: {}]   ;;  %s1875_s6 = inlined_call_operand.vmem [shape: f32[1,128], index: 6, kind: input, shape index: {}]   ;;  %s1876_s7 = inlined_call_operand.vmem [shape: f32[2,16,128], index: 7, kind: output, shape index: {}]  }
   0x1 LB: > { %s1282_s25 = sadd.s32 4294967295, %s1571_s24   ;;  %p1286_p0 = scmp.ge.s32.totalorder %s1571_s24, 1  ;;  %s1571_s24 = sphi %s1619_s24, %s17_s24  }
   0x2   : > { %p237_p1 = scmp.lt.s32.totalorder %s1571_s24, 3 }
   0x4   : > { %p238_p2 = pnand %p1286_p0, %p237_p1 }
   0x5   : > { %p269_p3 = scmp.lt.s32.totalorder (!%p238_p2), %s1282_s25, 1  ;;  %v1489_v2 = vld [vmem:[%s1872_s3 + $0x4] ss:$12 sps:$4 sm:$0xff] (!%p238_p2)   ;;  %v1491_v3 = vld [vmem:[%s1872_s3] ss:$12 sps:$4 sm:$0xff] (!%p238_p2)   ;;  %v1573_v4 = vmov (!%p238_p2), 0.0   ;;  %v358_v53 = vlaneseq (!%p238_p2) }
   0x6   : > { %241 = sbr.rel (%p238_p2) target bundleno = 2219 (0x8ab), region = 48  ;;  %1372 = vmatprep.subr.bf16.mxu1 (!%p238_p2), %v1573_v4  ;;  %v1492_v5 = vld [vmem:[%s1872_s3 + $0x8] ss:$12 sps:$4 sm:$0xff] (!%p238_p2)   ;;  %501 = vmatprep.subr.bf16.mxu0 (!%p238_p2), %v1489_v2  ;;  %v1495_v15 = vld [vmem:[%s1872_s3 + $0x18] ss:$12 sps:$4 sm:$0xff] (!%p238_p2)   ;;  %v1574_v30 = vmov (!%p238_p2), 0  }
   0x7   : > { %v1493_v6 = vld [vmem:[%s1872_s3 + $0x1c] ss:$12 sps:$4 sm:$0xff] (!%p238_p2)   ;;  %502 = vmatpush1.bf16.msra.mxu0 (!%p238_p2), %v1491_v3  ;;  %1373 = vmatpush3.bf16.msra.mxu1 (!%p238_p2), %v1492_v5  ;;  %v1496_v16 = vld [vmem:[%s1872_s3 + $0x20] ss:$12 sps:$4 sm:$0xff] (!%p238_p2)   ;;  %v1500_v19 = vld [vmem:[%s1872_s3 + $0x38] ss:$12 sps:$4 sm:$0xff] (!%p238_p2)  }
   0x8   : > { %503 = vmatprep.subr.bf16.mxu0 (!%p238_p2), %v1493_v6  ;;  %1374 = vmatprep.subr.bf16.mxu1 (!%p238_p2), %v1573_v4  ;;  %v1497_v17 = vld [vmem:[%s1872_s3 + $0x34] ss:$12 sps:$4 sm:$0xff] (!%p238_p2)   ;;  %v1499_v18 = vld [vmem:[%s1872_s3 + $0x30] ss:$12 sps:$4 sm:$0xff] (!%p238_p2)   ;;  %v1501_v20 = vld [vmem:[%s1872_s3 + $0x4c] ss:$12 sps:$4 sm:$0xff] (!%p238_p2)  }
   0x9   : > { %v1503_v21 = vld [vmem:[%s1872_s3 + $0x48] ss:$12 sps:$4 sm:$0xff] (!%p238_p2)   ;;  %v1504_v22 = vld [vmem:[%s1872_s3 + $0x50] ss:$12 sps:$4 sm:$0xff] (!%p238_p2)   ;;  %v1507_v24 = vld [vmem:[%s1872_s3 + $0x60] ss:$12 sps:$4 sm:$0xff] (!%p238_p2)   ;;  %533 = vmatprep.mubr.bf16.mxu0 (!%p238_p2), %v1574_v30 }
   0xa   : > { %v1505_v23 = vld [vmem:[%s1872_s3 + $0x64] ss:$12 sps:$4 sm:$0xff] (!%p238_p2)   ;;  %v1508_v25 = vld [vmem:[%s1872_s3 + $0x68] ss:$12 sps:$4 sm:$0xff] (!%p238_p2)   ;;  %v1512_v28 = vld [vmem:[%s1872_s3 + $0x80] ss:$12 sps:$4 sm:$0xff] (!%p238_p2)  }
   0xb   : > { %504 = vmatpush1.bf16.msra.mxu0 (!%p238_p2), %v1495_v15  ;;  %1375 = vmatpush3.bf16.msra.mxu1 (!%p238_p2), %v1496_v16  ;;  %v1509_v26 = vld [vmem:[%s1872_s3 + $0x7c] ss:$12 sps:$4 sm:$0xff] (!%p238_p2)   ;;  %v1511_v27 = vld [vmem:[%s1872_s3 + $0x78] ss:$12 sps:$4 sm:$0xff] (!%p238_p2)   ;;  %v1513_v29 = vld [vmem:[%s1872_s3 + $0x94] ss:$12 sps:$4 sm:$0xff] (!%p238_p2)  }
   0xc   : > { %1376 = vmatprep.subr.bf16.mxu1 (!%p238_p2), %v1573_v4  ;;  %505 = vmatprep.subr.bf16.mxu0 (!%p238_p2), %v1497_v17  ;;  %vm1575_vm0 = vmmov (!%p238_p2), 0   ;;  %v1515_v31 = vld [vmem:[%s1872_s3 + $0x90] ss:$12 sps:$4 sm:$0xff] (!%p238_p2)   ;;  %v1516_v32 = vld [vmem:[%s1872_s3 + $0x98] ss:$12 sps:$4 sm:$0xff] (!%p238_p2)   ;;  %v359_v54 = vshrl.u32 (!%p238_p2), %v358_v53, 7 }
   0xd   : > { %s1878_s25 = smov (!%p269_p3, %s1282_s25), 1  ;;  %1388 = vmatprep.mubr.msk.bf16.mxu1 %vm1575_vm0, %v1573_v4  ;;  %v1517_v33 = vld [vmem:[%s1872_s3 + $0xac] ss:$12 sps:$4 sm:$0xff]   ;;  %v1519_v34 = vld [vmem:[%s1872_s3 + $0xa8] ss:$12 sps:$4 sm:$0xff]   ;;  %vm587_vm1 = vcmask 261120  }
   0xe   : > { %s1336_s26 = sshll.u32 %s1878_s25, 4  ;;  %v1520_v35 = vld [vmem:[%s1872_s3 + $0xb0] ss:$12 sps:$4 sm:$0xff]   ;;  %v1291_v44 = vld [vmem:[%s1870_s1] ss:$0 sm:$0xff]  ;;  %v360_v55 = vsub.s32 0, %v359_v54 }
   0xf   : > { %s273_s29 = scalar_lea.vmem %s1869_s0, %s1336_s26  ;;  %506 = vmatpush1.bf16.msra.mxu0 %v1499_v18  ;;  %1377 = vmatpush3.bf16.msra.mxu1 %v1500_v19  ;;  %v1292_v48 = vld [vmem:[%s1871_s2] ss:$0 sm:$0xff]  ;;  %v368_v56 = vsub.s32 2, %v359_v54  ;;  %v364_v58 = vsub.s32 1, %v359_v54  ;;  %vm637_vm2 = vcmask 130048   ;;  %s1576_s21 = smov 96  }
  0x10   : > { %v1635_v0 = vld [vmem:[%s273_s29] sm:$0xff]  ;;  %v1637_v1 = vld [vmem:[%s273_s29 + $0x8] sm:$0xff]  ;;  %1378 = vmatprep.subr.bf16.mxu1 %v1573_v4  ;;  %507 = vmatprep.subr.bf16.mxu0 %v1501_v20  ;;  %s1577_s22 = smov 64   ;;  %s1578_s23 = smov 32   ;;  %vm1104_vm3 = vcmask 523264   ;;  %vm1107_vm4 = vcmask 785408  }
  0x11   : > { %284 = vadd.xlane.f32.xlu0 %v1635_v0  ;;  %v356_v57 = vld [vmem:[%s1873_s4] sm:$0x7]  ;;  %s278_s27 = scalar_lea.vmem %s1876_s7, %s1336_s26 }
  0x12   : > { %v361_v59 = vrot.slane %v356_v57, %v360_v55  ;;  %v369_v60 = vrot.slane %v356_v57, %v368_v56  ;;  %v365_v63 = vrot.slane %v356_v57, %v364_v58 }
  0x13   : > { %508 = vmatpush1.bf16.msra.mxu0 %v1503_v21  ;;  %1379 = vmatpush3.bf16.msra.mxu1 %v1504_v22 }
  0x14   : > { %1380 = vmatprep.subr.bf16.mxu1 %v1573_v4  ;;  %509 = vmatprep.subr.bf16.mxu0 %v1505_v23 }
  0x15   : > { %286 = vadd.xlane.f32.xlu0 %v1637_v1 }
  0x17   : > { %510 = vmatpush1.bf16.msra.mxu0 %v1507_v24  ;;  %1381 = vmatpush3.bf16.msra.mxu1 %v1508_v25 }
  0x18   : > { %511 = vmatprep.subr.bf16.mxu0 %v1509_v26  ;;  %1382 = vmatprep.subr.bf16.mxu1 %v1573_v4 }
  0x1b   : > { %512 = vmatpush1.bf16.msra.mxu0 %v1511_v27  ;;  %1383 = vmatpush3.bf16.msra.mxu1 %v1512_v28 }
  0x1c   : > { %513 = vmatprep.subr.bf16.mxu0 %v1513_v29  ;;  %1384 = vmatprep.subr.bf16.mxu1 %v1573_v4 }
  0x1f   : > { %514 = vmatpush1.bf16.msra.mxu0 %v1515_v31  ;;  %1385 = vmatpush3.bf16.msra.mxu1 %v1516_v32 }
  0x20   : > { %515 = vmatprep.subr.bf16.mxu0 %v1517_v33  ;;  %1386 = vmatprep.subr.bf16.mxu1 %v1573_v4 }
  0x23   : > { %516 = vmatpush1.bf16.msra.mxu0 %v1519_v34  ;;  %1387 = vmatpush3.bf16.msra.mxu1 %v1520_v35 }
  0x24   : > { %1392 = vmatprep.subr.bf16.mxu1 %v1573_v4  ;;  %1416 = vmatprep.subr.bf16.mxu0 %v1573_v4 }
  0x9e   : > { %v285_v7 = vpop.xlane.xlu0 %284 }
  0x9f   : > { %v289_v8 = vmul.f32 0.0078125, %v285_v7 }
  0xa1   : > { %v1656_v9 = vsub.f32 %v1635_v0, %v289_v8 }
  0xa2   : > { %v287_v10 = vpop.xlane.xlu0 %286 }
  0xa3   : > { %v290_v11 = vmul.f32 0.0078125, %v287_v10  ;;  %v293_v12 = vmul.f32 %v1656_v9, %v1656_v9 }
  0xa5   : > { %v1661_v13 = vsub.f32 %v1637_v1, %v290_v11  ;;  %295 = vadd.xlane.f32.xlu1 %v293_v12 }
  0xa7   : > { %v294_v14 = vmul.f32 %v1661_v13, %v1661_v13 }
  0xa9   : > { %297 = vadd.xlane.f32.xlu1 %v294_v14 }
 0x132   : > { %v296_v36 = vpop.xlane.xlu1 %295 }
 0x133   : > { %v299_v37 = vmul.f32 0.0078125, %v296_v36 }
 0x135   : > { %v301_v38 = vadd.f32 1e-05, %v299_v37 }
 0x136   : > { %v298_v39 = vpop.xlane.xlu1 %297 }
 0x137   : > { %1529 = vrsqrt.f32 %v301_v38  ;;  %v300_v40 = vmul.f32 0.0078125, %v298_v39 }
 0x139   : > { %v302_v41 = vadd.f32 1e-05, %v300_v40 }
 0x13b   : > { %1531 = vrsqrt.f32 %v302_v41 }
 0x141   : > { %v1530_v42 = vpop.eup %1529 }
 0x142   : > { %v305_v43 = vmul.f32 %v1530_v42, %v1656_v9 }
 0x144   : > { %v313_v47 = vmul.f32 %v1291_v44, %v305_v43 }
 0x145   : > { %v1532_v45 = vpop.eup %1531 }
 0x146   : > { %v306_v46 = vmul.f32 %v1532_v45, %v1661_v13  ;;  %v321_v50 = vadd.f32 %v1292_v48, %v313_v47 }
 0x148   : > { %v314_v49 = vmul.f32 %v1291_v44, %v306_v46 }
 0x14a   : > { %v322_v51 = vadd.f32 %v1292_v48, %v314_v49 }
 0x14c   : > { %v355_v52 = vpack.c.bf16 %v322_v51, %v321_v50 }
 0x14e   : > { %534 = vmatmul.mubr.bf16.vlgmr.msra.gmra.mrb[0].mxu0 %v355_v52  ;;  %1389 = vmatmul.mubr.bf16.vlgmr.msra.gmra.mrb[0].mxu1 %v355_v52 }
 0x14f   : > { %1394 = vmatprep.mubr.msk.bf16.mxu1 %vm1575_vm0, %v1573_v4  ;;  %1418 = vmatprep.mubr.msk.bf16.mxu0 %vm1575_vm0, %v1573_v4 }
 0x221   : > { %v535_v61 = vpop.f32.mrb[0].mxu0  ;;  %v578_v62 = vpop.f32.mrb[0].mxu1 }
 0x222   : > { %v537_v2 = vpop.f32.mrb[1].mxu0  ;;  %v1390_v3 = vpop.f32.mrb[1].mxu1  ;;  %v536_v7 = vadd.f32 %v535_v61, %v361_v59  ;;  %v579_v8 = vadd.f32 %v578_v62, %v369_v60 }
 0x223   : > { %v539_v5 = vpop.f32.mrb[2].mxu0  ;;  %v581_v6 = vpop.f32.mrb[2].mxu1  ;;  %v538_v13 = vadd.f32 %v537_v2, %v365_v63 }
 0x224   : > { %v540_v9 = vadd.f32 %v539_v5, %v361_v59  ;;  %v582_v10 = vadd.f32 %v581_v6, %v369_v60  ;;  %v541_v11 = vpop.f32.mrb[3].mxu0  ;;  %v1391_v12 = vpop.f32.mrb[3].mxu1 }
 0x225   : > { %v542_v14 = vadd.f32 %v541_v11, %v365_v63 }
 0x226   : > { %v585_v15 = vpack.c.bf16 %v540_v9, %v536_v7  ;;  %v1750_v16 = vpack.c.bf16 %v582_v10, %v579_v8 }
 0x227   : > { %v586_v17 = vpack.c.bf16 %v542_v14, %v538_v13 }
 0x229   : > { %v592_v18 = vsel %vm587_vm1, %v586_v17, 0 }
 0x22a   : > { %1393 = vmatpush3.bf16.xpose.msra.mxu1 %v592_v18 }
 0x22b   : > { %1398 = vmatprep.subr.bf16.mxu1 %v1573_v4 }
 0x231   : > { %1395 = vmatmul.mubr.msk.bf16.vlgmr.msra.gmra.mrb[4].mxu1 %vm587_vm1, %v585_v15 }
 0x232   : > { %1399 = vmatpush3.bf16.msra.mxu1 %v1750_v16  ;;  %1400 = vmatprep.mubr.msk.bf16.mxu1 %vm1575_vm0, %v1573_v4 }
 0x233   : > { %1404 = vmatprep.subr.bf16.mxu1 %v1573_v4 }
 0x304   : > { %v628_v19 = vpop.f32.mrb[4].mxu1 }
 0x305   : > { %v635_v20 = vmul.f32 0.17677669, %v628_v19  ;;  %v1396_v21 = vpop.f32.mrb[5].mxu1 }
 0x306   : > { %v631_v22 = vpop.f32.mrb[6].mxu1 }
 0x307   : > { %v636_v23 = vmul.f32 0.17677669, %v631_v22  ;;  %v1397_v24 = vpop.f32.mrb[7].mxu1  ;;  %v638_v25 = vsel %vm637_vm2, %v635_v20, -inf }
 0x308   : > { %639 = vmax.xlane.f32.xlu0 %v638_v25 }
 0x309   : > { %v641_v26 = vsel %vm637_vm2, %v636_v23, -inf }
 0x30a   : > { %642 = vmax.xlane.f32.xlu1 %v641_v26 }
 0x395   : > { %v640_v27 = vpop.xlane.xlu0 %639 }
 0x396   : > { %v644_v28 = vsub.f32 %v635_v20, %v640_v27 }
 0x397   : > { %v643_v29 = vpop.xlane.xlu1 %642 }
 0x398   : > { %v646_v30 = vmul.f32 1.442695, %v644_v28  ;;  %v645_v31 = vsub.f32 %v636_v23, %v643_v29 }
 0x39a   : > { %1533 = vpow2.f32 %v646_v30  ;;  %v648_v32 = vmul.f32 1.442695, %v645_v31 }
 0x39c   : > { %1535 = vpow2.f32 %v648_v32 }
 0x3a4   : > { %v1534_v33 = vpop.eup %1533 }
 0x3a5   : > { %v650_v34 = vsel %vm637_vm2, %v1534_v33, 0.0 }
 0x3a6   : > { %v1536_v35 = vpop.eup %1535  ;;  %651 = vadd.xlane.f32.xlu0 %v650_v34 }
 0x3a7   : > { %v653_v36 = vsel %vm637_vm2, %v1536_v35, 0.0 }
 0x3a8   : > { %654 = vadd.xlane.f32.xlu1 %v653_v36 }
 0x3b9   : > { %707 = vrot.lane.b32.xlu1 %v585_v15, %s1576_s21 }
 0x3bc   : > { %710 = vrot.lane.b32.xlu0 %v586_v17, %s1576_s21 }
 0x3bd   : > { %834 = vrot.lane.b32.xlu1 %v586_v17, %s1577_s22 }
 0x3c0   : > { %957 = vrot.lane.b32.xlu0 %v586_v17, %s1578_s23 }
 0x3c1   : > { %832 = vrot.lane.b32.xlu1 %v585_v15, %s1577_s22 }
 0x3c5   : > { %955 = vrot.lane.b32.xlu1 %v585_v15, %s1578_s23 }
 0x433   : > { %v652_v37 = vpop.xlane.xlu0 %651 }
 0x434   : > { %1537 = vrcp.f32 %v652_v37 }
 0x435   : > { %v655_v38 = vpop.xlane.xlu1 %654 }
 0x436   : > { %1539 = vrcp.f32 %v655_v38 }
 0x437   : > { %v711_v40 = vpop.permute.xlu0 %710 }
 0x438   : > { %v716_v49 = vsel %vm587_vm1, %v711_v40, 0 }
 0x439   : > { %v708_v39 = vpop.permute.xlu1 %707 }
 0x43b   : > { %v958_v47 = vpop.permute.xlu0 %957 }
 0x43c   : > { %v963_v51 = vsel %vm587_vm1, %v958_v47, 0 }
 0x43d   : > { %v835_v41 = vpop.permute.xlu1 %834 }
 0x43e   : > { %v1538_v42 = vpop.eup %1537  ;;  %v840_v43 = vsel %vm587_vm1, %v835_v41, 0 }
 0x43f   : > { %1417 = vmatpush3.bf16.xpose.msra.mxu0 %v840_v43  ;;  %v658_v45 = vmul.f32 %v1538_v42, %v1534_v33 }
 0x440   : > { %v1540_v44 = vpop.eup %1539  ;;  %1428 = vmatprep.subr.bf16.mxu0 %v1573_v4 }
 0x441   : > { %v659_v46 = vmul.f32 %v1540_v44, %v1536_v35  ;;  %v833_v50 = vpop.permute.xlu1 %832 }
 0x443   : > { %v660_v48 = vpack.c.bf16 %v659_v46, %v658_v45 }
 0x445   : > { %1401 = vmatmul.mubr.msk.bf16.vlgmr.msra.gmra.mrb[8].mxu1 %vm637_vm2, %v660_v48  ;;  %v956_v52 = vpop.permute.xlu1 %955 }
 0x446   : > { %1405 = vmatpush3.bf16.xpose.msra.mxu1 %v716_v49  ;;  %1419 = vmatmul.mubr.msk.bf16.vlgmr.msra.gmra.mrb[4].mxu0 %vm587_vm1, %v833_v50 }
 0x447   : > { %1429 = vmatpush3.bf16.xpose.msra.mxu0 %v963_v51  ;;  %1406 = vmatprep.mubr.msk.bf16.mxu1 %vm1575_vm0, %v1573_v4 }
 0x448   : > { %1430 = vmatprep.mubr.msk.bf16.mxu0 %vm1575_vm0, %v1573_v4  ;;  %1410 = vmatprep.subr.bf16.mxu1 %v1573_v4 }
 0x449   : > { %1440 = vmatprep.subr.bf16.mxu0 %v1573_v4 }
 0x44d   : > { %1407 = vmatmul.mubr.msk.bf16.vlgmr.msra.gmra.mrb[12].mxu1 %vm587_vm1, %v708_v39 }
 0x44e   : > { %1431 = vmatmul.mubr.msk.bf16.vlgmr.msra.gmra.mrb[8].mxu0 %vm587_vm1, %v956_v52  ;;  %1412 = vmatprep.mubr.msk.bf16.mxu1 %vm1575_vm0, %v1573_v4 }
 0x44f   : > { %1456 = vmatprep.mubr.msk.bf16.mxu0 %vm1575_vm0, %v1573_v4 }
 0x518   : > { %v1787_v53 = vpop.f32.mrb[8].mxu1 }
 0x519   : > { %v1402_v54 = vpop.f32.mrb[9].mxu1  ;;  %v876_v55 = vpop.f32.mrb[4].mxu0 }
 0x51a   : > { %v1789_v56 = vpop.f32.mrb[10].mxu1  ;;  %v1420_v57 = vpop.f32.mrb[5].mxu0  ;;  %v883_v3 = vmul.f32 0.17677669, %v876_v55 }
 0x51b   : > { %v1403_v58 = vpop.f32.mrb[11].mxu1  ;;  %v879_v59 = vpop.f32.mrb[6].mxu0 }
 0x51c   : > { %v1421_v60 = vpop.f32.mrb[7].mxu0  ;;  %v884_v14 = vmul.f32 0.17677669, %v879_v59  ;;  %v885_v15 = vsel %vm637_vm2, %v883_v3, -inf }
 0x51e   : > { %v888_v19 = vsel %vm637_vm2, %v884_v14, -inf }
 0x520   : > { %v752_v61 = vpop.f32.mrb[12].mxu1 }
 0x521   : > { %v759_v62 = vmul.f32 0.17677669, %v752_v61  ;;  %v1408_v63 = vpop.f32.mrb[13].mxu1  ;;  %v999_v2 = vpop.f32.mrb[8].mxu0 }
 0x522   : > { %v755_v5 = vpop.f32.mrb[14].mxu1  ;;  %v1432_v6 = vpop.f32.mrb[9].mxu0  ;;  %v1006_v18 = vmul.f32 0.17677669, %v999_v2 }
 0x523   : > { %v760_v7 = vmul.f32 0.17677669, %v755_v5  ;;  %v1409_v8 = vpop.f32.mrb[15].mxu1  ;;  %v1002_v9 = vpop.f32.mrb[10].mxu0  ;;  %v761_v10 = vsel %vm637_vm2, %v759_v62, -inf }
 0x524   : > { %v1433_v11 = vpop.f32.mrb[11].mxu0  ;;  %762 = vmax.xlane.f32.xlu0 %v761_v10  ;;  %v1007_v12 = vmul.f32 0.17677669, %v1002_v9  ;;  %v1008_v20 = vsel %vm637_vm2, %v1006_v18, -inf }
 0x525   : > { %v764_v13 = vsel %vm637_vm2, %v760_v7, -inf }
 0x526   : > { %765 = vmax.xlane.f32.xlu1 %v764_v13  ;;  %v1011_v17 = vsel %vm637_vm2, %v1007_v12, -inf }
 0x528   : > { %886 = vmax.xlane.f32.xlu0 %v885_v15  ;;  %v1521_v15 = vld [vmem:[%s1874_s5] sm:$0xff]  }
 0x529   : > { %1441 = vmatpush3.bf16.msra.mxu0 %v1521_v15 }
 0x52a   : > { %1012 = vmax.xlane.f32.xlu1 %v1011_v17  ;;  %v1522_v17 = vld [vmem:[%s1874_s5 + $0x8] sm:$0xff]   ;;  %1442 = vmatprep.subr.bf16.mxu0 %v1573_v4 }
 0x52c   : > { %889 = vmax.xlane.f32.xlu0 %v888_v19  ;;  %v1524_v19 = vld [vmem:[%s1874_s5 + $0x18] sm:$0xff]  }
 0x52d   : > { %1443 = vmatpush3.bf16.msra.mxu0 %v1522_v17 }
 0x52e   : > { %1444 = vmatprep.subr.bf16.mxu0 %v1573_v4 }
 0x530   : > { %1009 = vmax.xlane.f32.xlu0 %v1008_v20  ;;  %v1525_v20 = vld [vmem:[%s1874_s5 + $0x20] sm:$0xff]  }
 0x5b1   : > { %v763_v21 = vpop.xlane.xlu0 %762 }
 0x5b2   : > { %v767_v30 = vsub.f32 %v759_v62, %v763_v21 }
 0x5b3   : > { %v766_v22 = vpop.xlane.xlu1 %765 }
 0x5b4   : > { %v768_v31 = vsub.f32 %v760_v7, %v766_v22  ;;  %v769_v36 = vmul.f32 1.442695, %v767_v30  ;;  %v1528_v30 = vld [vmem:[%s1874_s5 + $0x38] sm:$0xff]  }
 0x5b5   : > { %v887_v23 = vpop.xlane.xlu0 %886 }
 0x5b6   : > { %v891_v24 = vsub.f32 %v883_v3, %v887_v23  ;;  %v771_v37 = vmul.f32 1.442695, %v768_v31  ;;  %v1526_v23 = vld [vmem:[%s1874_s5 + $0x28] sm:$0xff]  }
 0x5b7   : > { %v1013_v25 = vpop.xlane.xlu1 %1012 }
 0x5b8   : > { %v893_v26 = vmul.f32 1.442695, %v891_v24  ;;  %v1015_v27 = vsub.f32 %v1007_v12, %v1013_v25 }
 0x5b9   : > { %v890_v28 = vpop.xlane.xlu0 %889 }
 0x5ba   : > { %1541 = vpow2.f32 %v893_v26  ;;  %v892_v29 = vsub.f32 %v884_v14, %v890_v28  ;;  %v1018_v32 = vmul.f32 1.442695, %v1015_v27  ;;  %v1527_v27 = vld [vmem:[%s1874_s5 + $0x30] sm:$0xff]  }
 0x5bc   : > { %v895_v33 = vmul.f32 1.442695, %v892_v29 }
 0x5bd   : > { %v1010_v34 = vpop.xlane.xlu0 %1009 }
 0x5be   : > { %1543 = vpow2.f32 %v895_v33  ;;  %v1014_v35 = vsub.f32 %v1006_v18, %v1010_v34  ;;  %v1523_v18 = vld [vmem:[%s1874_s5 + $0x10] sm:$0xff]  }
 0x5bf   : > { %1545 = vpow2.f32 %v1018_v32  ;;  %1445 = vmatpush3.bf16.msra.mxu0 %v1523_v18 }
 0x5c0   : > { %v1016_v38 = vmul.f32 1.442695, %v1014_v35  ;;  %1446 = vmatprep.subr.bf16.mxu0 %v1573_v4 }
 0x5c2   : > { %1547 = vpow2.f32 %v1016_v38 }
 0x5c3   : > { %1549 = vpow2.f32 %v769_v36  ;;  %1447 = vmatpush3.bf16.msra.mxu0 %v1524_v19 }
 0x5c4   : > { %v1542_v39 = vpop.eup %1541  ;;  %1551 = vpow2.f32 %v771_v37  ;;  %1448 = vmatprep.subr.bf16.mxu0 %v1573_v4 }
 0x5c5   : > { %v897_v40 = vsel %vm637_vm2, %v1542_v39, 0.0 }
 0x5c6   : > { %898 = vadd.xlane.f32.xlu0 %v897_v40 }
 0x5c7   : > { %1449 = vmatpush3.bf16.msra.mxu0 %v1525_v20 }
 0x5c8   : > { %v1544_v41 = vpop.eup %1543  ;;  %1450 = vmatprep.subr.bf16.mxu0 %v1573_v4 }
 0x5c9   : > { %v900_v42 = vsel %vm637_vm2, %v1544_v41, 0.0  ;;  %v1546_v43 = vpop.eup %1545 }
 0x5ca   : > { %901 = vadd.xlane.f32.xlu1 %v900_v42  ;;  %v1023_v47 = vsel %vm637_vm2, %v1546_v43, 0.0 }
 0x5cb   : > { %1451 = vmatpush3.bf16.msra.mxu0 %v1526_v23 }
 0x5cc   : > { %v1548_v44 = vpop.eup %1547  ;;  %1452 = vmatprep.subr.bf16.mxu0 %v1573_v4 }
 0x5cd   : > { %v1550_v45 = vpop.eup %1549  ;;  %v1020_v46 = vsel %vm637_vm2, %v1548_v44, 0.0 }
 0x5ce   : > { %v1552_v48 = vpop.eup %1551  ;;  %1021 = vadd.xlane.f32.xlu0 %v1020_v46  ;;  %1024 = vadd.xlane.f32.xlu1 %v1023_v47  ;;  %v773_v49 = vsel %vm637_vm2, %v1550_v45, 0.0 }
 0x5cf   : > { %v776_v50 = vsel %vm637_vm2, %v1552_v48, 0.0  ;;  %1453 = vmatpush3.bf16.msra.mxu0 %v1527_v27 }
 0x5d0   : > { %1454 = vmatprep.subr.bf16.mxu0 %v1573_v4 }
 0x5d2   : > { %774 = vadd.xlane.f32.xlu0 %v773_v49  ;;  %777 = vadd.xlane.f32.xlu1 %v776_v50 }
 0x5d3   : > { %1455 = vmatpush3.bf16.msra.mxu0 %v1528_v30 }
 0x5e3   : > { %908 = vrot.lane.b32.xlu1 %v1750_v16, %s1577_s22 }
 0x5e7   : > { %1031 = vrot.lane.b32.xlu1 %v1750_v16, %s1578_s23 }
 0x5e8   : > { %785 = vrot.lane.b32.xlu0 %v1750_v16, %s1576_s21 }
 0x653   : > { %v899_v51 = vpop.xlane.xlu0 %898 }
 0x657   : > { %v902_v52 = vpop.xlane.xlu1 %901 }
 0x65b   : > { %v1022_v54 = vpop.xlane.xlu0 %1021  ;;  %v1025_v55 = vpop.xlane.xlu1 %1024 }
 0x65f   : > { %v775_v57 = vpop.xlane.xlu0 %774  ;;  %v778_v58 = vpop.xlane.xlu1 %777 }
 0x660   : > { %1553 = vrcp.f32 %v775_v57 }
 0x661   : > { %1555 = vrcp.f32 %v778_v58 }
 0x662   : > { %1557 = vrcp.f32 %v902_v52 }
 0x663   : > { %v786_v59 = vpop.permute.xlu0 %785  ;;  %1559 = vrcp.f32 %v899_v51  ;;  %v909_v3 = vpop.permute.xlu1 %908 }
 0x664   : > { %1411 = vmatpush3.bf16.msra.mxu1 %v786_v59  ;;  %1561 = vrcp.f32 %v1022_v54 }
 0x665   : > { %1422 = vmatprep.subr.bf16.mxu1 %v1573_v4  ;;  %1563 = vrcp.f32 %v1025_v55  ;;  %v1325_v55 = vld [vmem:[%s1875_s6] ss:$0 sm:$0xff] }
 0x667   : > { %v1032_v11 = vpop.permute.xlu1 %1031 }
 0x66a   : > { %v1554_v60 = vpop.eup %1553 }
 0x66b   : > { %v1556_v61 = vpop.eup %1555  ;;  %v781_v62 = vmul.f32 %v1554_v60, %v1550_v45 }
 0x66c   : > { %v782_v63 = vmul.f32 %v1556_v61, %v1552_v48  ;;  %v1558_v2 = vpop.eup %1557 }
 0x66d   : > { %v1560_v5 = vpop.eup %1559  ;;  %v906_v6 = vmul.f32 %v1558_v2, %v1544_v41 }
 0x66e   : > { %v783_v16 = vpack.c.bf16 %v782_v63, %v781_v62  ;;  %v905_v7 = vmul.f32 %v1560_v5, %v1542_v39  ;;  %v1562_v8 = vpop.eup %1561 }
 0x66f   : > { %v1564_v10 = vpop.eup %1563  ;;  %v1028_v12 = vmul.f32 %v1562_v8, %v1548_v44 }
 0x670   : > { %1413 = vmatmul.mubr.msk.bf16.vlgmr.msra.gmra.mrb[16].mxu1 %vm637_vm2, %v783_v16  ;;  %v907_v9 = vpack.c.bf16 %v906_v6, %v905_v7  ;;  %v1029_v13 = vmul.f32 %v1564_v10, %v1546_v43 }
 0x671   : > { %1423 = vmatpush3.bf16.msra.mxu1 %v909_v3  ;;  %1424 = vmatprep.mubr.msk.bf16.mxu1 %vm1575_vm0, %v1573_v4 }
 0x672   : > { %1434 = vmatprep.subr.bf16.mxu1 %v1573_v4  ;;  %v1030_v14 = vpack.c.bf16 %v1029_v13, %v1028_v12 }
 0x678   : > { %1425 = vmatmul.mubr.msk.bf16.vlgmr.msra.gmra.mrb[20].mxu1 %vm637_vm2, %v907_v9 }
 0x679   : > { %1435 = vmatpush3.bf16.msra.mxu1 %v1032_v11  ;;  %1436 = vmatprep.mubr.msk.bf16.mxu1 %vm1575_vm0, %v1573_v4 }
 0x680   : > { %1437 = vmatmul.mubr.msk.bf16.vlgmr.msra.gmra.mrb[24].mxu1 %vm637_vm2, %v1030_v14 }
 0x743   : > { %v825_v21 = vpop.f32.mrb[16].mxu1 }
 0x744   : > { %v1414_v22 = vpop.f32.mrb[17].mxu1 }
 0x745   : > { %v828_v24 = vpop.f32.mrb[18].mxu1 }
 0x746   : > { %v1474_v25 = vpack.i.bf16 %v828_v24, %v825_v21  ;;  %v1415_v26 = vpop.f32.mrb[19].mxu1 }
 0x748   : > { %1475 = vrot.lane.b32.xlu1 %v1474_v25, %s1578_s23 }
 0x74b   : > { %v948_v28 = vpop.f32.mrb[20].mxu1 }
 0x74c   : > { %v1426_v29 = vpop.f32.mrb[21].mxu1 }
 0x74d   : > { %v951_v31 = vpop.f32.mrb[22].mxu1 }
 0x74e   : > { %v1479_v32 = vpack.i.bf16 %v951_v31, %v948_v28  ;;  %v1427_v33 = vpop.f32.mrb[23].mxu1 }
 0x750   : > { %1480 = vrot.lane.b32.xlu0 %v1479_v32, %s1577_s22 }
 0x753   : > { %v1071_v34 = vpop.f32.mrb[24].mxu1 }
 0x754   : > { %v1438_v35 = vpop.f32.mrb[25].mxu1 }
 0x755   : > { %v1074_v36 = vpop.f32.mrb[26].mxu1 }
 0x756   : > { %v1484_v37 = vpack.i.bf16 %v1074_v36, %v1071_v34  ;;  %v1439_v38 = vpop.f32.mrb[27].mxu1 }
 0x758   : > { %1485 = vrot.lane.b32.xlu1 %v1484_v37, %s1576_s21 }
 0x7ba   : > { %v1476_v39 = vpop.permute.xlu1 %1475 }
 0x7bb   : > { %v1478_v40 = vunpack.i.h.bf16 %v1476_v39  ;;  %v1477_v41 = vunpack.i.l.bf16 %v1476_v39 }
 0x7bd   : > { %v1103_v45 = vsel %vm587_vm1, %v1789_v56, %v1478_v40  ;;  %v1102_v46 = vsel %vm587_vm1, %v1787_v53, %v1477_v41 }
 0x7c2   : > { %v1481_v4 = vpop.permute.xlu0 %1480 }
 0x7c3   : > { %v1483_v42 = vunpack.i.h.bf16 %v1481_v4  ;;  %v1482_v43 = vunpack.i.l.bf16 %v1481_v4 }
 0x7c5   : > { %v1106_v49 = vsel %vm1104_vm3, %v1103_v45, %v1483_v42  ;;  %v1105_v50 = vsel %vm1104_vm3, %v1102_v46, %v1482_v43 }
 0x7ca   : > { %v1486_v44 = vpop.permute.xlu1 %1485 }
 0x7cb   : > { %v1488_v47 = vunpack.i.h.bf16 %v1486_v44  ;;  %v1487_v48 = vunpack.i.l.bf16 %v1486_v44 }
 0x7cd   : > { %v1109_v51 = vsel %vm1107_vm4, %v1106_v49, %v1488_v47  ;;  %v1108_v52 = vsel %vm1107_vm4, %v1105_v50, %v1487_v48 }
 0x7ce   : > { %v1126_v54 = vpack.c.bf16 %v1109_v51, %v1108_v52 }
 0x7d0   : > { %1457 = vmatmul.mubr.bf16.vlgmr.msra.gmra.mrb[12].mxu0 %v1126_v54 }
 0x8a3   : > { %v1216_v57 = vpop.f32.mrb[12].mxu0 }
 0x8a4   : > { %v1217_v58 = vadd.f32 %v1325_v55, %v1216_v57  ;;  %v1458_v59 = vpop.f32.mrb[13].mxu0 }
 0x8a5   : > { %v1219_v53 = vpop.f32.mrb[14].mxu0 }
 0x8a6   : > { %v1223_v56 = vadd.f32 %v1217_v58, %v1635_v0  ;;  %v1220_v60 = vadd.f32 %v1325_v55, %v1219_v53  ;;  %v1459_v61 = vpop.f32.mrb[15].mxu0 }
 0x8a8   : > { %1225 = vst [vmem:[%s278_s27] sm:$0xff] %v1223_v56  ;;  %v1224_v62 = vadd.f32 %v1220_v60, %v1637_v1 }
 0x8aa   : > { %1226 = vst [vmem:[%s278_s27 + $0x8] sm:$0xff] %v1224_v62 }
 0x8ab PF: > { %s17_s24 = sadd.s32 1, %s1571_s24  }
 0x8ac   : > { %p14_p4 = scmp.ge.s32.totalorder %s17_s24, 4  }
 0x8ae   :  { %16 = sbr.rel (!%p14_p4) target bundleno = 1 (0x1), region = 78 }

// kernel: encoder_forward.11
= control target key start
LH: loop header
LB: loop body
LE: loop exit
PB: predicated region body
PF: predicated region fallthrough
CT: control target
= control target key end

     0   :  { %s1506_s30 = smov 0   ;;  %s1764_s0 = inlined_call_operand.vmem [shape: f32[2,16,128], index: 0, kind: input, shape index: {}]   ;;  %s1765_s1 = inlined_call_operand.vmem [shape: f32[1,128], index: 1, kind: input, shape index: {}]   ;;  %s1766_s2 = inlined_call_operand.vmem [shape: f32[1,128], index: 2, kind: input, shape index: {}]   ;;  %s1767_s3 = inlined_call_operand.vmem [shape: bf16[128,512], index: 3, kind: input, shape index: {}]   ;;  %s1768_s4 = inlined_call_operand.vmem [shape: f32[1,512], index: 4, kind: input, shape index: {}]   ;;  %s1769_s5 = inlined_call_operand.vmem [shape: bf16[512,128], index: 5, kind: input, shape index: {}]   ;;  %s1770_s6 = inlined_call_operand.vmem [shape: f32[1,128], index: 6, kind: input, shape index: {}]   ;;  %s1771_s7 = inlined_call_operand.vmem [shape: f32[1,128], index: 7, kind: input, shape index: {}]   ;;  %s1772_s8 = inlined_call_operand.vmem [shape: f32[1,128], index: 8, kind: input, shape index: {}]   ;;  %s1773_s9 = inlined_call_operand.vmem [shape: f32[2,16,128], index: 9, kind: output, shape index: {}]  }
   0x1 LB: > { %s1184_s10 = sadd.s32 4294967295, %s1453_s30   ;;  %p1188_p0 = scmp.ge.s32.totalorder %s1453_s30, 1  ;;  %s1453_s30 = sphi %s1506_s30, %s19_s30  }
   0x2   : > { %p287_p1 = scmp.lt.s32.totalorder %s1453_s30, 3 }
   0x4   : > { %p288_p2 = pnand %p1188_p0, %p287_p1 }
   0x5   : > { %p323_p3 = scmp.lt.s32.totalorder (!%p288_p2), %s1184_s10, 1  ;;  %v1327_v2 = vld [vmem:[%s1767_s3 + $0x4] ss:$16 sps:$4 sm:$0xff] (!%p288_p2)   ;;  %v1329_v3 = vld [vmem:[%s1767_s3 + $0xc] ss:$16 sps:$4 sm:$0xff] (!%p288_p2)   ;;  %v1455_v36 = vmov (!%p288_p2), 0  }
   0x6   : > { %291 = sbr.rel (%p288_p2) target bundleno = 1122 (0x462), region = 56  ;;  %v1331_v4 = vld [vmem:[%s1767_s3] ss:$16 sps:$4 sm:$0xff] (!%p288_p2)   ;;  %v1332_v5 = vld [vmem:[%s1767_s3 + $0x8] ss:$16 sps:$4 sm:$0xff] (!%p288_p2)   ;;  %592 = vmatprep.subr.bf16.mxu0 (!%p288_p2), %v1327_v2  ;;  %635 = vmatprep.subr.bf16.mxu1 (!%p288_p2), %v1329_v3 }
   0x7   : > { %v1333_v6 = vld [vmem:[%s1767_s3 + $0x24] ss:$16 sps:$4 sm:$0xff] (!%p288_p2)   ;;  %v1335_v7 = vld [vmem:[%s1767_s3 + $0x2c] ss:$16 sps:$4 sm:$0xff] (!%p288_p2)   ;;  %593 = vmatpush1.bf16.msra.mxu0 (!%p288_p2), %v1331_v4  ;;  %636 = vmatpush1.bf16.msra.mxu1 (!%p288_p2), %v1332_v5  ;;  %v1337_v16 = vld [vmem:[%s1767_s3 + $0x20] ss:$16 sps:$4 sm:$0xff] (!%p288_p2)  }
   0x8   : > { %594 = vmatprep.subr.bf16.mxu0 (!%p288_p2), %v1333_v6  ;;  %637 = vmatprep.subr.bf16.mxu1 (!%p288_p2), %v1335_v7  ;;  %v1338_v17 = vld [vmem:[%s1767_s3 + $0x28] ss:$16 sps:$4 sm:$0xff] (!%p288_p2)   ;;  %v1339_v18 = vld [vmem:[%s1767_s3 + $0x44] ss:$16 sps:$4 sm:$0xff] (!%p288_p2)   ;;  %v1341_v19 = vld [vmem:[%s1767_s3 + $0x4c] ss:$16 sps:$4 sm:$0xff] (!%p288_p2)  }
   0x9   : > { %v1343_v20 = vld [vmem:[%s1767_s3 + $0x40] ss:$16 sps:$4 sm:$0xff] (!%p288_p2)   ;;  %v1344_v21 = vld [vmem:[%s1767_s3 + $0x48] ss:$16 sps:$4 sm:$0xff] (!%p288_p2)   ;;  %v1345_v22 = vld [vmem:[%s1767_s3 + $0x64] ss:$16 sps:$4 sm:$0xff] (!%p288_p2)   ;;  %624 = vmatprep.mubr.bf16.mxu0 (!%p288_p2), %v1455_v36  ;;  %667 = vmatprep.mubr.bf16.mxu1 (!%p288_p2), %v1455_v36 }
   0xa   : > { %v1347_v23 = vld [vmem:[%s1767_s3 + $0x6c] ss:$16 sps:$4 sm:$0xff] (!%p288_p2)   ;;  %v1349_v24 = vld [vmem:[%s1767_s3 + $0x60] ss:$16 sps:$4 sm:$0xff] (!%p288_p2)   ;;  %v1350_v25 = vld [vmem:[%s1767_s3 + $0x68] ss:$16 sps:$4 sm:$0xff] (!%p288_p2)  }
   0xb   : > { %595 = vmatpush1.bf16.msra.mxu0 (!%p288_p2), %v1337_v16  ;;  %638 = vmatpush1.bf16.msra.mxu1 (!%p288_p2), %v1338_v17  ;;  %v1351_v26 = vld [vmem:[%s1767_s3 + $0x84] ss:$16 sps:$4 sm:$0xff] (!%p288_p2)   ;;  %v1353_v27 = vld [vmem:[%s1767_s3 + $0x8c] ss:$16 sps:$4 sm:$0xff] (!%p288_p2)   ;;  %v1355_v28 = vld [vmem:[%s1767_s3 + $0x80] ss:$16 sps:$4 sm:$0xff] (!%p288_p2)  }
   0xc   : > { %596 = vmatprep.subr.bf16.mxu0 (!%p288_p2), %v1339_v18  ;;  %639 = vmatprep.subr.bf16.mxu1 (!%p288_p2), %v1341_v19  ;;  %v1356_v29 = vld [vmem:[%s1767_s3 + $0x88] ss:$16 sps:$4 sm:$0xff] (!%p288_p2)   ;;  %v1357_v30 = vld [vmem:[%s1767_s3 + $0xa4] ss:$16 sps:$4 sm:$0xff] (!%p288_p2)   ;;  %v1359_v31 = vld [vmem:[%s1767_s3 + $0xac] ss:$16 sps:$4 sm:$0xff] (!%p288_p2)  }
   0xd   : > { %s1775_s10 = smov (!%p323_p3, %s1184_s10), 1  ;;  %v1361_v32 = vld [vmem:[%s1767_s3 + $0xa0] ss:$16 sps:$4 sm:$0xff]   ;;  %v1362_v33 = vld [vmem:[%s1767_s3 + $0xa8] ss:$16 sps:$4 sm:$0xff]  }
   0xe   : > { %s1272_s11 = sshll.u32 %s1775_s10, 4  ;;  %v1363_v34 = vld [vmem:[%s1767_s3 + $0xc4] ss:$16 sps:$4 sm:$0xff]   ;;  %v1365_v35 = vld [vmem:[%s1767_s3 + $0xcc] ss:$16 sps:$4 sm:$0xff]  }
   0xf   : > { %s327_s14 = scalar_lea.vmem %s1764_s0, %s1272_s11  ;;  %597 = vmatpush1.bf16.msra.mxu0 %v1343_v20  ;;  %640 = vmatpush1.bf16.msra.mxu1 %v1344_v21  ;;  %v1367_v37 = vld [vmem:[%s1767_s3 + $0xc0] ss:$16 sps:$4 sm:$0xff]   ;;  %v1368_v38 = vld [vmem:[%s1767_s3 + $0xc8] ss:$16 sps:$4 sm:$0xff]   ;;  %v1369_v39 = vld [vmem:[%s1767_s3 + $0xe4] ss:$16 sps:$4 sm:$0xff]   ;;  %s332_s13 = scalar_lea.vmem %s1773_s9, %s1272_s11 }
  0x10   : > { %v1522_v0 = vld [vmem:[%s327_s14] sm:$0xff]  ;;  %v1524_v1 = vld [vmem:[%s327_s14 + $0x8] sm:$0xff]  ;;  %598 = vmatprep.subr.bf16.mxu0 %v1345_v22  ;;  %641 = vmatprep.subr.bf16.mxu1 %v1347_v23  ;;  %v1383_v6 = vld [vmem:[%s1769_s5 + $0x50] sm:$0xff]  }
  0x11   : > { %338 = vadd.xlane.f32.xlu0 %v1522_v0  ;;  %v1371_v40 = vld [vmem:[%s1767_s3 + $0xec] ss:$16 sps:$4 sm:$0xff]   ;;  %v1373_v41 = vld [vmem:[%s1767_s3 + $0xe0] ss:$16 sps:$4 sm:$0xff]   ;;  %v1374_v42 = vld [vmem:[%s1767_s3 + $0xe8] ss:$16 sps:$4 sm:$0xff]  }
  0x12   : > { %v1193_v51 = vld [vmem:[%s1765_s1] ss:$0 sm:$0xff]  ;;  %v1379_v2 = vld [vmem:[%s1769_s5 + $0x48] sm:$0xff]   ;;  %v1384_v7 = vld [vmem:[%s1769_s5 + $0xd0] sm:$0xff]  }
  0x13   : > { %599 = vmatpush1.bf16.msra.mxu0 %v1349_v24  ;;  %642 = vmatpush1.bf16.msra.mxu1 %v1350_v25  ;;  %v1194_v55 = vld [vmem:[%s1766_s2] ss:$0 sm:$0xff]  ;;  %v1380_v3 = vld [vmem:[%s1769_s5 + $0xc8] sm:$0xff]   ;;  %v1399_v22 = vld [vmem:[%s1769_s5 + $0x70] sm:$0xff]  }
  0x14   : > { %600 = vmatprep.subr.bf16.mxu0 %v1351_v26  ;;  %643 = vmatprep.subr.bf16.mxu1 %v1353_v27  ;;  %v1375_v60 = vld [vmem:[%s1769_s5 + $0x40] sm:$0xff]   ;;  %v1381_v4 = vld [vmem:[%s1769_s5 + $0x8] sm:$0xff]   ;;  %v1400_v23 = vld [vmem:[%s1769_s5 + $0xf0] sm:$0xff]  }
  0x15   : > { %340 = vadd.xlane.f32.xlu0 %v1524_v1  ;;  %v1376_v61 = vld [vmem:[%s1769_s5 + $0xc0] sm:$0xff]   ;;  %v1382_v5 = vld [vmem:[%s1769_s5 + $0x88] sm:$0xff]   ;;  %v1401_v24 = vld [vmem:[%s1769_s5 + $0x30] sm:$0xff]  }
  0x16   : > { %v1377_v62 = vld [vmem:[%s1769_s5] sm:$0xff]   ;;  %v1395_v18 = vld [vmem:[%s1769_s5 + $0x68] sm:$0xff]   ;;  %v1402_v25 = vld [vmem:[%s1769_s5 + $0xb0] sm:$0xff]  }
  0x17   : > { %601 = vmatpush1.bf16.msra.mxu0 %v1355_v28  ;;  %644 = vmatpush1.bf16.msra.mxu1 %v1356_v29  ;;  %v1378_v63 = vld [vmem:[%s1769_s5 + $0x80] sm:$0xff]   ;;  %v1396_v19 = vld [vmem:[%s1769_s5 + $0xe8] sm:$0xff]   ;;  %v1403_v26 = vld [vmem:[%s1769_s5 + $0x78] sm:$0xff]  }
  0x18   : > { %602 = vmatprep.subr.bf16.mxu0 %v1357_v30  ;;  %645 = vmatprep.subr.bf16.mxu1 %v1359_v31  ;;  %v1393_v16 = vld [vmem:[%s1769_s5 + $0x20] sm:$0xff]   ;;  %v1397_v20 = vld [vmem:[%s1769_s5 + $0x28] sm:$0xff]   ;;  %v1404_v27 = vld [vmem:[%s1769_s5 + $0xf8] sm:$0xff]   ;;  %v412_v30 = vlaneseq }
  0x19   : > { %v1394_v17 = vld [vmem:[%s1769_s5 + $0xa0] sm:$0xff]   ;;  %v1398_v21 = vld [vmem:[%s1769_s5 + $0xa8] sm:$0xff]   ;;  %v1405_v28 = vld [vmem:[%s1769_s5 + $0x38] sm:$0xff]  }
  0x1a   : > { %v1406_v29 = vld [vmem:[%s1769_s5 + $0xb8] sm:$0xff]   ;;  %v413_v31 = vshrl.u32 %v412_v30, 7 }
  0x1b   : > { %603 = vmatpush1.bf16.msra.mxu0 %v1361_v32  ;;  %646 = vmatpush1.bf16.msra.mxu1 %v1362_v33 }
  0x1c   : > { %604 = vmatprep.subr.bf16.mxu0 %v1363_v34  ;;  %647 = vmatprep.subr.bf16.mxu1 %v1365_v35  ;;  %v414_v32 = vsub.s32 0, %v413_v31  ;;  %v422_v33 = vsub.s32 2, %v413_v31  ;;  %v410_v34 = vld [vmem:[%s1768_s4] sm:$0xf]  ;;  %v418_v35 = vsub.s32 1, %v413_v31  ;;  %v426_v36 = vsub.s32 3, %v413_v31 }
  0x1f   : > { %605 = vmatpush1.bf16.msra.mxu0 %v1367_v37  ;;  %648 = vmatpush1.bf16.msra.mxu1 %v1368_v38  ;;  %v415_v37 = vrot.slane %v410_v34, %v414_v32  ;;  %v423_v38 = vrot.slane %v410_v34, %v422_v33 }
  0x20   : > { %606 = vmatprep.subr.bf16.mxu0 %v1369_v39  ;;  %649 = vmatprep.subr.bf16.mxu1 %v1371_v40  ;;  %v419_v39 = vrot.slane %v410_v34, %v418_v35  ;;  %v427_v40 = vrot.slane %v410_v34, %v426_v36 }
  0x23   : > { %607 = vmatpush1.bf16.msra.mxu0 %v1373_v41  ;;  %650 = vmatpush1.bf16.msra.mxu1 %v1374_v42 }
  0x24   : > { %1274 = vmatprep.subr.bf16.mxu0 %v1375_v60  ;;  %1296 = vmatprep.subr.bf16.mxu1 %v1376_v61 }
  0x9e   : > { %v339_v8 = vpop.xlane.xlu0 %338 }
  0x9f   : > { %v343_v9 = vmul.f32 0.0078125, %v339_v8  ;;  %v1385_v8 = vld [vmem:[%s1769_s5 + $0x10] sm:$0xff]  }
  0xa1   : > { %v1547_v10 = vsub.f32 %v1522_v0, %v343_v9  ;;  %v1386_v9 = vld [vmem:[%s1769_s5 + $0x90] sm:$0xff]  }
  0xa2   : > { %v341_v11 = vpop.xlane.xlu0 %340 }
  0xa3   : > { %v344_v12 = vmul.f32 0.0078125, %v341_v11  ;;  %v347_v13 = vmul.f32 %v1547_v10, %v1547_v10  ;;  %v1388_v11 = vld [vmem:[%s1769_s5 + $0xd8] sm:$0xff]  }
  0xa5   : > { %v1552_v14 = vsub.f32 %v1524_v1, %v344_v12  ;;  %349 = vadd.xlane.f32.xlu1 %v347_v13  ;;  %v1389_v12 = vld [vmem:[%s1769_s5 + $0x18] sm:$0xff]  }
  0xa6   : > { %v1390_v13 = vld [vmem:[%s1769_s5 + $0x98] sm:$0xff]  }
  0xa7   : > { %v348_v15 = vmul.f32 %v1552_v14, %v1552_v14 }
  0xa9   : > { %351 = vadd.xlane.f32.xlu1 %v348_v15  ;;  %v1392_v15 = vld [vmem:[%s1769_s5 + $0xe0] sm:$0xff]  }
 0x132   : > { %v350_v43 = vpop.xlane.xlu1 %349 }
 0x133   : > { %v353_v44 = vmul.f32 0.0078125, %v350_v43 }
 0x135   : > { %v355_v45 = vadd.f32 1e-05, %v353_v44 }
 0x136   : > { %v352_v46 = vpop.xlane.xlu1 %351 }
 0x137   : > { %1407 = vrsqrt.f32 %v355_v45  ;;  %v354_v47 = vmul.f32 0.0078125, %v352_v46 }
 0x139   : > { %v356_v48 = vadd.f32 1e-05, %v354_v47 }
 0x13b   : > { %1409 = vrsqrt.f32 %v356_v48 }
 0x141   : > { %v1408_v49 = vpop.eup %1407 }
 0x142   : > { %v359_v50 = vmul.f32 %v1408_v49, %v1547_v10  ;;  %v1387_v10 = vld [vmem:[%s1769_s5 + $0x58] sm:$0xff]  }
 0x144   : > { %v367_v54 = vmul.f32 %v1193_v51, %v359_v50 }
 0x145   : > { %v1410_v52 = vpop.eup %1409 }
 0x146   : > { %v360_v53 = vmul.f32 %v1410_v52, %v1552_v14  ;;  %v375_v57 = vadd.f32 %v1194_v55, %v367_v54  ;;  %v1391_v14 = vld [vmem:[%s1769_s5 + $0x60] sm:$0xff]  }
 0x148   : > { %v368_v56 = vmul.f32 %v1193_v51, %v360_v53 }
 0x14a   : > { %v376_v58 = vadd.f32 %v1194_v55, %v368_v56 }
 0x14c   : > { %v409_v59 = vpack.c.bf16 %v376_v58, %v375_v57 }
 0x14e   : > { %625 = vmatmul.mubr.bf16.vlgmr.msra.gmra.mrb[0].mxu0 %v409_v59  ;;  %668 = vmatmul.mubr.bf16.vlgmr.msra.gmra.mrb[0].mxu1 %v409_v59 }
 0x14f   : > { %1275 = vmatpush3.bf16.msra.mxu0 %v1377_v62  ;;  %1297 = vmatpush3.bf16.msra.mxu1 %v1378_v63 }
 0x150   : > { %1276 = vmatprep.subr.bf16.mxu0 %v1379_v2  ;;  %1298 = vmatprep.subr.bf16.mxu1 %v1380_v3 }
 0x153   : > { %1277 = vmatpush3.bf16.msra.mxu0 %v1381_v4  ;;  %1299 = vmatpush3.bf16.msra.mxu1 %v1382_v5 }
 0x154   : > { %1278 = vmatprep.subr.bf16.mxu0 %v1383_v6  ;;  %1300 = vmatprep.subr.bf16.mxu1 %v1384_v7 }
 0x157   : > { %1279 = vmatpush3.bf16.msra.mxu0 %v1385_v8  ;;  %1301 = vmatpush3.bf16.msra.mxu1 %v1386_v9 }
 0x158   : > { %1280 = vmatprep.subr.bf16.mxu0 %v1387_v10  ;;  %1302 = vmatprep.subr.bf16.mxu1 %v1388_v11 }
 0x15b   : > { %1281 = vmatpush3.bf16.msra.mxu0 %v1389_v12  ;;  %1303 = vmatpush3.bf16.msra.mxu1 %v1390_v13 }
 0x15c   : > { %1282 = vmatprep.subr.bf16.mxu0 %v1391_v14  ;;  %1304 = vmatprep.subr.bf16.mxu1 %v1392_v15 }
 0x15f   : > { %1283 = vmatpush3.bf16.msra.mxu0 %v1393_v16  ;;  %1305 = vmatpush3.bf16.msra.mxu1 %v1394_v17 }
 0x160   : > { %1284 = vmatprep.subr.bf16.mxu0 %v1395_v18  ;;  %1306 = vmatprep.subr.bf16.mxu1 %v1396_v19 }
 0x163   : > { %1285 = vmatpush3.bf16.msra.mxu0 %v1397_v20  ;;  %1307 = vmatpush3.bf16.msra.mxu1 %v1398_v21 }
 0x164   : > { %1286 = vmatprep.subr.bf16.mxu0 %v1399_v22  ;;  %1308 = vmatprep.subr.bf16.mxu1 %v1400_v23 }
 0x167   : > { %1287 = vmatpush3.bf16.msra.mxu0 %v1401_v24  ;;  %1309 = vmatpush3.bf16.msra.mxu1 %v1402_v25 }
 0x168   : > { %1288 = vmatprep.subr.bf16.mxu0 %v1403_v26  ;;  %1310 = vmatprep.subr.bf16.mxu1 %v1404_v27 }
 0x16b   : > { %1289 = vmatpush3.bf16.msra.mxu0 %v1405_v28  ;;  %1311 = vmatpush3.bf16.msra.mxu1 %v1406_v29 }
 0x221   : > { %v626_v41 = vpop.f32.mrb[0].mxu0  ;;  %v669_v42 = vpop.f32.mrb[0].mxu1 }
 0x222   : > { %v627_v43 = vadd.f32 %v626_v41, %v415_v37  ;;  %v670_v44 = vadd.f32 %v669_v42, %v423_v38  ;;  %v628_v45 = vpop.f32.mrb[1].mxu0  ;;  %v671_v46 = vpop.f32.mrb[1].mxu1  ;;  %v1235_v41 = vld [vmem:[%s1770_s6] ss:$0 sm:$0xff] }
 0x223   : > { %v629_v47 = vadd.f32 %v628_v45, %v419_v39  ;;  %v1741_v48 = vadd.f32 %v671_v46, %v427_v40  ;;  %v630_v49 = vpop.f32.mrb[2].mxu0  ;;  %v673_v50 = vpop.f32.mrb[2].mxu1 }
 0x224   : > { %v1227_v51 = vmul.f32 -1.442695, %v627_v43  ;;  %v1229_v52 = vmul.f32 -1.442695, %v670_v44  ;;  %v631_v53 = vadd.f32 %v630_v49, %v415_v37  ;;  %v674_v54 = vadd.f32 %v673_v50, %v423_v38  ;;  %v632_v55 = vpop.f32.mrb[3].mxu0  ;;  %v675_v56 = vpop.f32.mrb[3].mxu1 }
 0x225   : > { %v1228_v57 = vmul.f32 -1.442695, %v629_v47  ;;  %v1230_v58 = vmul.f32 -1.442695, %v1741_v48  ;;  %v633_v59 = vadd.f32 %v632_v55, %v419_v39  ;;  %v676_v60 = vadd.f32 %v675_v56, %v427_v40 }
 0x226   : > { %1411 = vpow2.f32 %v1227_v51  ;;  %v1231_v61 = vmul.f32 -1.442695, %v631_v53  ;;  %v1233_v62 = vmul.f32 -1.442695, %v674_v54 }
 0x227   : > { %1413 = vpow2.f32 %v1229_v52  ;;  %v1232_v63 = vmul.f32 -1.442695, %v633_v59  ;;  %v1234_v2 = vmul.f32 -1.442695, %v676_v60 }
 0x228   : > { %1415 = vpow2.f32 %v1228_v57 }
 0x229   : > { %1417 = vpow2.f32 %v1230_v58 }
 0x22a   : > { %1419 = vpow2.f32 %v1231_v61 }
 0x22b   : > { %1421 = vpow2.f32 %v1233_v62 }
 0x22c   : > { %1423 = vpow2.f32 %v1232_v63 }
 0x22d   : > { %1425 = vpow2.f32 %v1234_v2 }
 0x230   : > { %v1412_v3 = vpop.eup %1411 }
 0x231   : > { %v1414_v4 = vpop.eup %1413  ;;  %v702_v5 = vadd.f32 1.0, %v1412_v3 }
 0x232   : > { %v1416_v6 = vpop.eup %1415  ;;  %v704_v7 = vadd.f32 1.0, %v1414_v4 }
 0x233   : > { %v1418_v8 = vpop.eup %1417  ;;  %1427 = vrcp.f32 %v702_v5  ;;  %v703_v9 = vadd.f32 1.0, %v1416_v6 }
 0x234   : > { %v1420_v10 = vpop.eup %1419  ;;  %1429 = vrcp.f32 %v704_v7  ;;  %v705_v11 = vadd.f32 1.0, %v1418_v8 }
 0x235   : > { %v1422_v12 = vpop.eup %1421  ;;  %1431 = vrcp.f32 %v703_v9  ;;  %v706_v13 = vadd.f32 1.0, %v1420_v10 }
 0x236   : > { %v1424_v14 = vpop.eup %1423  ;;  %1433 = vrcp.f32 %v705_v11  ;;  %v708_v15 = vadd.f32 1.0, %v1422_v12  ;;  %v1268_v11 = vld [vmem:[%s1771_s7] ss:$0 sm:$0xff] }
 0x237   : > { %v1426_v16 = vpop.eup %1425  ;;  %1435 = vrcp.f32 %v706_v13  ;;  %v707_v17 = vadd.f32 1.0, %v1424_v14  ;;  %v1269_v14 = vld [vmem:[%s1772_s8] ss:$0 sm:$0xff] }
 0x238   : > { %1437 = vrcp.f32 %v708_v15  ;;  %v709_v18 = vadd.f32 1.0, %v1426_v16 }
 0x239   : > { %1439 = vrcp.f32 %v707_v17 }
 0x23a   : > { %1441 = vrcp.f32 %v709_v18 }
 0x23d   : > { %v1428_v19 = vpop.eup %1427 }
 0x23e   : > { %v1430_v20 = vpop.eup %1429  ;;  %v726_v25 = vmul.f32 %v1428_v19, %v627_v43 }
 0x23f   : > { %v1432_v21 = vpop.eup %1431  ;;  %v728_v28 = vmul.f32 %v1430_v20, %v670_v44 }
 0x240   : > { %v1434_v22 = vpop.eup %1433  ;;  %v727_v31 = vmul.f32 %v1432_v21, %v629_v47 }
 0x241   : > { %v1436_v23 = vpop.eup %1435  ;;  %v729_v34 = vmul.f32 %v1434_v22, %v1741_v48 }
 0x242   : > { %v1438_v24 = vpop.eup %1437  ;;  %v730_v26 = vmul.f32 %v1436_v23, %v631_v53 }
 0x243   : > { %v1440_v27 = vpop.eup %1439  ;;  %v732_v29 = vmul.f32 %v1438_v24, %v674_v54 }
 0x244   : > { %v1442_v30 = vpop.eup %1441  ;;  %v798_v32 = vpack.c.bf16 %v730_v26, %v726_v25  ;;  %v731_v33 = vmul.f32 %v1440_v27, %v633_v59 }
 0x245   : > { %v800_v35 = vpack.c.bf16 %v732_v29, %v728_v28  ;;  %v733_v36 = vmul.f32 %v1442_v30, %v676_v60 }
 0x246   : > { %v799_v37 = vpack.c.bf16 %v731_v33, %v727_v31 }
 0x247   : > { %v801_v38 = vpack.c.bf16 %v733_v36, %v729_v34 }
 0x248   : > { %1033 = vmatprep.mubr.bf16.mxu0 %v799_v37 }
 0x249   : > { %1074 = vmatprep.mubr.bf16.mxu1 %v801_v38  ;;  %1034 = vmatmul.mubr.bf16.vlgmr.msra.gmra.mrb[4].mxu0 %v798_v32 }
 0x24a   : > { %1075 = vmatmul.mubr.bf16.vlgmr.msra.gmra.mrb[4].mxu1 %v800_v35 }
 0x31c   : > { %v1290_v39 = vpop.f32.mrb[4].mxu0 }
 0x31d   : > { %v1312_v40 = vpop.f32.mrb[4].mxu1  ;;  %v1291_v42 = vpop.f32.mrb[5].mxu0 }
 0x31e   : > { %v1292_v43 = vadd.f32 %v1291_v42, %v1290_v39  ;;  %v1313_v44 = vpop.f32.mrb[5].mxu1  ;;  %v1293_v45 = vpop.f32.mrb[6].mxu0 }
 0x31f   : > { %v1314_v46 = vadd.f32 %v1313_v44, %v1312_v40  ;;  %v1315_v47 = vpop.f32.mrb[6].mxu1  ;;  %v1294_v48 = vpop.f32.mrb[7].mxu0 }
 0x320   : > { %v1036_v49 = vadd.f32 %v1292_v43, %v1235_v41  ;;  %v1295_v50 = vadd.f32 %v1294_v48, %v1293_v45  ;;  %v1316_v51 = vpop.f32.mrb[7].mxu1 }
 0x321   : > { %v1317_v52 = vadd.f32 %v1316_v51, %v1315_v47 }
 0x322   : > { %v1077_v53 = vadd.f32 %v1314_v46, %v1036_v49  ;;  %v1039_v54 = vadd.f32 %v1295_v50, %v1235_v41 }
 0x324   : > { %v1083_v55 = vmul.f32 0.5, %v1077_v53  ;;  %v1080_v56 = vadd.f32 %v1317_v52, %v1039_v54 }
 0x326   : > { %v1084_v57 = vmul.f32 0.5, %v1080_v56  ;;  %v1085_v58 = vadd.f32 %v1083_v55, %v1522_v0 }
 0x328   : > { %1089 = vadd.xlane.f32.xlu0 %v1085_v58  ;;  %v1086_v59 = vadd.f32 %v1084_v57, %v1524_v1 }
 0x32a   : > { %1091 = vadd.xlane.f32.xlu1 %v1086_v59 }
 0x3b5   : > { %v1090_v60 = vpop.xlane.xlu0 %1089 }
 0x3b6   : > { %v1093_v61 = vmul.f32 0.0078125, %v1090_v60 }
 0x3b7   : > { %v1092_v62 = vpop.xlane.xlu1 %1091 }
 0x3b8   : > { %v1095_v63 = vsub.f32 %v1085_v58, %v1093_v61  ;;  %v1094_v2 = vmul.f32 0.0078125, %v1092_v62 }
 0x3ba   : > { %v1096_v3 = vsub.f32 %v1086_v59, %v1094_v2  ;;  %v1097_v4 = vmul.f32 %v1095_v63, %v1095_v63 }
 0x3bc   : > { %1099 = vadd.xlane.f32.xlu0 %v1097_v4  ;;  %v1098_v5 = vmul.f32 %v1096_v3, %v1096_v3 }
 0x3be   : > { %1101 = vadd.xlane.f32.xlu1 %v1098_v5 }
 0x449   : > { %v1100_v6 = vpop.xlane.xlu0 %1099 }
 0x44a   : > { %v1103_v7 = vmul.f32 0.0078125, %v1100_v6 }
 0x44b   : > { %v1102_v8 = vpop.xlane.xlu1 %1101 }
 0x44c   : > { %v1105_v9 = vadd.f32 1e-05, %v1103_v7  ;;  %v1104_v0 = vmul.f32 0.0078125, %v1102_v8 }
 0x44e   : > { %1443 = vrsqrt.f32 %v1105_v9  ;;  %v1106_v10 = vadd.f32 1e-05, %v1104_v0 }
 0x450   : > { %1445 = vrsqrt.f32 %v1106_v10 }
 0x458   : > { %v1444_v1 = vpop.eup %1443 }
 0x459   : > { %v1109_v12 = vmul.f32 %v1444_v1, %v1095_v63 }
 0x45a   : > { %v1446_v13 = vpop.eup %1445 }
 0x45b   : > { %v1117_v15 = vmul.f32 %v1268_v11, %v1109_v12  ;;  %v1110_v16 = vmul.f32 %v1446_v13, %v1096_v3 }
 0x45d   : > { %v1125_v17 = vadd.f32 %v1269_v14, %v1117_v15  ;;  %v1118_v18 = vmul.f32 %v1268_v11, %v1110_v16 }
 0x45f   : > { %1127 = vst [vmem:[%s332_s13] sm:$0xff] %v1125_v17  ;;  %v1126_v19 = vadd.f32 %v1269_v14, %v1118_v18 }
 0x461   : > { %1128 = vst [vmem:[%s332_s13 + $0x8] sm:$0xff] %v1126_v19 }
 0x462 PF: > { %s19_s30 = sadd.s32 1, %s1453_s30  }
 0x463   : > { %p16_p4 = scmp.ge.s32.totalorder %s19_s30, 4  }
 0x465   :  { %18 = sbr.rel (!%p16_p4) target bundleno = 1 (0x1), region = 86 }

// kernel: encoder_forward.8
= control target key start
LH: loop header
LB: loop body
LE: loop exit
PB: predicated region body
PF: predicated region fallthrough
CT: control target
= control target key end

     0   :  { %12 = vsyncpa [#allocation3], 0  ;;  %s1683_s0 = inlined_call_operand.vmem [shape: f32[2,16,128], index: 0, kind: input, shape index: {}]   ;;  %s1684_s1 = inlined_call_operand.vmem [shape: f32[1,128], index: 1, kind: input, shape index: {}]   ;;  %s1685_s2 = inlined_call_operand.vmem [shape: f32[1,128], index: 2, kind: input, shape index: {}]   ;;  %s1686_s3 = inlined_call_operand.hbm [shape: bf16[128,512], index: 3, kind: input, shape index: {}]   ;;  %s1687_s4 = inlined_call_operand.vmem [shape: f32[1,512], index: 4, kind: input, shape index: {}]   ;;  %s1688_s5 = inlined_call_operand.hbm [shape: bf16[512,128], index: 5, kind: input, shape index: {}]   ;;  %s1689_s6 = inlined_call_operand.vmem [shape: f32[1,128], index: 6, kind: input, shape index: {}]   ;;  %s1690_s7 = inlined_call_operand.vmem [shape: f32[2,16,128], index: 7, kind: output, shape index: {}]  }
   0x1   :  { %13 = vsyncpa [#allocation5], 0  ;;  %s1547_s24 = smov 0  }
   0x2 LB: > { %s1500_s25 = smov [#allocation2]   ;;  %s1553_s27 = sadd.s32 4294967295, %s1498_s24   ;;  %s1498_s24 = sphi %s1547_s24, %s19_s24  }
   0x3   : > { %s220_s26 = sshll.u32 %s1500_s25, 4  ;;  %p1144_p0 = scmp.ge.s32.totalorder %s1498_s24, 1  ;;  %s221_s26 = int_to_ptr.vmem [resolvable:$true] %s220_s26 }
   0x4   : > { %p202_p1 = scmp.lt.s32.totalorder %s1498_s24, 3  ;;  %p1691_p3 = scmp.eq.s32.totalorder %s1553_s27, 0 }
   0x5   : > { %s1501_s29 = smov [#allocation4]   ;;  %s1428_s11 = scalar_lea.hbm %s1686_s3, 4096 }
   0x6   : > { %p1557_p2 = pnand %p1144_p0, %p202_p1  ;;  %s236_s30 = sshll.u32 %s1501_s29, 4  ;;  %s1570_s30 = int_to_ptr.vmem [resolvable:$true] %s236_s30 }
   0x7   : > { %p1429_p6 = scmp.ne.s32.totalorder %s1686_s3, %s1428_s11  ;;  %p1435_p10 = scmp.lt.u32.totalorder %s1428_s11, %s1686_s3 }
   0x8   : > { %s1693_s28 = scalar_select %p1557_p2, 1, 0 }
   0x9   : > { %p1286_p4 = pneg %p1557_p2 }
   0xb   : > { %p1566_p5 = pnand %p1691_p3, %p1286_p4 }
   0xd   : > { %p1430_p7 = pneg %p1566_p5 }
   0xf   : > { %p1431_p8 = pnand %p1430_p7, %p1429_p6 }
  0x11   : > { %p1432_p9 = pneg %p1431_p8 }
  0x13   : > { %p1437_p11 = pnand %p1435_p10, %p1432_p9 }
  0x15   : > { %1440 = shalt.err (!%p1437_p11)
}
  0x16   : > { %s1441_s16 = scalar_lea.vmem %s221_s26, 4096  ;;  %p1449_p1 = scmp.lt.s32.totalorder %s221_s26, %s221_s26 }
  0x17   : > { %p1442_p12 = scmp.ne.s32.totalorder %s221_s26, %s1441_s16  ;;  %p1450_p4 = scmp.lt.s32.totalorder %s1441_s16, %s1441_s16 }
  0x19   : > { %p1444_p13 = pnand %p1442_p12, %p1430_p7  ;;  %p1451_p3 = por %p1450_p4, %p1449_p1 }
  0x1b   : > { %p1445_p0 = pneg %p1444_p13 }
  0x1d   : > { %p1452_p2 = pnand %p1451_p3, %p1445_p0 }
  0x1f   : > { %1455 = shalt.err (!%p1452_p2)
}
  0x20   : > { %s1502_s17 = smov 256   ;;  %s1503_s18 = smov 16  }
  0x21   : > { %1289 = dma.hbm_to_vmem [thread:$0]  (!%p1566_p5), %s1686_s3, 4096, %s221_s26, [#allocation3], %s1502_s17, %s1502_s17, %s1503_s18  }
  0x22   : > { %s1456_s23 = scalar_lea.hbm %s1688_s5, 4096 }
  0x23   : > { %p1457_p6 = scmp.ne.s32.totalorder %s1688_s5, %s1456_s23  ;;  %p1463_p8 = scmp.lt.u32.totalorder %s1456_s23, %s1688_s5 }
  0x25   : > { %p1459_p2 = pnand %p1457_p6, %p1430_p7 }
  0x27   : > { %p1460_p3 = pneg %p1459_p2 }
  0x29   : > { %p1465_p9 = pnand %p1463_p8, %p1460_p3 }
  0x2b   : > { %1468 = shalt.err (!%p1465_p9)
}
  0x2c   : > { %s1469_s26 = scalar_lea.vmem %s1570_s30, 4096  ;;  %p1477_p13 = scmp.lt.s32.totalorder %s1570_s30, %s1570_s30 }
  0x2d   : > { %p1470_p10 = scmp.ne.s32.totalorder %s1570_s30, %s1469_s26  ;;  %p1478_p0 = scmp.lt.s32.totalorder %s1469_s26, %s1469_s26 }
  0x2f   : > { %p1472_p11 = pnand %p1470_p10, %p1430_p7  ;;  %p1479_p1 = por %p1478_p0, %p1477_p13 }
  0x31   : > { %p1473_p12 = pneg %p1472_p11 }
  0x33   : > { %p1480_p4 = pnand %p1479_p1, %p1473_p12 }
  0x35   : > { %1483 = shalt.err (!%p1480_p4)
}
  0x36   : > { %s1504_s11 = smov 64   ;;  %s1505_s12 = smov 4  }
  0x37   : > { %1292 = dma.hbm_to_vmem [thread:$0]  (!%p1566_p5), %s1688_s5, 4096, %s1570_s30, [#allocation5], %s1504_s11, %s1504_s11, %s1505_s12  }
  0x38   : > { %p1695_p6 = scmp.ne.s32.totalorder %s1693_s28, 0 }
  0x39   : > { %p1696_p7 = scmp.eq.s32.totalorder (!%p1695_p6), %s1553_s27, 0 }
  0x3a   : > { %263 = sbr.rel (%p1695_p6) target bundleno = 870 (0x366), region = 48 }
  0x41   : > { %1489 = dma.done.wait (%p1696_p7), [#allocation3], 4096   ;;  %p1697_p2 = pmov %p1696_p7 }
  0x43   : > { %1491 = vsyncadd (%p1697_p2), [#allocation3], 4294963200  ;;  %p1698_p3 = pmov %p1697_p2 }
  0x44   : > { %p1699_p8 = pmov %p1697_p2 }
  0x45   : > { %1493 = dma.done.wait (%p1698_p3), [#allocation5], 4096  }
  0x46   : > { %1495 = vsyncadd (%p1699_p8), [#allocation5], 4294963200  ;;  %p299_p9 = scmp.lt.s32.totalorder %s1553_s27, 1  ;;  %v1312_v2 = vld [vmem:[#allocation2 + $0x4] ss:$16 sps:$4 sm:$0xff]   ;;  %v1506_v36 = vmov 0  }
  0x47   : > { %v1314_v3 = vld [vmem:[#allocation2 + $0xc] ss:$16 sps:$4 sm:$0xff]   ;;  %v1316_v4 = vld [vmem:[#allocation2] ss:$16 sps:$4 sm:$0xff]   ;;  %v1317_v5 = vld [vmem:[#allocation2 + $0x8] ss:$16 sps:$4 sm:$0xff]   ;;  %568 = vmatprep.subr.bf16.mxu0 %v1312_v2  ;;  %600 = vmatprep.mubr.bf16.mxu0 %v1506_v36 }
  0x48   : > { %s1701_s27 = smov (!%p299_p9, %s1553_s27), 1  ;;  %v1318_v6 = vld [vmem:[#allocation2 + $0x24] ss:$16 sps:$4 sm:$0xff]   ;;  %v1320_v7 = vld [vmem:[#allocation2 + $0x2c] ss:$16 sps:$4 sm:$0xff]   ;;  %611 = vmatprep.subr.bf16.mxu1 %v1314_v3  ;;  %569 = vmatpush1.bf16.msra.mxu0 %v1316_v4 }
  0x49   : > { %s1232_s28 = sshll.u32 %s1701_s27, 4  ;;  %612 = vmatpush1.bf16.msra.mxu1 %v1317_v5  ;;  %570 = vmatprep.subr.bf16.mxu0 %v1318_v6  ;;  %v1322_v16 = vld [vmem:[#allocation2 + $0x20] ss:$16 sps:$4 sm:$0xff]   ;;  %v1323_v17 = vld [vmem:[#allocation2 + $0x28] ss:$16 sps:$4 sm:$0xff]  }
  0x4a   : > { %s303_s15 = scalar_lea.vmem %s1683_s0, %s1232_s28  ;;  %613 = vmatprep.subr.bf16.mxu1 %v1320_v7  ;;  %v1324_v18 = vld [vmem:[#allocation2 + $0x44] ss:$16 sps:$4 sm:$0xff]   ;;  %v1326_v19 = vld [vmem:[#allocation2 + $0x4c] ss:$16 sps:$4 sm:$0xff]   ;;  %v1328_v20 = vld [vmem:[#allocation2 + $0x40] ss:$16 sps:$4 sm:$0xff]   ;;  %643 = vmatprep.mubr.bf16.mxu1 %v1506_v36  ;;  %s308_s9 = scalar_lea.vmem %s1690_s7, %s1232_s28 }
  0x4b   : > { %v1639_v0 = vld [vmem:[%s303_s15] sm:$0xff]  ;;  %v1641_v1 = vld [vmem:[%s303_s15 + $0x8] sm:$0xff]  ;;  %v1368_v6 = vld [vmem:[#allocation4 + $0x50] sm:$0xff]  }
  0x4c   : > { %314 = vadd.xlane.f32.xlu0 %v1639_v0  ;;  %571 = vmatpush1.bf16.msra.mxu0 %v1322_v16  ;;  %v1329_v21 = vld [vmem:[#allocation2 + $0x48] ss:$16 sps:$4 sm:$0xff]   ;;  %v1330_v22 = vld [vmem:[#allocation2 + $0x64] ss:$16 sps:$4 sm:$0xff]   ;;  %v1332_v23 = vld [vmem:[#allocation2 + $0x6c] ss:$16 sps:$4 sm:$0xff]  }
  0x4d   : > { %614 = vmatpush1.bf16.msra.mxu1 %v1323_v17  ;;  %572 = vmatprep.subr.bf16.mxu0 %v1324_v18  ;;  %v1334_v24 = vld [vmem:[#allocation2 + $0x60] ss:$16 sps:$4 sm:$0xff]   ;;  %v1335_v25 = vld [vmem:[#allocation2 + $0x68] ss:$16 sps:$4 sm:$0xff]   ;;  %v1336_v26 = vld [vmem:[#allocation2 + $0x84] ss:$16 sps:$4 sm:$0xff]  }
  0x4e   : > { %615 = vmatprep.subr.bf16.mxu1 %v1326_v19  ;;  %v1338_v27 = vld [vmem:[#allocation2 + $0x8c] ss:$16 sps:$4 sm:$0xff]   ;;  %v1340_v28 = vld [vmem:[#allocation2 + $0x80] ss:$16 sps:$4 sm:$0xff]   ;;  %v1341_v29 = vld [vmem:[#allocation2 + $0x88] ss:$16 sps:$4 sm:$0xff]  }
  0x4f   : > { %v1342_v30 = vld [vmem:[#allocation2 + $0xa4] ss:$16 sps:$4 sm:$0xff]   ;;  %v1344_v31 = vld [vmem:[#allocation2 + $0xac] ss:$16 sps:$4 sm:$0xff]   ;;  %v1346_v32 = vld [vmem:[#allocation2 + $0xa0] ss:$16 sps:$4 sm:$0xff]  }
  0x50   : > { %316 = vadd.xlane.f32.xlu0 %v1641_v1  ;;  %573 = vmatpush1.bf16.msra.mxu0 %v1328_v20  ;;  %v1347_v33 = vld [vmem:[#allocation2 + $0xa8] ss:$16 sps:$4 sm:$0xff]   ;;  %v1348_v34 = vld [vmem:[#allocation2 + $0xc4] ss:$16 sps:$4 sm:$0xff]   ;;  %v1350_v35 = vld [vmem:[#allocation2 + $0xcc] ss:$16 sps:$4 sm:$0xff]  }
  0x51   : > { %616 = vmatpush1.bf16.msra.mxu1 %v1329_v21  ;;  %574 = vmatprep.subr.bf16.mxu0 %v1330_v22  ;;  %v1352_v37 = vld [vmem:[#allocation2 + $0xc0] ss:$16 sps:$4 sm:$0xff]   ;;  %v1353_v38 = vld [vmem:[#allocation2 + $0xc8] ss:$16 sps:$4 sm:$0xff]   ;;  %v1354_v39 = vld [vmem:[#allocation2 + $0xe4] ss:$16 sps:$4 sm:$0xff]  }
  0x52   : > { %617 = vmatprep.subr.bf16.mxu1 %v1332_v23  ;;  %v1356_v40 = vld [vmem:[#allocation2 + $0xec] ss:$16 sps:$4 sm:$0xff]   ;;  %v1358_v41 = vld [vmem:[#allocation2 + $0xe0] ss:$16 sps:$4 sm:$0xff]   ;;  %v1359_v42 = vld [vmem:[#allocation2 + $0xe8] ss:$16 sps:$4 sm:$0xff]  }
  0x53   : > { %v1155_v51 = vld [vmem:[%s1684_s1] ss:$0 sm:$0xff]  ;;  %v1364_v2 = vld [vmem:[#allocation4 + $0x48] sm:$0xff]   ;;  %v1369_v7 = vld [vmem:[#allocation4 + $0xd0] sm:$0xff]  }
  0x54   : > { %575 = vmatpush1.bf16.msra.mxu0 %v1334_v24  ;;  %v1156_v55 = vld [vmem:[%s1685_s2] ss:$0 sm:$0xff]  ;;  %v1365_v3 = vld [vmem:[#allocation4 + $0xc8] sm:$0xff]   ;;  %v1384_v22 = vld [vmem:[#allocation4 + $0x70] sm:$0xff]  }
  0x55   : > { %618 = vmatpush1.bf16.msra.mxu1 %v1335_v25  ;;  %576 = vmatprep.subr.bf16.mxu0 %v1336_v26  ;;  %v1360_v60 = vld [vmem:[#allocation4 + $0x40] sm:$0xff]   ;;  %v1366_v4 = vld [vmem:[#allocation4 + $0x8] sm:$0xff]   ;;  %v1385_v23 = vld [vmem:[#allocation4 + $0xf0] sm:$0xff]  }
  0x56   : > { %619 = vmatprep.subr.bf16.mxu1 %v1338_v27  ;;  %v1361_v61 = vld [vmem:[#allocation4 + $0xc0] sm:$0xff]   ;;  %v1367_v5 = vld [vmem:[#allocation4 + $0x88] sm:$0xff]   ;;  %v1386_v24 = vld [vmem:[#allocation4 + $0x30] sm:$0xff]  }
  0x57   : > { %v1362_v62 = vld [vmem:[#allocation4] sm:$0xff]   ;;  %v1380_v18 = vld [vmem:[#allocation4 + $0x68] sm:$0xff]   ;;  %v1387_v25 = vld [vmem:[#allocation4 + $0xb0] sm:$0xff]  }
  0x58   : > { %577 = vmatpush1.bf16.msra.mxu0 %v1340_v28  ;;  %v1363_v63 = vld [vmem:[#allocation4 + $0x80] sm:$0xff]   ;;  %v1381_v19 = vld [vmem:[#allocation4 + $0xe8] sm:$0xff]   ;;  %v1388_v26 = vld [vmem:[#allocation4 + $0x78] sm:$0xff]  }
  0x59   : > { %620 = vmatpush1.bf16.msra.mxu1 %v1341_v29  ;;  %578 = vmatprep.subr.bf16.mxu0 %v1342_v30  ;;  %v1378_v16 = vld [vmem:[#allocation4 + $0x20] sm:$0xff]   ;;  %v1382_v20 = vld [vmem:[#allocation4 + $0x28] sm:$0xff]   ;;  %v1389_v27 = vld [vmem:[#allocation4 + $0xf8] sm:$0xff]   ;;  %v388_v30 = vlaneseq }
  0x5a   : > { %621 = vmatprep.subr.bf16.mxu1 %v1344_v31  ;;  %v1379_v17 = vld [vmem:[#allocation4 + $0xa0] sm:$0xff]   ;;  %v1383_v21 = vld [vmem:[#allocation4 + $0xa8] sm:$0xff]   ;;  %v1390_v28 = vld [vmem:[#allocation4 + $0x38] sm:$0xff]  }
  0x5b   : > { %v1391_v29 = vld [vmem:[#allocation4 + $0xb8] sm:$0xff]   ;;  %v389_v31 = vshrl.u32 %v388_v30, 7 }
  0x5c   : > { %579 = vmatpush1.bf16.msra.mxu0 %v1346_v32 }
  0x5d   : > { %622 = vmatpush1.bf16.msra.mxu1 %v1347_v33  ;;  %580 = vmatprep.subr.bf16.mxu0 %v1348_v34  ;;  %v390_v32 = vsub.s32 0, %v389_v31  ;;  %v398_v33 = vsub.s32 2, %v389_v31  ;;  %v386_v34 = vld [vmem:[%s1687_s4] sm:$0xf]  ;;  %v402_v36 = vsub.s32 3, %v389_v31 }
  0x5e   : > { %623 = vmatprep.subr.bf16.mxu1 %v1350_v35  ;;  %v394_v35 = vsub.s32 1, %v389_v31 }
  0x60   : > { %581 = vmatpush1.bf16.msra.mxu0 %v1352_v37  ;;  %v391_v37 = vrot.slane %v386_v34, %v390_v32 }
  0x61   : > { %624 = vmatpush1.bf16.msra.mxu1 %v1353_v38  ;;  %582 = vmatprep.subr.bf16.mxu0 %v1354_v39  ;;  %v399_v38 = vrot.slane %v386_v34, %v398_v33  ;;  %v395_v39 = vrot.slane %v386_v34, %v394_v35 }
  0x62   : > { %625 = vmatprep.subr.bf16.mxu1 %v1356_v40  ;;  %v403_v40 = vrot.slane %v386_v34, %v402_v36 }
  0x64   : > { %583 = vmatpush1.bf16.msra.mxu0 %v1358_v41 }
  0x65   : > { %626 = vmatpush1.bf16.msra.mxu1 %v1359_v42  ;;  %1234 = vmatprep.subr.bf16.mxu0 %v1360_v60 }
  0x66   : > { %1256 = vmatprep.subr.bf16.mxu1 %v1361_v61 }
  0xd9   : > { %v315_v8 = vpop.xlane.xlu0 %314 }
  0xda   : > { %v319_v9 = vmul.f32 0.0078125, %v315_v8  ;;  %v1370_v8 = vld [vmem:[#allocation4 + $0x10] sm:$0xff]  }
  0xdc   : > { %v1646_v10 = vsub.f32 %v1639_v0, %v319_v9  ;;  %v1371_v9 = vld [vmem:[#allocation4 + $0x90] sm:$0xff]  }
  0xdd   : > { %v317_v11 = vpop.xlane.xlu0 %316 }
  0xde   : > { %v320_v12 = vmul.f32 0.0078125, %v317_v11  ;;  %v323_v13 = vmul.f32 %v1646_v10, %v1646_v10  ;;  %v1373_v11 = vld [vmem:[#allocation4 + $0xd8] sm:$0xff]  }
  0xe0   : > { %v1651_v14 = vsub.f32 %v1641_v1, %v320_v12  ;;  %325 = vadd.xlane.f32.xlu1 %v323_v13  ;;  %v1374_v12 = vld [vmem:[#allocation4 + $0x18] sm:$0xff]  }
  0xe1   : > { %v1375_v13 = vld [vmem:[#allocation4 + $0x98] sm:$0xff]  }
  0xe2   : > { %v324_v15 = vmul.f32 %v1651_v14, %v1651_v14 }
  0xe4   : > { %327 = vadd.xlane.f32.xlu1 %v324_v15  ;;  %v1377_v15 = vld [vmem:[#allocation4 + $0xe0] sm:$0xff]  }
 0x16d   : > { %v326_v43 = vpop.xlane.xlu1 %325 }
 0x16e   : > { %v329_v44 = vmul.f32 0.0078125, %v326_v43 }
 0x170   : > { %v331_v45 = vadd.f32 1e-05, %v329_v44 }
 0x171   : > { %v328_v46 = vpop.xlane.xlu1 %327 }
 0x172   : > { %1392 = vrsqrt.f32 %v331_v45  ;;  %v330_v47 = vmul.f32 0.0078125, %v328_v46 }
 0x174   : > { %v332_v48 = vadd.f32 1e-05, %v330_v47 }
 0x176   : > { %1394 = vrsqrt.f32 %v332_v48 }
 0x17c   : > { %v1393_v49 = vpop.eup %1392 }
 0x17d   : > { %v335_v50 = vmul.f32 %v1393_v49, %v1646_v10  ;;  %v1372_v10 = vld [vmem:[#allocation4 + $0x58] sm:$0xff]  }
 0x17f   : > { %v343_v54 = vmul.f32 %v1155_v51, %v335_v50 }
 0x180   : > { %v1395_v52 = vpop.eup %1394 }
 0x181   : > { %v336_v53 = vmul.f32 %v1395_v52, %v1651_v14  ;;  %v351_v57 = vadd.f32 %v1156_v55, %v343_v54  ;;  %v1376_v14 = vld [vmem:[#allocation4 + $0x60] sm:$0xff]  }
 0x183   : > { %v344_v56 = vmul.f32 %v1155_v51, %v336_v53 }
 0x185   : > { %v352_v58 = vadd.f32 %v1156_v55, %v344_v56 }
 0x187   : > { %v385_v59 = vpack.c.bf16 %v352_v58, %v351_v57 }
 0x189   : > { %601 = vmatmul.mubr.bf16.vlgmr.msra.gmra.mrb[0].mxu0 %v385_v59  ;;  %644 = vmatmul.mubr.bf16.vlgmr.msra.gmra.mrb[0].mxu1 %v385_v59 }
 0x18a   : > { %1235 = vmatpush3.bf16.msra.mxu0 %v1362_v62  ;;  %1257 = vmatpush3.bf16.msra.mxu1 %v1363_v63 }
 0x18b   : > { %1236 = vmatprep.subr.bf16.mxu0 %v1364_v2  ;;  %1258 = vmatprep.subr.bf16.mxu1 %v1365_v3 }
 0x18e   : > { %1237 = vmatpush3.bf16.msra.mxu0 %v1366_v4  ;;  %1259 = vmatpush3.bf16.msra.mxu1 %v1367_v5 }
 0x18f   : > { %1238 = vmatprep.subr.bf16.mxu0 %v1368_v6  ;;  %1260 = vmatprep.subr.bf16.mxu1 %v1369_v7 }
 0x192   : > { %1239 = vmatpush3.bf16.msra.mxu0 %v1370_v8  ;;  %1261 = vmatpush3.bf16.msra.mxu1 %v1371_v9 }
 0x193   : > { %1240 = vmatprep.subr.bf16.mxu0 %v1372_v10  ;;  %1262 = vmatprep.subr.bf16.mxu1 %v1373_v11 }
 0x196   : > { %1241 = vmatpush3.bf16.msra.mxu0 %v1374_v12  ;;  %1263 = vmatpush3.bf16.msra.mxu1 %v1375_v13 }
 0x197   : > { %1242 = vmatprep.subr.bf16.mxu0 %v1376_v14  ;;  %1264 = vmatprep.subr.bf16.mxu1 %v1377_v15 }
 0x19a   : > { %1243 = vmatpush3.bf16.msra.mxu0 %v1378_v16  ;;  %1265 = vmatpush3.bf16.msra.mxu1 %v1379_v17 }
 0x19b   : > { %1244 = vmatprep.subr.bf16.mxu0 %v1380_v18  ;;  %1266 = vmatprep.subr.bf16.mxu1 %v1381_v19 }
 0x19e   : > { %1245 = vmatpush3.bf16.msra.mxu0 %v1382_v20  ;;  %1267 = vmatpush3.bf16.msra.mxu1 %v1383_v21 }
 0x19f   : > { %1246 = vmatprep.subr.bf16.mxu0 %v1384_v22  ;;  %1268 = vmatprep.subr.bf16.mxu1 %v1385_v23 }
 0x1a2   : > { %1247 = vmatpush3.bf16.msra.mxu0 %v1386_v24  ;;  %1269 = vmatpush3.bf16.msra.mxu1 %v1387_v25 }
 0x1a3   : > { %1248 = vmatprep.subr.bf16.mxu0 %v1388_v26  ;;  %1270 = vmatprep.subr.bf16.mxu1 %v1389_v27 }
 0x1a6   : > { %1249 = vmatpush3.bf16.msra.mxu0 %v1390_v28  ;;  %1271 = vmatpush3.bf16.msra.mxu1 %v1391_v29 }
 0x25c   : > { %v602_v41 = vpop.f32.mrb[0].mxu0  ;;  %v645_v42 = vpop.f32.mrb[0].mxu1 }
 0x25d   : > { %v603_v43 = vadd.f32 %v602_v41, %v391_v37  ;;  %v646_v44 = vadd.f32 %v645_v42, %v399_v38  ;;  %v604_v45 = vpop.f32.mrb[1].mxu0  ;;  %v647_v46 = vpop.f32.mrb[1].mxu1  ;;  %v1197_v41 = vld [vmem:[%s1689_s6] ss:$0 sm:$0xff] }
 0x25e   : > { %v605_v47 = vadd.f32 %v604_v45, %v395_v39  ;;  %v1666_v48 = vadd.f32 %v647_v46, %v403_v40  ;;  %v606_v49 = vpop.f32.mrb[2].mxu0  ;;  %v649_v50 = vpop.f32.mrb[2].mxu1 }
 0x25f   : > { %v1189_v51 = vmul.f32 -1.442695, %v603_v43  ;;  %v1191_v52 = vmul.f32 -1.442695, %v646_v44  ;;  %v607_v53 = vadd.f32 %v606_v49, %v391_v37  ;;  %v650_v54 = vadd.f32 %v649_v50, %v399_v38  ;;  %v608_v55 = vpop.f32.mrb[3].mxu0  ;;  %v651_v56 = vpop.f32.mrb[3].mxu1 }
 0x260   : > { %v1190_v57 = vmul.f32 -1.442695, %v605_v47  ;;  %v1192_v58 = vmul.f32 -1.442695, %v1666_v48  ;;  %v609_v59 = vadd.f32 %v608_v55, %v395_v39  ;;  %v652_v60 = vadd.f32 %v651_v56, %v403_v40 }
 0x261   : > { %1396 = vpow2.f32 %v1189_v51  ;;  %v1193_v61 = vmul.f32 -1.442695, %v607_v53  ;;  %v1195_v62 = vmul.f32 -1.442695, %v650_v54 }
 0x262   : > { %1398 = vpow2.f32 %v1191_v52  ;;  %v1194_v63 = vmul.f32 -1.442695, %v609_v59  ;;  %v1196_v2 = vmul.f32 -1.442695, %v652_v60 }
 0x263   : > { %1400 = vpow2.f32 %v1190_v57 }
 0x264   : > { %1402 = vpow2.f32 %v1192_v58 }
 0x265   : > { %1404 = vpow2.f32 %v1193_v61 }
 0x266   : > { %1406 = vpow2.f32 %v1195_v62 }
 0x267   : > { %1408 = vpow2.f32 %v1194_v63 }
 0x268   : > { %1410 = vpow2.f32 %v1196_v2 }
 0x26b   : > { %v1397_v3 = vpop.eup %1396 }
 0x26c   : > { %v1399_v4 = vpop.eup %1398  ;;  %v678_v5 = vadd.f32 1.0, %v1397_v3 }
 0x26d   : > { %v1401_v6 = vpop.eup %1400  ;;  %v680_v7 = vadd.f32 1.0, %v1399_v4 }
 0x26e   : > { %v1403_v8 = vpop.eup %1402  ;;  %1412 = vrcp.f32 %v678_v5  ;;  %v679_v9 = vadd.f32 1.0, %v1401_v6 }
 0x26f   : > { %v1405_v10 = vpop.eup %1404  ;;  %1414 = vrcp.f32 %v680_v7  ;;  %v681_v11 = vadd.f32 1.0, %v1403_v8 }
 0x270   : > { %v1407_v12 = vpop.eup %1406  ;;  %1416 = vrcp.f32 %v679_v9  ;;  %v682_v13 = vadd.f32 1.0, %v1405_v10 }
 0x271   : > { %v1409_v14 = vpop.eup %1408  ;;  %1418 = vrcp.f32 %v681_v11  ;;  %v684_v15 = vadd.f32 1.0, %v1407_v12 }
 0x272   : > { %v1411_v16 = vpop.eup %1410  ;;  %1420 = vrcp.f32 %v682_v13  ;;  %v683_v17 = vadd.f32 1.0, %v1409_v14 }
 0x273   : > { %1422 = vrcp.f32 %v684_v15  ;;  %v685_v18 = vadd.f32 1.0, %v1411_v16 }
 0x274   : > { %1424 = vrcp.f32 %v683_v17 }
 0x275   : > { %1426 = vrcp.f32 %v685_v18 }
 0x278   : > { %v1413_v19 = vpop.eup %1412 }
 0x279   : > { %v1415_v20 = vpop.eup %1414  ;;  %v702_v25 = vmul.f32 %v1413_v19, %v603_v43 }
 0x27a   : > { %v1417_v21 = vpop.eup %1416  ;;  %v704_v28 = vmul.f32 %v1415_v20, %v646_v44 }
 0x27b   : > { %v1419_v22 = vpop.eup %1418  ;;  %v703_v31 = vmul.f32 %v1417_v21, %v605_v47 }
 0x27c   : > { %v1421_v23 = vpop.eup %1420  ;;  %v705_v34 = vmul.f32 %v1419_v22, %v1666_v48 }
 0x27d   : > { %v1423_v24 = vpop.eup %1422  ;;  %v706_v26 = vmul.f32 %v1421_v23, %v607_v53 }
 0x27e   : > { %v1425_v27 = vpop.eup %1424  ;;  %v708_v29 = vmul.f32 %v1423_v24, %v650_v54 }
 0x27f   : > { %v1427_v30 = vpop.eup %1426  ;;  %v774_v32 = vpack.c.bf16 %v706_v26, %v702_v25  ;;  %v707_v33 = vmul.f32 %v1425_v27, %v609_v59 }
 0x280   : > { %v776_v35 = vpack.c.bf16 %v708_v29, %v704_v28  ;;  %v709_v36 = vmul.f32 %v1427_v30, %v652_v60 }
 0x281   : > { %v775_v37 = vpack.c.bf16 %v707_v33, %v703_v31 }
 0x282   : > { %v777_v38 = vpack.c.bf16 %v709_v36, %v705_v34 }
 0x283   : > { %1009 = vmatprep.mubr.bf16.mxu0 %v775_v37 }
 0x284   : > { %1050 = vmatprep.mubr.bf16.mxu1 %v777_v38  ;;  %1010 = vmatmul.mubr.bf16.vlgmr.msra.gmra.mrb[4].mxu0 %v774_v32 }
 0x285   : > { %1051 = vmatmul.mubr.bf16.vlgmr.msra.gmra.mrb[4].mxu1 %v776_v35 }
 0x357   : > { %v1250_v39 = vpop.f32.mrb[4].mxu0 }
 0x358   : > { %v1272_v40 = vpop.f32.mrb[4].mxu1  ;;  %v1251_v42 = vpop.f32.mrb[5].mxu0 }
 0x359   : > { %v1252_v43 = vadd.f32 %v1251_v42, %v1250_v39  ;;  %v1273_v44 = vpop.f32.mrb[5].mxu1  ;;  %v1253_v45 = vpop.f32.mrb[6].mxu0 }
 0x35a   : > { %v1274_v46 = vadd.f32 %v1273_v44, %v1272_v40  ;;  %v1275_v47 = vpop.f32.mrb[6].mxu1  ;;  %v1254_v48 = vpop.f32.mrb[7].mxu0 }
 0x35b   : > { %v1012_v49 = vadd.f32 %v1252_v43, %v1197_v41  ;;  %v1255_v50 = vadd.f32 %v1254_v48, %v1253_v45  ;;  %v1276_v51 = vpop.f32.mrb[7].mxu1 }
 0x35c   : > { %v1277_v52 = vadd.f32 %v1276_v51, %v1275_v47 }
 0x35d   : > { %v1053_v53 = vadd.f32 %v1274_v46, %v1012_v49  ;;  %v1015_v54 = vadd.f32 %v1255_v50, %v1197_v41 }
 0x35f   : > { %v1059_v55 = vmul.f32 0.5, %v1053_v53  ;;  %v1056_v56 = vadd.f32 %v1277_v52, %v1015_v54 }
 0x361   : > { %v1061_v57 = vadd.f32 %v1059_v55, %v1639_v0  ;;  %v1060_v58 = vmul.f32 0.5, %v1056_v56 }
 0x363   : > { %1063 = vst [vmem:[%s308_s9] sm:$0xff] %v1061_v57  ;;  %v1062_v59 = vadd.f32 %v1060_v58, %v1641_v1 }
 0x365   : > { %1064 = vst [vmem:[%s308_s9 + $0x8] sm:$0xff] %v1062_v59 }
 0x366 PF: > { %s19_s24 = sadd.s32 1, %s1498_s24  }
 0x367   : > { %p16_p5 = scmp.ge.s32.totalorder %s19_s24, 4  }
 0x369   :  { %18 = sbr.rel (!%p16_p5) target bundleno = 2 (0x2), region = 87 }
 0x370   :  { %1086 = vsyncpa [#allocation3], 1 }
 0x371   :  { %1088 = vsyncpa [#allocation3 + $0x1], 1 }
 0x372   :  { %1089 = vsyncpa [#allocation5], 1 }

// kernel: encoder_forward.12
= control target key start
LH: loop header
LB: loop body
LE: loop exit
PB: predicated region body
PF: predicated region fallthrough
CT: control target
= control target key end

     0   :  { %s1396_s24 = smov 0   ;;  %s1648_s0 = inlined_call_operand.vmem [shape: f32[2,16,128], index: 0, kind: input, shape index: {}]   ;;  %s1649_s1 = inlined_call_operand.vmem [shape: f32[1,128], index: 1, kind: input, shape index: {}]   ;;  %s1650_s2 = inlined_call_operand.vmem [shape: f32[1,128], index: 2, kind: input, shape index: {}]   ;;  %s1651_s3 = inlined_call_operand.vmem [shape: bf16[128,512], index: 3, kind: input, shape index: {}]   ;;  %s1652_s4 = inlined_call_operand.vmem [shape: f32[1,512], index: 4, kind: input, shape index: {}]   ;;  %s1653_s5 = inlined_call_operand.vmem [shape: bf16[512,128], index: 5, kind: input, shape index: {}]   ;;  %s1654_s6 = inlined_call_operand.vmem [shape: f32[1,128], index: 6, kind: input, shape index: {}]   ;;  %s1655_s7 = inlined_call_operand.vmem [shape: f32[2,16,128], index: 7, kind: output, shape index: {}]  }
   0x1 LB: > { %s1090_s25 = sadd.s32 4294967295, %s1353_s24   ;;  %p1094_p0 = scmp.ge.s32.totalorder %s1353_s24, 1  ;;  %s1353_s24 = sphi %s1396_s24, %s17_s24  }
   0x2   : > { %p237_p1 = scmp.lt.s32.totalorder %s1353_s24, 3 }
   0x4   : > { %p238_p2 = pnand %p1094_p0, %p237_p1 }
   0x5   : > { %p269_p3 = scmp.lt.s32.totalorder (!%p238_p2), %s1090_s25, 1  ;;  %v1231_v2 = vld [vmem:[%s1651_s3 + $0x4] ss:$16 sps:$4 sm:$0xff] (!%p238_p2)   ;;  %v1233_v3 = vld [vmem:[%s1651_s3 + $0xc] ss:$16 sps:$4 sm:$0xff] (!%p238_p2)   ;;  %v1355_v36 = vmov (!%p238_p2), 0  }
   0x6   : > { %241 = sbr.rel (%p238_p2) target bundleno = 811 (0x32b), region = 48  ;;  %v1235_v4 = vld [vmem:[%s1651_s3] ss:$16 sps:$4 sm:$0xff] (!%p238_p2)   ;;  %v1236_v5 = vld [vmem:[%s1651_s3 + $0x8] ss:$16 sps:$4 sm:$0xff] (!%p238_p2)   ;;  %538 = vmatprep.subr.bf16.mxu0 (!%p238_p2), %v1231_v2  ;;  %581 = vmatprep.subr.bf16.mxu1 (!%p238_p2), %v1233_v3 }
   0x7   : > { %v1237_v6 = vld [vmem:[%s1651_s3 + $0x24] ss:$16 sps:$4 sm:$0xff] (!%p238_p2)   ;;  %v1239_v7 = vld [vmem:[%s1651_s3 + $0x2c] ss:$16 sps:$4 sm:$0xff] (!%p238_p2)   ;;  %539 = vmatpush1.bf16.msra.mxu0 (!%p238_p2), %v1235_v4  ;;  %582 = vmatpush1.bf16.msra.mxu1 (!%p238_p2), %v1236_v5  ;;  %v1241_v16 = vld [vmem:[%s1651_s3 + $0x20] ss:$16 sps:$4 sm:$0xff] (!%p238_p2)  }
   0x8   : > { %540 = vmatprep.subr.bf16.mxu0 (!%p238_p2), %v1237_v6  ;;  %583 = vmatprep.subr.bf16.mxu1 (!%p238_p2), %v1239_v7  ;;  %v1242_v17 = vld [vmem:[%s1651_s3 + $0x28] ss:$16 sps:$4 sm:$0xff] (!%p238_p2)   ;;  %v1243_v18 = vld [vmem:[%s1651_s3 + $0x44] ss:$16 sps:$4 sm:$0xff] (!%p238_p2)   ;;  %v1245_v19 = vld [vmem:[%s1651_s3 + $0x4c] ss:$16 sps:$4 sm:$0xff] (!%p238_p2)  }
   0x9   : > { %v1247_v20 = vld [vmem:[%s1651_s3 + $0x40] ss:$16 sps:$4 sm:$0xff] (!%p238_p2)   ;;  %v1248_v21 = vld [vmem:[%s1651_s3 + $0x48] ss:$16 sps:$4 sm:$0xff] (!%p238_p2)   ;;  %v1249_v22 = vld [vmem:[%s1651_s3 + $0x64] ss:$16 sps:$4 sm:$0xff] (!%p238_p2)   ;;  %570 = vmatprep.mubr.bf16.mxu0 (!%p238_p2), %v1355_v36  ;;  %613 = vmatprep.mubr.bf16.mxu1 (!%p238_p2), %v1355_v36 }
   0xa   : > { %v1251_v23 = vld [vmem:[%s1651_s3 + $0x6c] ss:$16 sps:$4 sm:$0xff] (!%p238_p2)   ;;  %v1253_v24 = vld [vmem:[%s1651_s3 + $0x60] ss:$16 sps:$4 sm:$0xff] (!%p238_p2)   ;;  %v1254_v25 = vld [vmem:[%s1651_s3 + $0x68] ss:$16 sps:$4 sm:$0xff] (!%p238_p2)  }
   0xb   : > { %541 = vmatpush1.bf16.msra.mxu0 (!%p238_p2), %v1241_v16  ;;  %584 = vmatpush1.bf16.msra.mxu1 (!%p238_p2), %v1242_v17  ;;  %v1255_v26 = vld [vmem:[%s1651_s3 + $0x84] ss:$16 sps:$4 sm:$0xff] (!%p238_p2)   ;;  %v1257_v27 = vld [vmem:[%s1651_s3 + $0x8c] ss:$16 sps:$4 sm:$0xff] (!%p238_p2)   ;;  %v1259_v28 = vld [vmem:[%s1651_s3 + $0x80] ss:$16 sps:$4 sm:$0xff] (!%p238_p2)  }
   0xc   : > { %542 = vmatprep.subr.bf16.mxu0 (!%p238_p2), %v1243_v18  ;;  %585 = vmatprep.subr.bf16.mxu1 (!%p238_p2), %v1245_v19  ;;  %v1260_v29 = vld [vmem:[%s1651_s3 + $0x88] ss:$16 sps:$4 sm:$0xff] (!%p238_p2)   ;;  %v1261_v30 = vld [vmem:[%s1651_s3 + $0xa4] ss:$16 sps:$4 sm:$0xff] (!%p238_p2)   ;;  %v1263_v31 = vld [vmem:[%s1651_s3 + $0xac] ss:$16 sps:$4 sm:$0xff] (!%p238_p2)  }
   0xd   : > { %s1657_s25 = smov (!%p269_p3, %s1090_s25), 1  ;;  %v1265_v32 = vld [vmem:[%s1651_s3 + $0xa0] ss:$16 sps:$4 sm:$0xff]   ;;  %v1266_v33 = vld [vmem:[%s1651_s3 + $0xa8] ss:$16 sps:$4 sm:$0xff]  }
   0xe   : > { %s1176_s26 = sshll.u32 %s1657_s25, 4  ;;  %v1267_v34 = vld [vmem:[%s1651_s3 + $0xc4] ss:$16 sps:$4 sm:$0xff]   ;;  %v1269_v35 = vld [vmem:[%s1651_s3 + $0xcc] ss:$16 sps:$4 sm:$0xff]  }
   0xf   : > { %s273_s29 = scalar_lea.vmem %s1648_s0, %s1176_s26  ;;  %543 = vmatpush1.bf16.msra.mxu0 %v1247_v20  ;;  %586 = vmatpush1.bf16.msra.mxu1 %v1248_v21  ;;  %v1271_v37 = vld [vmem:[%s1651_s3 + $0xc0] ss:$16 sps:$4 sm:$0xff]   ;;  %v1272_v38 = vld [vmem:[%s1651_s3 + $0xc8] ss:$16 sps:$4 sm:$0xff]   ;;  %v1273_v39 = vld [vmem:[%s1651_s3 + $0xe4] ss:$16 sps:$4 sm:$0xff]   ;;  %s278_s28 = scalar_lea.vmem %s1655_s7, %s1176_s26 }
  0x10   : > { %v1412_v0 = vld [vmem:[%s273_s29] sm:$0xff]  ;;  %v1414_v1 = vld [vmem:[%s273_s29 + $0x8] sm:$0xff]  ;;  %544 = vmatprep.subr.bf16.mxu0 %v1249_v22  ;;  %587 = vmatprep.subr.bf16.mxu1 %v1251_v23  ;;  %v1287_v6 = vld [vmem:[%s1653_s5 + $0x50] sm:$0xff]  }
  0x11   : > { %284 = vadd.xlane.f32.xlu0 %v1412_v0  ;;  %v1275_v40 = vld [vmem:[%s1651_s3 + $0xec] ss:$16 sps:$4 sm:$0xff]   ;;  %v1277_v41 = vld [vmem:[%s1651_s3 + $0xe0] ss:$16 sps:$4 sm:$0xff]   ;;  %v1278_v42 = vld [vmem:[%s1651_s3 + $0xe8] ss:$16 sps:$4 sm:$0xff]  }
  0x12   : > { %v1099_v51 = vld [vmem:[%s1649_s1] ss:$0 sm:$0xff]  ;;  %v1283_v2 = vld [vmem:[%s1653_s5 + $0x48] sm:$0xff]   ;;  %v1288_v7 = vld [vmem:[%s1653_s5 + $0xd0] sm:$0xff]  }
  0x13   : > { %545 = vmatpush1.bf16.msra.mxu0 %v1253_v24  ;;  %588 = vmatpush1.bf16.msra.mxu1 %v1254_v25  ;;  %v1100_v55 = vld [vmem:[%s1650_s2] ss:$0 sm:$0xff]  ;;  %v1284_v3 = vld [vmem:[%s1653_s5 + $0xc8] sm:$0xff]   ;;  %v1303_v22 = vld [vmem:[%s1653_s5 + $0x70] sm:$0xff]  }
  0x14   : > { %546 = vmatprep.subr.bf16.mxu0 %v1255_v26  ;;  %589 = vmatprep.subr.bf16.mxu1 %v1257_v27  ;;  %v1279_v60 = vld [vmem:[%s1653_s5 + $0x40] sm:$0xff]   ;;  %v1285_v4 = vld [vmem:[%s1653_s5 + $0x8] sm:$0xff]   ;;  %v1304_v23 = vld [vmem:[%s1653_s5 + $0xf0] sm:$0xff]  }
  0x15   : > { %286 = vadd.xlane.f32.xlu0 %v1414_v1  ;;  %v1280_v61 = vld [vmem:[%s1653_s5 + $0xc0] sm:$0xff]   ;;  %v1286_v5 = vld [vmem:[%s1653_s5 + $0x88] sm:$0xff]   ;;  %v1305_v24 = vld [vmem:[%s1653_s5 + $0x30] sm:$0xff]  }
  0x16   : > { %v1281_v62 = vld [vmem:[%s1653_s5] sm:$0xff]   ;;  %v1299_v18 = vld [vmem:[%s1653_s5 + $0x68] sm:$0xff]   ;;  %v1306_v25 = vld [vmem:[%s1653_s5 + $0xb0] sm:$0xff]  }
  0x17   : > { %547 = vmatpush1.bf16.msra.mxu0 %v1259_v28  ;;  %590 = vmatpush1.bf16.msra.mxu1 %v1260_v29  ;;  %v1282_v63 = vld [vmem:[%s1653_s5 + $0x80] sm:$0xff]   ;;  %v1300_v19 = vld [vmem:[%s1653_s5 + $0xe8] sm:$0xff]   ;;  %v1307_v26 = vld [vmem:[%s1653_s5 + $0x78] sm:$0xff]  }
  0x18   : > { %548 = vmatprep.subr.bf16.mxu0 %v1261_v30  ;;  %591 = vmatprep.subr.bf16.mxu1 %v1263_v31  ;;  %v1297_v16 = vld [vmem:[%s1653_s5 + $0x20] sm:$0xff]   ;;  %v1301_v20 = vld [vmem:[%s1653_s5 + $0x28] sm:$0xff]   ;;  %v1308_v27 = vld [vmem:[%s1653_s5 + $0xf8] sm:$0xff]   ;;  %v358_v30 = vlaneseq }
  0x19   : > { %v1298_v17 = vld [vmem:[%s1653_s5 + $0xa0] sm:$0xff]   ;;  %v1302_v21 = vld [vmem:[%s1653_s5 + $0xa8] sm:$0xff]   ;;  %v1309_v28 = vld [vmem:[%s1653_s5 + $0x38] sm:$0xff]  }
  0x1a   : > { %v1310_v29 = vld [vmem:[%s1653_s5 + $0xb8] sm:$0xff]   ;;  %v359_v31 = vshrl.u32 %v358_v30, 7 }
  0x1b   : > { %549 = vmatpush1.bf16.msra.mxu0 %v1265_v32  ;;  %592 = vmatpush1.bf16.msra.mxu1 %v1266_v33 }
  0x1c   : > { %550 = vmatprep.subr.bf16.mxu0 %v1267_v34  ;;  %593 = vmatprep.subr.bf16.mxu1 %v1269_v35  ;;  %v360_v32 = vsub.s32 0, %v359_v31  ;;  %v368_v33 = vsub.s32 2, %v359_v31  ;;  %v356_v34 = vld [vmem:[%s1652_s4] sm:$0xf]  ;;  %v364_v35 = vsub.s32 1, %v359_v31  ;;  %v372_v36 = vsub.s32 3, %v359_v31 }
  0x1f   : > { %551 = vmatpush1.bf16.msra.mxu0 %v1271_v37  ;;  %594 = vmatpush1.bf16.msra.mxu1 %v1272_v38  ;;  %v361_v37 = vrot.slane %v356_v34, %v360_v32  ;;  %v369_v38 = vrot.slane %v356_v34, %v368_v33 }
  0x20   : > { %552 = vmatprep.subr.bf16.mxu0 %v1273_v39  ;;  %595 = vmatprep.subr.bf16.mxu1 %v1275_v40  ;;  %v365_v39 = vrot.slane %v356_v34, %v364_v35  ;;  %v373_v40 = vrot.slane %v356_v34, %v372_v36 }
  0x23   : > { %553 = vmatpush1.bf16.msra.mxu0 %v1277_v41  ;;  %596 = vmatpush1.bf16.msra.mxu1 %v1278_v42 }
  0x24   : > { %1178 = vmatprep.subr.bf16.mxu0 %v1279_v60  ;;  %1200 = vmatprep.subr.bf16.mxu1 %v1280_v61 }
  0x9e   : > { %v285_v8 = vpop.xlane.xlu0 %284 }
  0x9f   : > { %v289_v9 = vmul.f32 0.0078125, %v285_v8  ;;  %v1289_v8 = vld [vmem:[%s1653_s5 + $0x10] sm:$0xff]  }
  0xa1   : > { %v1437_v10 = vsub.f32 %v1412_v0, %v289_v9  ;;  %v1290_v9 = vld [vmem:[%s1653_s5 + $0x90] sm:$0xff]  }
  0xa2   : > { %v287_v11 = vpop.xlane.xlu0 %286 }
  0xa3   : > { %v290_v12 = vmul.f32 0.0078125, %v287_v11  ;;  %v293_v13 = vmul.f32 %v1437_v10, %v1437_v10  ;;  %v1292_v11 = vld [vmem:[%s1653_s5 + $0xd8] sm:$0xff]  }
  0xa5   : > { %v1442_v14 = vsub.f32 %v1414_v1, %v290_v12  ;;  %295 = vadd.xlane.f32.xlu1 %v293_v13  ;;  %v1293_v12 = vld [vmem:[%s1653_s5 + $0x18] sm:$0xff]  }
  0xa6   : > { %v1294_v13 = vld [vmem:[%s1653_s5 + $0x98] sm:$0xff]  }
  0xa7   : > { %v294_v15 = vmul.f32 %v1442_v14, %v1442_v14 }
  0xa9   : > { %297 = vadd.xlane.f32.xlu1 %v294_v15  ;;  %v1296_v15 = vld [vmem:[%s1653_s5 + $0xe0] sm:$0xff]  }
 0x132   : > { %v296_v43 = vpop.xlane.xlu1 %295 }
 0x133   : > { %v299_v44 = vmul.f32 0.0078125, %v296_v43 }
 0x135   : > { %v301_v45 = vadd.f32 1e-05, %v299_v44 }
 0x136   : > { %v298_v46 = vpop.xlane.xlu1 %297 }
 0x137   : > { %1311 = vrsqrt.f32 %v301_v45  ;;  %v300_v47 = vmul.f32 0.0078125, %v298_v46 }
 0x139   : > { %v302_v48 = vadd.f32 1e-05, %v300_v47 }
 0x13b   : > { %1313 = vrsqrt.f32 %v302_v48 }
 0x141   : > { %v1312_v49 = vpop.eup %1311 }
 0x142   : > { %v305_v50 = vmul.f32 %v1312_v49, %v1437_v10  ;;  %v1291_v10 = vld [vmem:[%s1653_s5 + $0x58] sm:$0xff]  }
 0x144   : > { %v313_v54 = vmul.f32 %v1099_v51, %v305_v50 }
 0x145   : > { %v1314_v52 = vpop.eup %1313 }
 0x146   : > { %v306_v53 = vmul.f32 %v1314_v52, %v1442_v14  ;;  %v321_v57 = vadd.f32 %v1100_v55, %v313_v54  ;;  %v1295_v14 = vld [vmem:[%s1653_s5 + $0x60] sm:$0xff]  }
 0x148   : > { %v314_v56 = vmul.f32 %v1099_v51, %v306_v53 }
 0x14a   : > { %v322_v58 = vadd.f32 %v1100_v55, %v314_v56 }
 0x14c   : > { %v355_v59 = vpack.c.bf16 %v322_v58, %v321_v57 }
 0x14e   : > { %571 = vmatmul.mubr.bf16.vlgmr.msra.gmra.mrb[0].mxu0 %v355_v59  ;;  %614 = vmatmul.mubr.bf16.vlgmr.msra.gmra.mrb[0].mxu1 %v355_v59 }
 0x14f   : > { %1179 = vmatpush3.bf16.msra.mxu0 %v1281_v62  ;;  %1201 = vmatpush3.bf16.msra.mxu1 %v1282_v63 }
 0x150   : > { %1180 = vmatprep.subr.bf16.mxu0 %v1283_v2  ;;  %1202 = vmatprep.subr.bf16.mxu1 %v1284_v3 }
 0x153   : > { %1181 = vmatpush3.bf16.msra.mxu0 %v1285_v4  ;;  %1203 = vmatpush3.bf16.msra.mxu1 %v1286_v5 }
 0x154   : > { %1182 = vmatprep.subr.bf16.mxu0 %v1287_v6  ;;  %1204 = vmatprep.subr.bf16.mxu1 %v1288_v7 }
 0x157   : > { %1183 = vmatpush3.bf16.msra.mxu0 %v1289_v8  ;;  %1205 = vmatpush3.bf16.msra.mxu1 %v1290_v9 }
 0x158   : > { %1184 = vmatprep.subr.bf16.mxu0 %v1291_v10  ;;  %1206 = vmatprep.subr.bf16.mxu1 %v1292_v11 }
 0x15b   : > { %1185 = vmatpush3.bf16.msra.mxu0 %v1293_v12  ;;  %1207 = vmatpush3.bf16.msra.mxu1 %v1294_v13 }
 0x15c   : > { %1186 = vmatprep.subr.bf16.mxu0 %v1295_v14  ;;  %1208 = vmatprep.subr.bf16.mxu1 %v1296_v15 }
 0x15f   : > { %1187 = vmatpush3.bf16.msra.mxu0 %v1297_v16  ;;  %1209 = vmatpush3.bf16.msra.mxu1 %v1298_v17 }
 0x160   : > { %1188 = vmatprep.subr.bf16.mxu0 %v1299_v18  ;;  %1210 = vmatprep.subr.bf16.mxu1 %v1300_v19 }
 0x163   : > { %1189 = vmatpush3.bf16.msra.mxu0 %v1301_v20  ;;  %1211 = vmatpush3.bf16.msra.mxu1 %v1302_v21 }
 0x164   : > { %1190 = vmatprep.subr.bf16.mxu0 %v1303_v22  ;;  %1212 = vmatprep.subr.bf16.mxu1 %v1304_v23 }
 0x167   : > { %1191 = vmatpush3.bf16.msra.mxu0 %v1305_v24  ;;  %1213 = vmatpush3.bf16.msra.mxu1 %v1306_v25 }
 0x168   : > { %1192 = vmatprep.subr.bf16.mxu0 %v1307_v26  ;;  %1214 = vmatprep.subr.bf16.mxu1 %v1308_v27 }
 0x16b   : > { %1193 = vmatpush3.bf16.msra.mxu0 %v1309_v28  ;;  %1215 = vmatpush3.bf16.msra.mxu1 %v1310_v29 }
 0x221   : > { %v572_v41 = vpop.f32.mrb[0].mxu0  ;;  %v615_v42 = vpop.f32.mrb[0].mxu1 }
 0x222   : > { %v573_v43 = vadd.f32 %v572_v41, %v361_v37  ;;  %v616_v44 = vadd.f32 %v615_v42, %v369_v38  ;;  %v574_v45 = vpop.f32.mrb[1].mxu0  ;;  %v617_v46 = vpop.f32.mrb[1].mxu1  ;;  %v1141_v41 = vld [vmem:[%s1654_s6] ss:$0 sm:$0xff] }
 0x223   : > { %v575_v47 = vadd.f32 %v574_v45, %v365_v39  ;;  %v1631_v48 = vadd.f32 %v617_v46, %v373_v40  ;;  %v576_v49 = vpop.f32.mrb[2].mxu0  ;;  %v619_v50 = vpop.f32.mrb[2].mxu1 }
 0x224   : > { %v1133_v51 = vmul.f32 -1.442695, %v573_v43  ;;  %v1135_v52 = vmul.f32 -1.442695, %v616_v44  ;;  %v577_v53 = vadd.f32 %v576_v49, %v361_v37  ;;  %v620_v54 = vadd.f32 %v619_v50, %v369_v38  ;;  %v578_v55 = vpop.f32.mrb[3].mxu0  ;;  %v621_v56 = vpop.f32.mrb[3].mxu1 }
 0x225   : > { %v1134_v57 = vmul.f32 -1.442695, %v575_v47  ;;  %v1136_v58 = vmul.f32 -1.442695, %v1631_v48  ;;  %v579_v59 = vadd.f32 %v578_v55, %v365_v39  ;;  %v622_v60 = vadd.f32 %v621_v56, %v373_v40 }
 0x226   : > { %1315 = vpow2.f32 %v1133_v51  ;;  %v1137_v61 = vmul.f32 -1.442695, %v577_v53  ;;  %v1139_v62 = vmul.f32 -1.442695, %v620_v54 }
 0x227   : > { %1317 = vpow2.f32 %v1135_v52  ;;  %v1138_v63 = vmul.f32 -1.442695, %v579_v59  ;;  %v1140_v2 = vmul.f32 -1.442695, %v622_v60 }
 0x228   : > { %1319 = vpow2.f32 %v1134_v57 }
 0x229   : > { %1321 = vpow2.f32 %v1136_v58 }
 0x22a   : > { %1323 = vpow2.f32 %v1137_v61 }
 0x22b   : > { %1325 = vpow2.f32 %v1139_v62 }
 0x22c   : > { %1327 = vpow2.f32 %v1138_v63 }
 0x22d   : > { %1329 = vpow2.f32 %v1140_v2 }
 0x230   : > { %v1316_v3 = vpop.eup %1315 }
 0x231   : > { %v1318_v4 = vpop.eup %1317  ;;  %v648_v5 = vadd.f32 1.0, %v1316_v3 }
 0x232   : > { %v1320_v6 = vpop.eup %1319  ;;  %v650_v7 = vadd.f32 1.0, %v1318_v4 }
 0x233   : > { %v1322_v8 = vpop.eup %1321  ;;  %1331 = vrcp.f32 %v648_v5  ;;  %v649_v9 = vadd.f32 1.0, %v1320_v6 }
 0x234   : > { %v1324_v10 = vpop.eup %1323  ;;  %1333 = vrcp.f32 %v650_v7  ;;  %v651_v11 = vadd.f32 1.0, %v1322_v8 }
 0x235   : > { %v1326_v12 = vpop.eup %1325  ;;  %1335 = vrcp.f32 %v649_v9  ;;  %v652_v13 = vadd.f32 1.0, %v1324_v10 }
 0x236   : > { %v1328_v14 = vpop.eup %1327  ;;  %1337 = vrcp.f32 %v651_v11  ;;  %v654_v15 = vadd.f32 1.0, %v1326_v12 }
 0x237   : > { %v1330_v16 = vpop.eup %1329  ;;  %1339 = vrcp.f32 %v652_v13  ;;  %v653_v17 = vadd.f32 1.0, %v1328_v14 }
 0x238   : > { %1341 = vrcp.f32 %v654_v15  ;;  %v655_v18 = vadd.f32 1.0, %v1330_v16 }
 0x239   : > { %1343 = vrcp.f32 %v653_v17 }
 0x23a   : > { %1345 = vrcp.f32 %v655_v18 }
 0x23d   : > { %v1332_v19 = vpop.eup %1331 }
 0x23e   : > { %v1334_v20 = vpop.eup %1333  ;;  %v672_v25 = vmul.f32 %v1332_v19, %v573_v43 }
 0x23f   : > { %v1336_v21 = vpop.eup %1335  ;;  %v674_v28 = vmul.f32 %v1334_v20, %v616_v44 }
 0x240   : > { %v1338_v22 = vpop.eup %1337  ;;  %v673_v31 = vmul.f32 %v1336_v21, %v575_v47 }
 0x241   : > { %v1340_v23 = vpop.eup %1339  ;;  %v675_v34 = vmul.f32 %v1338_v22, %v1631_v48 }
 0x242   : > { %v1342_v24 = vpop.eup %1341  ;;  %v676_v26 = vmul.f32 %v1340_v23, %v577_v53 }
 0x243   : > { %v1344_v27 = vpop.eup %1343  ;;  %v678_v29 = vmul.f32 %v1342_v24, %v620_v54 }
 0x244   : > { %v1346_v30 = vpop.eup %1345  ;;  %v744_v32 = vpack.c.bf16 %v676_v26, %v672_v25  ;;  %v677_v33 = vmul.f32 %v1344_v27, %v579_v59 }
 0x245   : > { %v746_v35 = vpack.c.bf16 %v678_v29, %v674_v28  ;;  %v679_v36 = vmul.f32 %v1346_v30, %v622_v60 }
 0x246   : > { %v745_v37 = vpack.c.bf16 %v677_v33, %v673_v31 }
 0x247   : > { %v747_v38 = vpack.c.bf16 %v679_v36, %v675_v34 }
 0x248   : > { %979 = vmatprep.mubr.bf16.mxu0 %v745_v37 }
 0x249   : > { %1020 = vmatprep.mubr.bf16.mxu1 %v747_v38  ;;  %980 = vmatmul.mubr.bf16.vlgmr.msra.gmra.mrb[4].mxu0 %v744_v32 }
 0x24a   : > { %1021 = vmatmul.mubr.bf16.vlgmr.msra.gmra.mrb[4].mxu1 %v746_v35 }
 0x31c   : > { %v1194_v39 = vpop.f32.mrb[4].mxu0 }
 0x31d   : > { %v1216_v40 = vpop.f32.mrb[4].mxu1  ;;  %v1195_v42 = vpop.f32.mrb[5].mxu0 }
 0x31e   : > { %v1196_v43 = vadd.f32 %v1195_v42, %v1194_v39  ;;  %v1217_v44 = vpop.f32.mrb[5].mxu1  ;;  %v1197_v45 = vpop.f32.mrb[6].mxu0 }
 0x31f   : > { %v1218_v46 = vadd.f32 %v1217_v44, %v1216_v40  ;;  %v1219_v47 = vpop.f32.mrb[6].mxu1  ;;  %v1198_v48 = vpop.f32.mrb[7].mxu0 }
 0x320   : > { %v982_v49 = vadd.f32 %v1196_v43, %v1141_v41  ;;  %v1199_v50 = vadd.f32 %v1198_v48, %v1197_v45  ;;  %v1220_v51 = vpop.f32.mrb[7].mxu1 }
 0x321   : > { %v1221_v52 = vadd.f32 %v1220_v51, %v1219_v47 }
 0x322   : > { %v1023_v53 = vadd.f32 %v1218_v46, %v982_v49  ;;  %v985_v54 = vadd.f32 %v1199_v50, %v1141_v41 }
 0x324   : > { %v1029_v55 = vmul.f32 0.5, %v1023_v53  ;;  %v1026_v56 = vadd.f32 %v1221_v52, %v985_v54 }
 0x326   : > { %v1031_v57 = vadd.f32 %v1029_v55, %v1412_v0  ;;  %v1030_v58 = vmul.f32 0.5, %v1026_v56 }
 0x328   : > { %1033 = vst [vmem:[%s278_s28] sm:$0xff] %v1031_v57  ;;  %v1032_v59 = vadd.f32 %v1030_v58, %v1414_v1 }
 0x32a   : > { %1034 = vst [vmem:[%s278_s28 + $0x8] sm:$0xff] %v1032_v59 }
 0x32b PF: > { %s17_s24 = sadd.s32 1, %s1353_s24  }
 0x32c   : > { %p14_p4 = scmp.ge.s32.totalorder %s17_s24, 4  }
 0x32e   :  { %16 = sbr.rel (!%p14_p4) target bundleno = 1 (0x1), region = 78 }

// kernel: encoder_forward.15
= control target key start
LH: loop header
LB: loop body
LE: loop exit
PB: predicated region body
PF: predicated region fallthrough
CT: control target
= control target key end

     0   :  { %14 = vsyncpa [#allocation3], 0  ;;  %s1955_s0 = inlined_call_operand.vmem [shape: f32[2,16,128], index: 0, kind: input, shape index: {}]   ;;  %s1956_s1 = inlined_call_operand.vmem [shape: f32[1,128], index: 1, kind: input, shape index: {}]   ;;  %s1957_s2 = inlined_call_operand.vmem [shape: f32[1,128], index: 2, kind: input, shape index: {}]   ;;  %s1958_s3 = inlined_call_operand.vmem [shape: bf16[128,512], index: 3, kind: input, shape index: {}]   ;;  %s1959_s4 = inlined_call_operand.vmem [shape: f32[1,512], index: 4, kind: input, shape index: {}]   ;;  %s1960_s5 = inlined_call_operand.vmem [shape: bf16[512,128], index: 5, kind: input, shape index: {}]   ;;  %s1961_s6 = inlined_call_operand.vmem [shape: f32[1,128], index: 6, kind: input, shape index: {}]   ;;  %s1962_s7 = inlined_call_operand.vmem [shape: f32[1,128], index: 7, kind: input, shape index: {}]   ;;  %s1963_s8 = inlined_call_operand.vmem [shape: f32[1,128], index: 8, kind: input, shape index: {}]   ;;  %s1964_s9 = inlined_call_operand.hbm [shape: f32[2,16,128], index: 9, kind: output, shape index: {}]  }
   0x1   :  { %16 = vsyncpa [#allocation3 + $0x1], 0  ;;  %s1618_s30 = smov 0   ;;  %s1620_s10 = smov 0  }
   0x2   :  { %s1622_s11 = smov 0   ;;  %s1624_s12 = smov 0  }
   0x3 LB: > { %s1639_s13 = sadd.s32 4294967295, %s1562_s12   ;;  %s1203_s14 = sadd.s32 4294967294, %s1562_s12   ;;  %s1562_s12 = sphi %s1624_s12, %s1970_s12   ;;  %s1558_s11 = sphi %s1622_s11, %s1969_s11   ;;  %s1554_s10 = sphi %s1620_s10, %s1968_s10   ;;  %s1550_s30 = sphi %s1618_s30, %s1967_s30  }
   0x4   : > { %s1643_s15 = sadd.s32 1, %s1562_s12   ;;  %s223_s16 = sadd.s32 1, %s1558_s11 }
   0x5   : > { %s220_s17 = ssub.s32 %s1562_s12, %s1643_s15  ;;  %p233_p0 = scmp.ne.s32.totalorder %s1558_s11, %s1554_s10 }
   0x6   : > { %p221_p1 = scmp.eq.s32.totalorder %s220_s17, 0  ;;  %p234_p2 = scmp.eq.s32.totalorder %s1639_s13, 1 }
   0x7   : > { %p239_p3 = scmp.ne.s32.totalorder %s1554_s10, %s1550_s30  ;;  %p240_p4 = scmp.eq.s32.totalorder %s1203_s14, 1 }
   0x8   : > { %s1654_s18 = scalar_select %p221_p1, %s1558_s11, %s223_s16  }
   0x9   : > { %p1656_p5 = por %p234_p2, %p233_p0  ;;  %p1660_p6 = por %p240_p4, %p239_p3 }
   0xa   : > { %p1206_p7 = scmp.ge.s32.totalorder %s1562_s12, 1  ;;  %p290_p8 = scmp.lt.s32.totalorder %s1562_s12, 3 }
   0xc   : > { %p291_p9 = pnand %p1206_p7, %p290_p8 }
   0xd   : > { %p326_p10 = scmp.lt.s32.totalorder (!%p291_p9), %s1639_s13, 1  ;;  %v1380_v2 = vld [vmem:[%s1958_s3 + $0x4] ss:$16 sps:$4 sm:$0xff] (!%p291_p9)   ;;  %v1382_v3 = vld [vmem:[%s1958_s3 + $0xc] ss:$16 sps:$4 sm:$0xff] (!%p291_p9)   ;;  %v1564_v36 = vmov (!%p291_p9), 0  }
   0xe   : > { %294 = sbr.rel (%p291_p9) target bundleno = 1145 (0x479), region = 56  ;;  %v1384_v4 = vld [vmem:[%s1958_s3] ss:$16 sps:$4 sm:$0xff] (!%p291_p9)   ;;  %v1385_v5 = vld [vmem:[%s1958_s3 + $0x8] ss:$16 sps:$4 sm:$0xff] (!%p291_p9)   ;;  %590 = vmatprep.subr.bf16.mxu0 (!%p291_p9), %v1380_v2  ;;  %633 = vmatprep.subr.bf16.mxu1 (!%p291_p9), %v1382_v3  ;;  %s323_s14 = sand.u32 (!%p291_p9), 1, %s1554_s10  }
   0xf   : > { %v1386_v6 = vld [vmem:[%s1958_s3 + $0x24] ss:$16 sps:$4 sm:$0xff] (!%p291_p9)   ;;  %v1388_v7 = vld [vmem:[%s1958_s3 + $0x2c] ss:$16 sps:$4 sm:$0xff] (!%p291_p9)   ;;  %591 = vmatpush1.bf16.msra.mxu0 (!%p291_p9), %v1384_v4  ;;  %634 = vmatpush1.bf16.msra.mxu1 (!%p291_p9), %v1385_v5  ;;  %v1390_v16 = vld [vmem:[%s1958_s3 + $0x20] ss:$16 sps:$4 sm:$0xff] (!%p291_p9)  }
  0x10   : > { %592 = vmatprep.subr.bf16.mxu0 (!%p291_p9), %v1386_v6  ;;  %635 = vmatprep.subr.bf16.mxu1 (!%p291_p9), %v1388_v7  ;;  %v1391_v17 = vld [vmem:[%s1958_s3 + $0x28] ss:$16 sps:$4 sm:$0xff] (!%p291_p9)   ;;  %v1392_v18 = vld [vmem:[%s1958_s3 + $0x44] ss:$16 sps:$4 sm:$0xff] (!%p291_p9)   ;;  %v1394_v19 = vld [vmem:[%s1958_s3 + $0x4c] ss:$16 sps:$4 sm:$0xff] (!%p291_p9)  }
  0x11   : > { %v1396_v20 = vld [vmem:[%s1958_s3 + $0x40] ss:$16 sps:$4 sm:$0xff] (!%p291_p9)   ;;  %v1397_v21 = vld [vmem:[%s1958_s3 + $0x48] ss:$16 sps:$4 sm:$0xff] (!%p291_p9)   ;;  %v1398_v22 = vld [vmem:[%s1958_s3 + $0x64] ss:$16 sps:$4 sm:$0xff] (!%p291_p9)   ;;  %622 = vmatprep.mubr.bf16.mxu0 (!%p291_p9), %v1564_v36  ;;  %665 = vmatprep.mubr.bf16.mxu1 (!%p291_p9), %v1564_v36 }
  0x12   : > { %v1400_v23 = vld [vmem:[%s1958_s3 + $0x6c] ss:$16 sps:$4 sm:$0xff] (!%p291_p9)   ;;  %v1402_v24 = vld [vmem:[%s1958_s3 + $0x60] ss:$16 sps:$4 sm:$0xff] (!%p291_p9)   ;;  %v1403_v25 = vld [vmem:[%s1958_s3 + $0x68] ss:$16 sps:$4 sm:$0xff] (!%p291_p9)  }
  0x13   : > { %593 = vmatpush1.bf16.msra.mxu0 (!%p291_p9), %v1390_v16  ;;  %636 = vmatpush1.bf16.msra.mxu1 (!%p291_p9), %v1391_v17  ;;  %v1404_v26 = vld [vmem:[%s1958_s3 + $0x84] ss:$16 sps:$4 sm:$0xff] (!%p291_p9)   ;;  %v1406_v27 = vld [vmem:[%s1958_s3 + $0x8c] ss:$16 sps:$4 sm:$0xff] (!%p291_p9)   ;;  %v1408_v28 = vld [vmem:[%s1958_s3 + $0x80] ss:$16 sps:$4 sm:$0xff] (!%p291_p9)  }
  0x14   : > { %594 = vmatprep.subr.bf16.mxu0 (!%p291_p9), %v1392_v18  ;;  %637 = vmatprep.subr.bf16.mxu1 (!%p291_p9), %v1394_v19  ;;  %v1409_v29 = vld [vmem:[%s1958_s3 + $0x88] ss:$16 sps:$4 sm:$0xff] (!%p291_p9)   ;;  %v1410_v30 = vld [vmem:[%s1958_s3 + $0xa4] ss:$16 sps:$4 sm:$0xff] (!%p291_p9)   ;;  %v1412_v31 = vld [vmem:[%s1958_s3 + $0xac] ss:$16 sps:$4 sm:$0xff] (!%p291_p9)  }
  0x15   : > { %s327_s21 = scalar_select %p326_p10, %s1639_s13, 1  ;;  %v1414_v32 = vld [vmem:[%s1958_s3 + $0xa0] ss:$16 sps:$4 sm:$0xff]   ;;  %v1415_v33 = vld [vmem:[%s1958_s3 + $0xa8] ss:$16 sps:$4 sm:$0xff]  }
  0x16   : > { %v1416_v34 = vld [vmem:[%s1958_s3 + $0xc4] ss:$16 sps:$4 sm:$0xff]   ;;  %v1418_v35 = vld [vmem:[%s1958_s3 + $0xcc] ss:$16 sps:$4 sm:$0xff]   ;;  %v1420_v37 = vld [vmem:[%s1958_s3 + $0xc0] ss:$16 sps:$4 sm:$0xff]  }
  0x17   : > { %s1292_s22 = sshll.u32 %s327_s21, 4  ;;  %595 = vmatpush1.bf16.msra.mxu0 %v1396_v20  ;;  %638 = vmatpush1.bf16.msra.mxu1 %v1397_v21  ;;  %v1421_v38 = vld [vmem:[%s1958_s3 + $0xc8] ss:$16 sps:$4 sm:$0xff]   ;;  %v1422_v39 = vld [vmem:[%s1958_s3 + $0xe4] ss:$16 sps:$4 sm:$0xff]   ;;  %s1207_s16 = sshll.u32 %s323_s14, 4 }
  0x18   : > { %s330_s25 = scalar_lea.vmem %s1955_s0, %s1292_s22  ;;  %596 = vmatprep.subr.bf16.mxu0 %v1398_v22  ;;  %639 = vmatprep.subr.bf16.mxu1 %v1400_v23  ;;  %v1424_v40 = vld [vmem:[%s1958_s3 + $0xec] ss:$16 sps:$4 sm:$0xff]   ;;  %v1426_v41 = vld [vmem:[%s1958_s3 + $0xe0] ss:$16 sps:$4 sm:$0xff]   ;;  %v1427_v42 = vld [vmem:[%s1958_s3 + $0xe8] ss:$16 sps:$4 sm:$0xff]  }
  0x19   : > { %v1671_v0 = vld [vmem:[%s330_s25] sm:$0xff]  ;;  %v1673_v1 = vld [vmem:[%s330_s25 + $0x8] sm:$0xff]  ;;  %v1436_v6 = vld [vmem:[%s1960_s5 + $0x50] sm:$0xff]   ;;  %s1293_s24 = sshll.u32 %s1639_s13, 8  ;;  %s325_s25 = scalar_lea.vmem [#allocation2], %s1207_s16 }
  0x1a   : > { %336 = vadd.xlane.f32.xlu0 %v1671_v0  ;;  %v1210_v51 = vld [vmem:[%s1956_s1] ss:$0 sm:$0xff]  ;;  %v1432_v2 = vld [vmem:[%s1960_s5 + $0x48] sm:$0xff]   ;;  %v1437_v7 = vld [vmem:[%s1960_s5 + $0xd0] sm:$0xff]   ;;  %s1141_s26 = sshll.u32 %s325_s25, 4  ;;  %s1910_s29 = scalar_lea.hbm %s1964_s9, %s1293_s24  ;;  %s1912_s26 = int_to_ptr.vmem [resolvable:$true] %s1141_s26 }
  0x1b   : > { %597 = vmatpush1.bf16.msra.mxu0 %v1402_v24  ;;  %640 = vmatpush1.bf16.msra.mxu1 %v1403_v25  ;;  %v1211_v55 = vld [vmem:[%s1957_s2] ss:$0 sm:$0xff]  ;;  %v1433_v3 = vld [vmem:[%s1960_s5 + $0xc8] sm:$0xff]   ;;  %v1452_v22 = vld [vmem:[%s1960_s5 + $0x70] sm:$0xff]   ;;  %s1914_s17 = scalar_lea.sflag [#allocation3], %s323_s14  ;;  %s1500_s13 = scalar_lea.vmem %s1912_s26, 256 }
  0x1c   : > { %598 = vmatprep.subr.bf16.mxu0 %v1404_v26  ;;  %641 = vmatprep.subr.bf16.mxu1 %v1406_v27  ;;  %v1428_v60 = vld [vmem:[%s1960_s5 + $0x40] sm:$0xff]   ;;  %v1434_v4 = vld [vmem:[%s1960_s5 + $0x8] sm:$0xff]   ;;  %v1453_v23 = vld [vmem:[%s1960_s5 + $0xf0] sm:$0xff]   ;;  %p1501_p11 = scmp.ne.s32.totalorder %s1912_s26, %s1500_s13  ;;  %s1565_s16 = smov [#allocation2]  }
  0x1d   : > { %v1429_v61 = vld [vmem:[%s1960_s5 + $0xc0] sm:$0xff]   ;;  %v1435_v5 = vld [vmem:[%s1960_s5 + $0x88] sm:$0xff]   ;;  %v1454_v24 = vld [vmem:[%s1960_s5 + $0x30] sm:$0xff]   ;;  %s1504_s21 = sshll.u32 %s1565_s16, 4  ;;  %s1505_s21 = int_to_ptr.vmem [resolvable:$false] %s1504_s21 }
  0x1e   : > { %338 = vadd.xlane.f32.xlu0 %v1673_v1  ;;  %v1430_v62 = vld [vmem:[%s1960_s5] sm:$0xff]   ;;  %v1448_v18 = vld [vmem:[%s1960_s5 + $0x68] sm:$0xff]   ;;  %v1455_v25 = vld [vmem:[%s1960_s5 + $0xb0] sm:$0xff]   ;;  %p1502_p12 = pnand %p1501_p11, %p1656_p5  ;;  %s1506_s22 = scalar_lea.vmem %s1505_s21, 512 }
  0x1f   : > { %599 = vmatpush1.bf16.msra.mxu0 %v1408_v28  ;;  %642 = vmatpush1.bf16.msra.mxu1 %v1409_v29  ;;  %v1431_v63 = vld [vmem:[%s1960_s5 + $0x80] sm:$0xff]   ;;  %v1449_v19 = vld [vmem:[%s1960_s5 + $0xe8] sm:$0xff]   ;;  %v1456_v26 = vld [vmem:[%s1960_s5 + $0x78] sm:$0xff]   ;;  %p1507_p0 = scmp.lt.s32.totalorder %s1912_s26, %s1505_s21  ;;  %p1508_p1 = scmp.lt.s32.totalorder %s1506_s22, %s1500_s13 }
  0x20   : > { %600 = vmatprep.subr.bf16.mxu0 %v1410_v30  ;;  %643 = vmatprep.subr.bf16.mxu1 %v1412_v31  ;;  %v1446_v16 = vld [vmem:[%s1960_s5 + $0x20] sm:$0xff]   ;;  %v1450_v20 = vld [vmem:[%s1960_s5 + $0x28] sm:$0xff]   ;;  %v1457_v27 = vld [vmem:[%s1960_s5 + $0xf8] sm:$0xff]   ;;  %v410_v30 = vlaneseq  ;;  %p1503_p13 = pneg %p1502_p12 }
  0x21   : > { %v1447_v17 = vld [vmem:[%s1960_s5 + $0xa0] sm:$0xff]   ;;  %v1451_v21 = vld [vmem:[%s1960_s5 + $0xa8] sm:$0xff]   ;;  %v1458_v28 = vld [vmem:[%s1960_s5 + $0x38] sm:$0xff]   ;;  %p1509_p2 = por %p1508_p1, %p1507_p0 }
  0x22   : > { %v1459_v29 = vld [vmem:[%s1960_s5 + $0xb8] sm:$0xff]   ;;  %v411_v31 = vshrl.u32 %v410_v30, 7 }
  0x23   : > { %601 = vmatpush1.bf16.msra.mxu0 %v1414_v32  ;;  %644 = vmatpush1.bf16.msra.mxu1 %v1415_v33  ;;  %p1510_p3 = pnand %p1509_p2, %p1503_p13 }
  0x24   : > { %602 = vmatprep.subr.bf16.mxu0 %v1416_v34  ;;  %645 = vmatprep.subr.bf16.mxu1 %v1418_v35  ;;  %v412_v32 = vsub.s32 0, %v411_v31  ;;  %v420_v33 = vsub.s32 2, %v411_v31  ;;  %v408_v34 = vld [vmem:[%s1959_s4] sm:$0xf]  ;;  %v416_v35 = vsub.s32 1, %v411_v31  ;;  %v424_v36 = vsub.s32 3, %v411_v31 }
  0x27   : > { %603 = vmatpush1.bf16.msra.mxu0 %v1420_v37  ;;  %646 = vmatpush1.bf16.msra.mxu1 %v1421_v38  ;;  %v413_v37 = vrot.slane %v408_v34, %v412_v32  ;;  %v421_v38 = vrot.slane %v408_v34, %v420_v33 }
  0x28   : > { %604 = vmatprep.subr.bf16.mxu0 %v1422_v39  ;;  %647 = vmatprep.subr.bf16.mxu1 %v1424_v40  ;;  %v417_v39 = vrot.slane %v408_v34, %v416_v35  ;;  %v425_v40 = vrot.slane %v408_v34, %v424_v36 }
  0x2b   : > { %605 = vmatpush1.bf16.msra.mxu0 %v1426_v41  ;;  %648 = vmatpush1.bf16.msra.mxu1 %v1427_v42 }
  0x2c   : > { %1294 = vmatprep.subr.bf16.mxu0 %v1428_v60  ;;  %1316 = vmatprep.subr.bf16.mxu1 %v1429_v61 }
  0xa7   : > { %v337_v8 = vpop.xlane.xlu0 %336 }
  0xa8   : > { %v341_v9 = vmul.f32 0.0078125, %v337_v8  ;;  %v1438_v8 = vld [vmem:[%s1960_s5 + $0x10] sm:$0xff]  }
  0xaa   : > { %v1696_v10 = vsub.f32 %v1671_v0, %v341_v9  ;;  %v1439_v9 = vld [vmem:[%s1960_s5 + $0x90] sm:$0xff]  }
  0xab   : > { %v339_v11 = vpop.xlane.xlu0 %338 }
  0xac   : > { %v342_v12 = vmul.f32 0.0078125, %v339_v11  ;;  %v345_v13 = vmul.f32 %v1696_v10, %v1696_v10  ;;  %v1441_v11 = vld [vmem:[%s1960_s5 + $0xd8] sm:$0xff]  }
  0xae   : > { %v1701_v14 = vsub.f32 %v1673_v1, %v342_v12  ;;  %347 = vadd.xlane.f32.xlu1 %v345_v13  ;;  %v1442_v12 = vld [vmem:[%s1960_s5 + $0x18] sm:$0xff]  }
  0xaf   : > { %v1443_v13 = vld [vmem:[%s1960_s5 + $0x98] sm:$0xff]  }
  0xb0   : > { %v346_v15 = vmul.f32 %v1701_v14, %v1701_v14 }
  0xb2   : > { %349 = vadd.xlane.f32.xlu1 %v346_v15  ;;  %v1445_v15 = vld [vmem:[%s1960_s5 + $0xe0] sm:$0xff]  }
 0x13b   : > { %v348_v43 = vpop.xlane.xlu1 %347 }
 0x13c   : > { %v351_v44 = vmul.f32 0.0078125, %v348_v43 }
 0x13e   : > { %v353_v45 = vadd.f32 1e-05, %v351_v44 }
 0x13f   : > { %v350_v46 = vpop.xlane.xlu1 %349 }
 0x140   : > { %1460 = vrsqrt.f32 %v353_v45  ;;  %v352_v47 = vmul.f32 0.0078125, %v350_v46 }
 0x142   : > { %v354_v48 = vadd.f32 1e-05, %v352_v47 }
 0x144   : > { %1462 = vrsqrt.f32 %v354_v48 }
 0x14a   : > { %v1461_v49 = vpop.eup %1460 }
 0x14b   : > { %v357_v50 = vmul.f32 %v1461_v49, %v1696_v10  ;;  %v1440_v10 = vld [vmem:[%s1960_s5 + $0x58] sm:$0xff]  }
 0x14d   : > { %v365_v54 = vmul.f32 %v1210_v51, %v357_v50 }
 0x14e   : > { %v1463_v52 = vpop.eup %1462 }
 0x14f   : > { %v358_v53 = vmul.f32 %v1463_v52, %v1701_v14  ;;  %v373_v57 = vadd.f32 %v1211_v55, %v365_v54  ;;  %v1444_v14 = vld [vmem:[%s1960_s5 + $0x60] sm:$0xff]  }
 0x151   : > { %v366_v56 = vmul.f32 %v1210_v51, %v358_v53 }
 0x153   : > { %v374_v58 = vadd.f32 %v1211_v55, %v366_v56 }
 0x155   : > { %v407_v59 = vpack.c.bf16 %v374_v58, %v373_v57 }
 0x157   : > { %623 = vmatmul.mubr.bf16.vlgmr.msra.gmra.mrb[0].mxu0 %v407_v59  ;;  %666 = vmatmul.mubr.bf16.vlgmr.msra.gmra.mrb[0].mxu1 %v407_v59 }
 0x158   : > { %1295 = vmatpush3.bf16.msra.mxu0 %v1430_v62  ;;  %1317 = vmatpush3.bf16.msra.mxu1 %v1431_v63 }
 0x159   : > { %1296 = vmatprep.subr.bf16.mxu0 %v1432_v2  ;;  %1318 = vmatprep.subr.bf16.mxu1 %v1433_v3 }
 0x15c   : > { %1297 = vmatpush3.bf16.msra.mxu0 %v1434_v4  ;;  %1319 = vmatpush3.bf16.msra.mxu1 %v1435_v5 }
 0x15d   : > { %1298 = vmatprep.subr.bf16.mxu0 %v1436_v6  ;;  %1320 = vmatprep.subr.bf16.mxu1 %v1437_v7 }
 0x160   : > { %1299 = vmatpush3.bf16.msra.mxu0 %v1438_v8  ;;  %1321 = vmatpush3.bf16.msra.mxu1 %v1439_v9 }
 0x161   : > { %1300 = vmatprep.subr.bf16.mxu0 %v1440_v10  ;;  %1322 = vmatprep.subr.bf16.mxu1 %v1441_v11 }
 0x164   : > { %1301 = vmatpush3.bf16.msra.mxu0 %v1442_v12  ;;  %1323 = vmatpush3.bf16.msra.mxu1 %v1443_v13 }
 0x165   : > { %1302 = vmatprep.subr.bf16.mxu0 %v1444_v14  ;;  %1324 = vmatprep.subr.bf16.mxu1 %v1445_v15 }
 0x168   : > { %1303 = vmatpush3.bf16.msra.mxu0 %v1446_v16  ;;  %1325 = vmatpush3.bf16.msra.mxu1 %v1447_v17 }
 0x169   : > { %1304 = vmatprep.subr.bf16.mxu0 %v1448_v18  ;;  %1326 = vmatprep.subr.bf16.mxu1 %v1449_v19 }
 0x16c   : > { %1305 = vmatpush3.bf16.msra.mxu0 %v1450_v20  ;;  %1327 = vmatpush3.bf16.msra.mxu1 %v1451_v21 }
 0x16d   : > { %1306 = vmatprep.subr.bf16.mxu0 %v1452_v22  ;;  %1328 = vmatprep.subr.bf16.mxu1 %v1453_v23 }
 0x170   : > { %1307 = vmatpush3.bf16.msra.mxu0 %v1454_v24  ;;  %1329 = vmatpush3.bf16.msra.mxu1 %v1455_v25 }
 0x171   : > { %1308 = vmatprep.subr.bf16.mxu0 %v1456_v26  ;;  %1330 = vmatprep.subr.bf16.mxu1 %v1457_v27 }
 0x174   : > { %1309 = vmatpush3.bf16.msra.mxu0 %v1458_v28  ;;  %1331 = vmatpush3.bf16.msra.mxu1 %v1459_v29 }
 0x22a   : > { %v624_v41 = vpop.f32.mrb[0].mxu0  ;;  %v667_v42 = vpop.f32.mrb[0].mxu1 }
 0x22b   : > { %v625_v43 = vadd.f32 %v624_v41, %v413_v37  ;;  %v668_v44 = vadd.f32 %v667_v42, %v421_v38  ;;  %v626_v45 = vpop.f32.mrb[1].mxu0  ;;  %v669_v46 = vpop.f32.mrb[1].mxu1  ;;  %v1252_v41 = vld [vmem:[%s1961_s6] ss:$0 sm:$0xff] }
 0x22c   : > { %v627_v47 = vadd.f32 %v626_v45, %v417_v39  ;;  %v1890_v48 = vadd.f32 %v669_v46, %v425_v40  ;;  %v628_v49 = vpop.f32.mrb[2].mxu0  ;;  %v671_v50 = vpop.f32.mrb[2].mxu1 }
 0x22d   : > { %v1244_v51 = vmul.f32 -1.442695, %v625_v43  ;;  %v1246_v52 = vmul.f32 -1.442695, %v668_v44  ;;  %v629_v53 = vadd.f32 %v628_v49, %v413_v37  ;;  %v672_v54 = vadd.f32 %v671_v50, %v421_v38  ;;  %v630_v55 = vpop.f32.mrb[3].mxu0  ;;  %v673_v56 = vpop.f32.mrb[3].mxu1 }
 0x22e   : > { %v1245_v57 = vmul.f32 -1.442695, %v627_v47  ;;  %v1247_v58 = vmul.f32 -1.442695, %v1890_v48  ;;  %v631_v59 = vadd.f32 %v630_v55, %v417_v39  ;;  %v674_v60 = vadd.f32 %v673_v56, %v425_v40 }
 0x22f   : > { %1464 = vpow2.f32 %v1244_v51  ;;  %v1248_v61 = vmul.f32 -1.442695, %v629_v53  ;;  %v1250_v62 = vmul.f32 -1.442695, %v672_v54 }
 0x230   : > { %1466 = vpow2.f32 %v1246_v52  ;;  %v1249_v63 = vmul.f32 -1.442695, %v631_v59  ;;  %v1251_v2 = vmul.f32 -1.442695, %v674_v60 }
 0x231   : > { %1468 = vpow2.f32 %v1245_v57 }
 0x232   : > { %1470 = vpow2.f32 %v1247_v58 }
 0x233   : > { %1472 = vpow2.f32 %v1248_v61 }
 0x234   : > { %1474 = vpow2.f32 %v1250_v62 }
 0x235   : > { %1476 = vpow2.f32 %v1249_v63 }
 0x236   : > { %1478 = vpow2.f32 %v1251_v2 }
 0x239   : > { %v1465_v3 = vpop.eup %1464 }
 0x23a   : > { %v1467_v4 = vpop.eup %1466  ;;  %v700_v5 = vadd.f32 1.0, %v1465_v3 }
 0x23b   : > { %v1469_v6 = vpop.eup %1468  ;;  %v702_v7 = vadd.f32 1.0, %v1467_v4 }
 0x23c   : > { %v1471_v8 = vpop.eup %1470  ;;  %1480 = vrcp.f32 %v700_v5  ;;  %v701_v9 = vadd.f32 1.0, %v1469_v6 }
 0x23d   : > { %v1473_v10 = vpop.eup %1472  ;;  %1482 = vrcp.f32 %v702_v7  ;;  %v703_v11 = vadd.f32 1.0, %v1471_v8 }
 0x23e   : > { %v1475_v12 = vpop.eup %1474  ;;  %1484 = vrcp.f32 %v701_v9  ;;  %v704_v13 = vadd.f32 1.0, %v1473_v10 }
 0x23f   : > { %v1477_v14 = vpop.eup %1476  ;;  %1486 = vrcp.f32 %v703_v11  ;;  %v706_v15 = vadd.f32 1.0, %v1475_v12  ;;  %v1285_v11 = vld [vmem:[%s1962_s7] ss:$0 sm:$0xff] }
 0x240   : > { %v1479_v16 = vpop.eup %1478  ;;  %1488 = vrcp.f32 %v704_v13  ;;  %v705_v17 = vadd.f32 1.0, %v1477_v14  ;;  %v1286_v14 = vld [vmem:[%s1963_s8] ss:$0 sm:$0xff] }
 0x241   : > { %1490 = vrcp.f32 %v706_v15  ;;  %v707_v18 = vadd.f32 1.0, %v1479_v16 }
 0x242   : > { %1492 = vrcp.f32 %v705_v17 }
 0x243   : > { %1494 = vrcp.f32 %v707_v18 }
 0x246   : > { %v1481_v19 = vpop.eup %1480 }
 0x247   : > { %v1483_v20 = vpop.eup %1482  ;;  %v724_v25 = vmul.f32 %v1481_v19, %v625_v43 }
 0x248   : > { %v1485_v21 = vpop.eup %1484  ;;  %v726_v28 = vmul.f32 %v1483_v20, %v668_v44 }
 0x249   : > { %v1487_v22 = vpop.eup %1486  ;;  %v725_v31 = vmul.f32 %v1485_v21, %v627_v47 }
 0x24a   : > { %v1489_v23 = vpop.eup %1488  ;;  %v727_v34 = vmul.f32 %v1487_v22, %v1890_v48 }
 0x24b   : > { %v1491_v24 = vpop.eup %1490  ;;  %v728_v26 = vmul.f32 %v1489_v23, %v629_v53 }
 0x24c   : > { %v1493_v27 = vpop.eup %1492  ;;  %v730_v29 = vmul.f32 %v1491_v24, %v672_v54 }
 0x24d   : > { %v1495_v30 = vpop.eup %1494  ;;  %v796_v32 = vpack.c.bf16 %v728_v26, %v724_v25  ;;  %v729_v33 = vmul.f32 %v1493_v27, %v631_v59 }
 0x24e   : > { %v798_v35 = vpack.c.bf16 %v730_v29, %v726_v28  ;;  %v731_v36 = vmul.f32 %v1495_v30, %v674_v60 }
 0x24f   : > { %v797_v37 = vpack.c.bf16 %v729_v33, %v725_v31 }
 0x250   : > { %v799_v38 = vpack.c.bf16 %v731_v36, %v727_v34 }
 0x251   : > { %1031 = vmatprep.mubr.bf16.mxu0 %v797_v37 }
 0x252   : > { %1072 = vmatprep.mubr.bf16.mxu1 %v799_v38  ;;  %1032 = vmatmul.mubr.bf16.vlgmr.msra.gmra.mrb[4].mxu0 %v796_v32 }
 0x253   : > { %1073 = vmatmul.mubr.bf16.vlgmr.msra.gmra.mrb[4].mxu1 %v798_v35 }
 0x325   : > { %v1310_v39 = vpop.f32.mrb[4].mxu0 }
 0x326   : > { %v1332_v40 = vpop.f32.mrb[4].mxu1  ;;  %v1311_v42 = vpop.f32.mrb[5].mxu0 }
 0x327   : > { %v1312_v43 = vadd.f32 %v1311_v42, %v1310_v39  ;;  %v1333_v44 = vpop.f32.mrb[5].mxu1  ;;  %v1313_v45 = vpop.f32.mrb[6].mxu0 }
 0x328   : > { %v1334_v46 = vadd.f32 %v1333_v44, %v1332_v40  ;;  %v1335_v47 = vpop.f32.mrb[6].mxu1  ;;  %v1314_v48 = vpop.f32.mrb[7].mxu0 }
 0x329   : > { %v1034_v49 = vadd.f32 %v1312_v43, %v1252_v41  ;;  %v1315_v50 = vadd.f32 %v1314_v48, %v1313_v45  ;;  %v1336_v51 = vpop.f32.mrb[7].mxu1 }
 0x32a   : > { %v1337_v52 = vadd.f32 %v1336_v51, %v1335_v47 }
 0x32b   : > { %v1075_v53 = vadd.f32 %v1334_v46, %v1034_v49  ;;  %v1037_v54 = vadd.f32 %v1315_v50, %v1252_v41 }
 0x32d   : > { %v1081_v55 = vmul.f32 0.5, %v1075_v53  ;;  %v1078_v56 = vadd.f32 %v1337_v52, %v1037_v54 }
 0x32f   : > { %v1082_v57 = vmul.f32 0.5, %v1078_v56  ;;  %v1083_v58 = vadd.f32 %v1081_v55, %v1671_v0 }
 0x331   : > { %1087 = vadd.xlane.f32.xlu0 %v1083_v58  ;;  %v1084_v59 = vadd.f32 %v1082_v57, %v1673_v1 }
 0x333   : > { %1089 = vadd.xlane.f32.xlu1 %v1084_v59 }
 0x3be   : > { %v1088_v60 = vpop.xlane.xlu0 %1087 }
 0x3bf   : > { %v1091_v61 = vmul.f32 0.0078125, %v1088_v60 }
 0x3c0   : > { %v1090_v62 = vpop.xlane.xlu1 %1089 }
 0x3c1   : > { %v1093_v63 = vsub.f32 %v1083_v58, %v1091_v61  ;;  %v1092_v2 = vmul.f32 0.0078125, %v1090_v62 }
 0x3c3   : > { %v1094_v3 = vsub.f32 %v1084_v59, %v1092_v2  ;;  %v1095_v4 = vmul.f32 %v1093_v63, %v1093_v63 }
 0x3c5   : > { %1097 = vadd.xlane.f32.xlu0 %v1095_v4  ;;  %v1096_v5 = vmul.f32 %v1094_v3, %v1094_v3 }
 0x3c7   : > { %1099 = vadd.xlane.f32.xlu1 %v1096_v5 }
 0x452   : > { %v1098_v6 = vpop.xlane.xlu0 %1097 }
 0x453   : > { %v1101_v7 = vmul.f32 0.0078125, %v1098_v6 }
 0x454   : > { %v1100_v8 = vpop.xlane.xlu1 %1099 }
 0x455   : > { %v1103_v0 = vadd.f32 1e-05, %v1101_v7  ;;  %v1102_v9 = vmul.f32 0.0078125, %v1100_v8 }
 0x457   : > { %1496 = vrsqrt.f32 %v1103_v0  ;;  %v1104_v1 = vadd.f32 1e-05, %v1102_v9 }
 0x459   : > { %1498 = vrsqrt.f32 %v1104_v1 }
 0x461   : > { %v1497_v10 = vpop.eup %1496 }
 0x462   : > { %v1107_v12 = vmul.f32 %v1497_v10, %v1093_v63 }
 0x463   : > { %v1499_v13 = vpop.eup %1498 }
 0x464   : > { %v1115_v15 = vmul.f32 %v1285_v11, %v1107_v12  ;;  %v1108_v16 = vmul.f32 %v1499_v13, %v1094_v3 }
 0x466   : > { %v1116_v17 = vmul.f32 %v1285_v11, %v1108_v16  ;;  %v1123_v18 = vadd.f32 %v1286_v14, %v1115_v15 }
 0x468   : > { %v1124_v19 = vadd.f32 %v1286_v14, %v1116_v17  ;;  %1125 = vst [vmem:[%s325_s25] sm:$0xff] %v1123_v18 }
 0x46a   : > { %1126 = vst [vmem:[%s325_s25 + $0x8] sm:$0xff] %v1124_v19 }
 0x46b   : > { %1513 = shalt.err (!%p1510_p3)
}
 0x46c   : > { %s1514_s14 = scalar_lea.hbm %s1910_s29, 256  ;;  %s1518_s25 = scalar_lea.hbm %s1964_s9, 512 }
 0x46d   : > { %p1515_p4 = scmp.ne.s32.totalorder %s1910_s29, %s1514_s14  ;;  %p1519_p9 = scmp.lt.u32.totalorder %s1910_s29, %s1964_s9 }
 0x46e   : > { %p1520_p10 = scmp.lt.u32.totalorder %s1518_s25, %s1514_s14  ;;  %p1522_p12 = scmp.lt.u32.totalorder %s1514_s14, %s1910_s29 }
 0x46f   : > { %p1516_p7 = pnand %p1515_p4, %p1656_p5 }
 0x470   : > { %p1521_p11 = por %p1520_p10, %p1519_p9 }
 0x471   : > { %p1517_p8 = pneg %p1516_p7 }
 0x472   : > { %p1523_p13 = por %p1522_p12, %p1521_p11 }
 0x474   : > { %p1524_p0 = pnand %p1523_p13, %p1517_p8 }
 0x476   : > { %1527 = shalt.err (!%p1524_p0)
}
 0x477   : > { %s1566_s13 = smov 128   ;;  %s1567_s16 = smov 8  }
 0x478   : > { %1338 = dma.vmem_to_hbm [thread:$0]  (%p1656_p5), %s1912_s26, 256, %s1910_s29, %s1914_s17, %s1566_s13, %s1566_s13, %s1567_s16  }
 0x479 PF: > { %p1344_p1 = scmp.ge.s32.totalorder %s1562_s12, 2  ;;  %s1156_s21 = sand.u32 1, %s1550_s30  }
 0x47a   : > { %s1157_s22 = scalar_lea.sflag [#allocation3], %s1156_s21 }
 0x47b   : > { %p1341_p2 = pnand %p1344_p1, %p1660_p6 }
 0x47d   : > { %1545 = dma.done.wait (!%p1341_p2), %s1157_s22, 256  }
 0x47e   : > { %1547 = vsyncadd (!%p1341_p2), %s1157_s22, 4294967040  ;;  %p19_p3 = scmp.ge.s32.totalorder %s1643_s15, 4   ;;  %s1967_s30 = smov %s1554_s10 }
 0x47f   : > { %s1968_s10 = smov %s1558_s11  ;;  %s1969_s11 = smov %s1654_s18 }
 0x480   : > { %s1970_s12 = smov %s1643_s15  ;;  %21 = sbr.rel (!%p19_p3) target bundleno = 3 (0x3), region = 91 }
 0x487   :  { %1162 = vsyncpa [#allocation3], 1 }
 0x488   :  { %1164 = vsyncpa [#allocation3 + $0x1], 1 }

</bundles_post_ra>
